<compile_context>
chip_gen: v5e
topology: v5e:2x2
jax: 0.10.0
libtpu: 0.0.40
codegen_flags: <defaults>
</compile_context>

<pallas_src>
import jax
import jax.numpy as jnp
from jax.experimental import pallas as pl
from jax.experimental.pallas import tpu as pltpu

NUM_CLASSES = 10
NUM_FEATURES = 3072
NUM_HIDDEN_1 = 512
NUM_HIDDEN_2 = 256

PADDED_CLASSES = 128      # lane-dense class dimension (multiple of 128)
NEG_BIG = -1e30           # bias for padded classes -> exp() underflows to 0
MAX_TB = 512              # max batch-tile rows (big DMAs, fits VMEM easily)


def _round_up(n, m):
    return (n + m - 1) // m * m


def _choose_tb(B):
    """Batch tile. Single full-batch block for tiny B; >=2 tiles for B>=16 so
    both v7x TensorCores get work; capped at MAX_TB rows for large batches."""
    if B < 16:
        return B                                   # block == full dim is always legal
    return min(MAX_TB, _round_up(pl.cdiv(B, 2), 8))


def mlp_kernel(x_ref, w1_ref, b1_ref, w2_ref, b2_ref, w3_ref, b3_ref,
               logits_ref, logprob_ref):
    # fc1: x tile streamed in f32, converted to bf16 on the VPU (free),
    # f32 accumulation on the MXU. All weights are VMEM-resident bf16.
    xb = x_ref[...].astype(jnp.bfloat16)
    h1 = jnp.dot(xb, w1_ref[...], preferred_element_type=jnp.float32)
    h1 = jnp.maximum(h1 + b1_ref[...], 0.0)

    # fc2 / fc3: bf16 operands, f32 accumulation (avoids multi-pass f32 matmul).
    h2 = jnp.dot(h1.astype(jnp.bfloat16), w2_ref[...],
                 preferred_element_type=jnp.float32)
    h2 = jnp.maximum(h2 + b2_ref[...], 0.0)

    logits = jnp.dot(h2.astype(jnp.bfloat16), w3_ref[...],
                     preferred_element_type=jnp.float32)
    logits = logits + b3_ref[...]               # padded classes -> ~ -1e30
    logits_ref[...] = logits.astype(logits_ref.dtype)

    # numerically stable log_softmax along the (padded) class lane axis;
    # padded columns contribute exp(-1e30 - m) == 0 to the sum.
    m = jnp.max(logits, axis=-1, keepdims=True)
    shifted = logits - m
    lse = jnp.log(jnp.sum(jnp.exp(shifted), axis=-1, keepdims=True))
    logprob_ref[...] = (shifted - lse).astype(logprob_ref.dtype)


def prepare_params(w1, b1, w2, b2, w3, b3):
    """One-time parameter prep (do NOT call per forward): bf16 weights,
    class-padded fc3, -1e30 bias on padded classes. Biases stay f32 (tiny)."""
    w1b = w1.astype(jnp.bfloat16)
    w2b = w2.astype(jnp.bfloat16)
    w3p = jnp.pad(w3, ((0, 0), (0, PADDED_CLASSES - NUM_CLASSES))
                  ).astype(jnp.bfloat16)
    b3p = jnp.pad(b3, ((0, 0), (0, PADDED_CLASSES - NUM_CLASSES)),
                  constant_values=NEG_BIG).astype(jnp.float32)
    return w1b, b1, w2b, b2, w3p, b3p


@jax.jit
def net_forward(x, w1b, b1, w2b, b2, w3p, b3p):
    B = x.shape[0]
    tb = _choose_tb(B)
    grid = (pl.cdiv(B, tb),)       # ragged last tile handled by masked stores

    out_shape = (
        jax.ShapeDtypeStruct((B, PADDED_CLASSES), jnp.float32),
        jax.ShapeDtypeStruct((B, PADDED_CLASSES), jnp.float32),
    )

    logits_p, logprob_p = pl.pallas_call(
        mlp_kernel,
        out_shape=out_shape,
        grid=grid,
        in_specs=[
            pl.BlockSpec((tb, NUM_FEATURES), lambda b: (b, 0)),            # x (f32)
            pl.BlockSpec((NUM_FEATURES, NUM_HIDDEN_1), lambda b: (0, 0)),  # W1 (bf16, resident)
            pl.BlockSpec((1, NUM_HIDDEN_1), lambda b: (0, 0)),             # b1
            pl.BlockSpec((NUM_HIDDEN_1, NUM_HIDDEN_2), lambda b: (0, 0)),  # W2 (bf16)
            pl.BlockSpec((1, NUM_HIDDEN_2), lambda b: (0, 0)),             # b2
            pl.BlockSpec((NUM_HIDDEN_2, PADDED_CLASSES), lambda b: (0, 0)),# W3 (bf16, padded)
            pl.BlockSpec((1, PADDED_CLASSES), lambda b: (0, 0)),           # b3 (padded)
        ],
        out_specs=(
            pl.BlockSpec((tb, PADDED_CLASSES), lambda b: (b, 0)),
            pl.BlockSpec((tb, PADDED_CLASSES), lambda b: (b, 0)),
        ),
        compiler_params=pltpu.CompilerParams(
            dimension_semantics=("parallel",),
            vmem_limit_bytes=32 << 20,
        ),
    )(x, w1b, b1, w2b, b2, w3p, b3p)

    # slice away class padding (batch is never padded)
    return logits_p[:, :NUM_CLASSES], logprob_p[:, :NUM_CLASSES]


def reference_forward(x, w1, b1, w2, b2, w3, b3):
    """Pure-JAX reference with the same bf16 matmul policy as the kernel."""
    h1 = jnp.maximum(
        jnp.dot(x.astype(jnp.bfloat16), w1.astype(jnp.bfloat16),
                preferred_element_type=jnp.float32) + b1, 0.0)
    h2 = jnp.maximum(
        jnp.dot(h1.astype(jnp.bfloat16), w2.astype(jnp.bfloat16),
                preferred_element_type=jnp.float32) + b2, 0.0)
    logits = jnp.dot(h2.astype(jnp.bfloat16), w3.astype(jnp.bfloat16),
                     preferred_element_type=jnp.float32) + b3
    logprob = jax.nn.log_softmax(logits, axis=-1)
    return logits, logprob


def init_params(key):
    """Deterministic init mimicking PyTorch nn.Linear (uniform +/- 1/sqrt(fan_in))."""
    ks = jax.random.split(key, 6)

    def linear(kw, kb, fan_in, fan_out):
        bound = 1.0 / jnp.sqrt(fan_in)
        w = jax.random.uniform(kw, (fan_in, fan_out), jnp.float32, -bound, bound)
        b = jax.random.uniform(kb, (1, fan_out), jnp.float32, -bound, bound)
        return w, b

    w1, b1 = linear(ks[0], ks[1], NUM_FEATURES, NUM_HIDDEN_1)
    w2, b2 = linear(ks[2], ks[3], NUM_HIDDEN_1, NUM_HIDDEN_2)
    w3, b3 = linear(ks[4], ks[5], NUM_HIDDEN_2, NUM_CLASSES)
    return w1, b1, w2, b2, w3, b3


if __name__ == "__main__":
    key = jax.random.PRNGKey(0)
    k_x, k_p = jax.random.split(key)

    batch = 8  # small batch; features fixed at 3072 by the module definition
    x = jax.random.normal(k_x, (batch, NUM_FEATURES), jnp.float32)

    params = init_params(k_p)
    kernel_params = prepare_params(*params)   # one-time bf16 cast / class pad

    logits, log_probas = net_forward(x, *kernel_params)
    jax.block_until_ready((logits, log_probas))

    assert logits.shape == (batch, NUM_CLASSES)
    assert log_probas.shape == (batch, NUM_CLASSES)

    # sanity: log_softmax rows must exp-sum to 1
    row_sums = jnp.sum(jnp.exp(log_probas), axis=1)
    assert jnp.allclose(row_sums, jnp.ones((batch,)), atol=1e-5)

    # correctness vs. pure-JAX reference (same bf16 matmul policy)
    ref_logits, ref_logprob = reference_forward(x, *params)
    assert jnp.allclose(logits, ref_logits, atol=1e-2, rtol=1e-2)
    assert jnp.allclose(log_probas, ref_logprob, atol=1e-2, rtol=1e-2)

    print("KERNEL_OK")
</pallas_src>

<mosaic_0001>
module attributes {stable_mosaic.version = 11 : i64} {
  func.func @mlp_kernel(%arg0: i32, %arg1: memref<8x3072xf32, #tpu.memory_space<vmem>>, %arg2: memref<3072x512xbf16, #tpu.memory_space<vmem>>, %arg3: memref<1x512xf32, #tpu.memory_space<vmem>>, %arg4: memref<512x256xbf16, #tpu.memory_space<vmem>>, %arg5: memref<1x256xf32, #tpu.memory_space<vmem>>, %arg6: memref<256x128xbf16, #tpu.memory_space<vmem>>, %arg7: memref<1x128xf32, #tpu.memory_space<vmem>>, %arg8: memref<8x128xf32, #tpu.memory_space<vmem>>, %arg9: memref<8x128xf32, #tpu.memory_space<vmem>>) attributes {dimension_semantics = [#tpu.dimension_semantics<parallel>], iteration_bounds = array<i64: 1>, scalar_prefetch = 0 : i64, scratch_operands = 0 : i64, tpu.core_type = #tpu.core_type<tc>, window_params = [{transform_indices = @transform_0, window_bounds = array<i64: 8, 3072>}, {pipeline_mode = #tpu.pipeline_mode<synchronous>, transform_indices = @transform_1, window_bounds = array<i64: 3072, 512>}, {pipeline_mode = #tpu.pipeline_mode<synchronous>, transform_indices = @transform_2, window_bounds = array<i64: 1, 512>}, {pipeline_mode = #tpu.pipeline_mode<synchronous>, transform_indices = @transform_3, window_bounds = array<i64: 512, 256>}, {pipeline_mode = #tpu.pipeline_mode<synchronous>, transform_indices = @transform_4, window_bounds = array<i64: 1, 256>}, {pipeline_mode = #tpu.pipeline_mode<synchronous>, transform_indices = @transform_5, window_bounds = array<i64: 256, 128>}, {pipeline_mode = #tpu.pipeline_mode<synchronous>, transform_indices = @transform_6, window_bounds = array<i64: 1, 128>}, {transform_indices = @transform_7, window_bounds = array<i64: 8, 128>}, {transform_indices = @transform_8, window_bounds = array<i64: 8, 128>}]} {
    %c0 = arith.constant 0 : index
    %c0_0 = arith.constant 0 : index
    %0 = vector.load %arg1[%c0, %c0_0] : memref<8x3072xf32, #tpu.memory_space<vmem>>, vector<8x3072xf32>
    %1 = arith.truncf %0 : vector<8x3072xf32> to vector<8x3072xbf16>
    %c0_1 = arith.constant 0 : index
    %c0_2 = arith.constant 0 : index
    %2 = vector.load %arg2[%c0_1, %c0_2] : memref<3072x512xbf16, #tpu.memory_space<vmem>>, vector<3072x512xbf16>
    %cst = arith.constant dense<0.000000e+00> : vector<8x512xf32>
    %3 = tpu.matmul %1, %2, %cst {dimension_numbers = #tpu.dot_dimension_numbers<[1], [0], [0], [1], [0, 0, 1, 1], [], []>} : vector<8x3072xbf16>, vector<3072x512xbf16>, vector<8x512xf32> -> vector<8x512xf32>
    %c0_3 = arith.constant 0 : index
    %c0_4 = arith.constant 0 : index
    %4 = vector.load %arg3[%c0_3, %c0_4] : memref<1x512xf32, #tpu.memory_space<vmem>>, vector<1x512xf32>
    %5 = vector.broadcast %4 : vector<1x512xf32> to vector<8x512xf32>
    %6 = arith.addf %3, %5 : vector<8x512xf32>
    %cst_5 = arith.constant 0.000000e+00 : f32
    %7 = vector.broadcast %cst_5 : f32 to vector<8x512xf32>
    %8 = arith.maximumf %6, %7 : vector<8x512xf32>
    %9 = arith.truncf %8 : vector<8x512xf32> to vector<8x512xbf16>
    %c0_6 = arith.constant 0 : index
    %c0_7 = arith.constant 0 : index
    %10 = vector.load %arg4[%c0_6, %c0_7] : memref<512x256xbf16, #tpu.memory_space<vmem>>, vector<512x256xbf16>
    %cst_8 = arith.constant dense<0.000000e+00> : vector<8x256xf32>
    %11 = tpu.matmul %9, %10, %cst_8 {dimension_numbers = #tpu.dot_dimension_numbers<[1], [0], [0], [1], [0, 0, 1, 1], [], []>} : vector<8x512xbf16>, vector<512x256xbf16>, vector<8x256xf32> -> vector<8x256xf32>
    %c0_9 = arith.constant 0 : index
    %c0_10 = arith.constant 0 : index
    %12 = vector.load %arg5[%c0_9, %c0_10] : memref<1x256xf32, #tpu.memory_space<vmem>>, vector<1x256xf32>
    %13 = vector.broadcast %12 : vector<1x256xf32> to vector<8x256xf32>
    %14 = arith.addf %11, %13 : vector<8x256xf32>
    %cst_11 = arith.constant 0.000000e+00 : f32
    %15 = vector.broadcast %cst_11 : f32 to vector<8x256xf32>
    %16 = arith.maximumf %14, %15 : vector<8x256xf32>
    %17 = arith.truncf %16 : vector<8x256xf32> to vector<8x256xbf16>
    %c0_12 = arith.constant 0 : index
    %c0_13 = arith.constant 0 : index
    %18 = vector.load %arg6[%c0_12, %c0_13] : memref<256x128xbf16, #tpu.memory_space<vmem>>, vector<256x128xbf16>
    %cst_14 = arith.constant dense<0.000000e+00> : vector<8x128xf32>
    %19 = tpu.matmul %17, %18, %cst_14 {dimension_numbers = #tpu.dot_dimension_numbers<[1], [0], [0], [1], [0, 0, 1, 1], [], []>} : vector<8x256xbf16>, vector<256x128xbf16>, vector<8x128xf32> -> vector<8x128xf32>
    %c0_15 = arith.constant 0 : index
    %c0_16 = arith.constant 0 : index
    %20 = vector.load %arg7[%c0_15, %c0_16] : memref<1x128xf32, #tpu.memory_space<vmem>>, vector<1x128xf32>
    %21 = vector.broadcast %20 : vector<1x128xf32> to vector<8x128xf32>
    %22 = arith.addf %19, %21 : vector<8x128xf32>
    %c0_17 = arith.constant 0 : index
    %c0_18 = arith.constant 0 : index
    %23 = vector.load %arg8[%c0_17, %c0_18] : memref<8x128xf32, #tpu.memory_space<vmem>>, vector<8x128xf32>
    tpu.vector_store %arg8[%c0_17, %c0_18], %22 {strides = array<i32>} : memref<8x128xf32, #tpu.memory_space<vmem>>, vector<8x128xf32>,
    %cst_19 = arith.constant dense<0xFF800000> : vector<8xf32>
    %24 = vector.multi_reduction <maximumf>, %22, %cst_19 [1] : vector<8x128xf32> to vector<8xf32>
    %25 = vector.shape_cast %24 : vector<8xf32> to vector<8x1xf32>
    %26 = vector.broadcast %25 : vector<8x1xf32> to vector<8x128xf32>
    %27 = arith.subf %22, %26 : vector<8x128xf32>
    %28 = math.exp %27 : vector<8x128xf32>
    %cst_20 = arith.constant dense<0.000000e+00> : vector<8xf32>
    %29 = vector.multi_reduction <add>, %28, %cst_20 [1] : vector<8x128xf32> to vector<8xf32>
    %30 = vector.shape_cast %29 : vector<8xf32> to vector<8x1xf32>
    %31 = math.log %30 : vector<8x1xf32>
    %32 = vector.broadcast %31 : vector<8x1xf32> to vector<8x128xf32>
    %33 = arith.subf %27, %32 : vector<8x128xf32>
    %c0_21 = arith.constant 0 : index
    %c0_22 = arith.constant 0 : index
    %34 = vector.load %arg9[%c0_21, %c0_22] : memref<8x128xf32, #tpu.memory_space<vmem>>, vector<8x128xf32>
    tpu.vector_store %arg9[%c0_21, %c0_22], %33 {strides = array<i32>} : memref<8x128xf32, #tpu.memory_space<vmem>>, vector<8x128xf32>,
    return
  }
  func.func @transform_0(%arg0: i32) -> (i32, i32) {
    %c0_i32 = arith.constant 0 : i32
    %c0_i32_0 = arith.constant 0 : i32
    return %arg0, %c0_i32 : i32, i32
  }
  func.func @transform_1(%arg0: i32) -> (i32, i32) {
    %c0_i32 = arith.constant 0 : i32
    %c0_i32_0 = arith.constant 0 : i32
    %c0_i32_1 = arith.constant 0 : i32
    return %c0_i32, %c0_i32_0 : i32, i32
  }
  func.func @transform_2(%arg0: i32) -> (i32, i32) {
    %c0_i32 = arith.constant 0 : i32
    %c0_i32_0 = arith.constant 0 : i32
    %c0_i32_1 = arith.constant 0 : i32
    return %c0_i32, %c0_i32_0 : i32, i32
  }
  func.func @transform_3(%arg0: i32) -> (i32, i32) {
    %c0_i32 = arith.constant 0 : i32
    %c0_i32_0 = arith.constant 0 : i32
    %c0_i32_1 = arith.constant 0 : i32
    return %c0_i32, %c0_i32_0 : i32, i32
  }
  func.func @transform_4(%arg0: i32) -> (i32, i32) {
    %c0_i32 = arith.constant 0 : i32
    %c0_i32_0 = arith.constant 0 : i32
    %c0_i32_1 = arith.constant 0 : i32
    return %c0_i32, %c0_i32_0 : i32, i32
  }
  func.func @transform_5(%arg0: i32) -> (i32, i32) {
    %c0_i32 = arith.constant 0 : i32
    %c0_i32_0 = arith.constant 0 : i32
    %c0_i32_1 = arith.constant 0 : i32
    return %c0_i32, %c0_i32_0 : i32, i32
  }
  func.func @transform_6(%arg0: i32) -> (i32, i32) {
    %c0_i32 = arith.constant 0 : i32
    %c0_i32_0 = arith.constant 0 : i32
    %c0_i32_1 = arith.constant 0 : i32
    return %c0_i32, %c0_i32_0 : i32, i32
  }
  func.func @transform_7(%arg0: i32) -> (i32, i32) {
    %c0_i32 = arith.constant 0 : i32
    %c0_i32_0 = arith.constant 0 : i32
    return %arg0, %c0_i32 : i32, i32
  }
  func.func @transform_8(%arg0: i32) -> (i32, i32) {
    %c0_i32 = arith.constant 0 : i32
    %c0_i32_0 = arith.constant 0 : i32
    return %arg0, %c0_i32 : i32, i32
  }
}

</mosaic_0001>

<bundles_post_ra>
// kernel: net_forward.1
= control target key start
LH: loop header
LB: loop body
LE: loop exit
PB: predicated region body
PF: predicated region fallthrough
CT: control target
= control target key end

     0   :  { %14 = vsyncpa [#allocation3], 0  ;;  %s11554_s0 = inlined_call_operand.hbm [shape: f32[8,3072], index: 0, kind: input, shape index: {}]   ;;  %s11555_s1 = inlined_call_operand.hbm [shape: bf16[3072,512], index: 1, kind: input, shape index: {}]   ;;  %s11556_s2 = inlined_call_operand.hbm [shape: f32[1,512], index: 2, kind: input, shape index: {}]   ;;  %s11557_s3 = inlined_call_operand.hbm [shape: bf16[512,256], index: 3, kind: input, shape index: {}]   ;;  %s11558_s4 = inlined_call_operand.hbm [shape: f32[1,256], index: 4, kind: input, shape index: {}]   ;;  %s11559_s5 = inlined_call_operand.hbm [shape: bf16[256,128], index: 5, kind: input, shape index: {}]   ;;  %s11560_s6 = inlined_call_operand.hbm [shape: f32[1,128], index: 6, kind: input, shape index: {}]   ;;  %s11561_s7 = inlined_call_operand.hbm [shape: f32[8,128], index: 7, kind: output, shape index: {0}]   ;;  %s11562_s8 = inlined_call_operand.hbm [shape: f32[8,128], index: 8, kind: output, shape index: {1}]  }
   0x1   :  { %15 = vsyncpa [#allocation6], 0 }
   0x2   :  { %16 = vsyncpa [#allocation9], 0 }
   0x3   :  { %17 = vsyncpa [#allocation12], 0 }
   0x4   :  { %18 = vsyncpa [#allocation4], 0  ;;  %s35_s29 = sshll.u32 %s11555_s1, 4  ;;  %s36_s29 = int_to_ptr.hbm [resolvable:$true] %s35_s29 }
   0x5   :  { %19 = vsyncpa [#allocation16], 0  ;;  %s11248_s30 = smov [#allocation5]   ;;  %s59_s12 = sshll.u32 %s11557_s3, 4  ;;  %s60_s12 = int_to_ptr.hbm [resolvable:$true] %s59_s12 }
   0x6   :  { %s37_s9 = sshll.u32 %s11248_s30, 4  ;;  %s11249_s13 = smov 256   ;;  %s38_s9 = int_to_ptr.vmem [resolvable:$true] %s37_s9 }
   0x7   :  { %s11250_s14 = smov 16   ;;  %s11251_s15 = smov [#allocation8]  }
   0x8   :  { %43 = dma.hbm_to_vmem [thread:$0]  %s36_s29, 98304, %s38_s9, [#allocation6], %s11249_s13, %s11249_s13, %s11250_s14  }
   0x9   :  { %s61_s16 = sshll.u32 %s11251_s15, 4  ;;  %s11252_s17 = smov 128   ;;  %s62_s16 = int_to_ptr.vmem [resolvable:$true] %s61_s16 }
   0xa   :  { %s11253_s18 = smov 8   ;;  %s83_s20 = sshll.u32 %s11559_s5, 4  ;;  %s84_s20 = int_to_ptr.hbm [resolvable:$true] %s83_s20 }
   0xb   :  { %67 = dma.hbm_to_vmem [thread:$0]  %s60_s12, 8192, %s62_s16, [#allocation9], %s11252_s17, %s11252_s17, %s11253_s18  }
   0xc   :  { %s11254_s21 = smov [#allocation11]   ;;  %s25_s24 = sshll.u32 %s11554_s0, 4  ;;  %s26_s24 = int_to_ptr.hbm [resolvable:$true] %s25_s24 }
   0xd   :  { %s85_s22 = sshll.u32 %s11254_s21, 4  ;;  %s11255_s25 = smov 64   ;;  %s86_s22 = int_to_ptr.vmem [resolvable:$true] %s85_s22 }
   0xe   :  { %s11256_s26 = smov 4   ;;  %s11257_s27 = smov [#allocation2]  }
   0xf   :  { %91 = dma.hbm_to_vmem [thread:$0]  %s84_s20, 2048, %s86_s22, [#allocation12], %s11255_s25, %s11255_s25, %s11256_s26  }
  0x10   :  { %s27_s28 = sshll.u32 %s11257_s27, 4  ;;  %s49_s9 = sshll.u32 %s11556_s2, 4  ;;  %s28_s28 = int_to_ptr.vmem [resolvable:$true] %s27_s28  ;;  %s50_s9 = int_to_ptr.hbm [resolvable:$true] %s49_s9 }
  0x11   :  { %30 = dma.hbm_to_vmem [thread:$0]  %s26_s24, 3072, %s28_s28, [#allocation3]  }
  0x12   :  { %s73_s11 = sshll.u32 %s11558_s4, 4  ;;  %s11258_s12 = smov [#allocation7]   ;;  %s74_s11 = int_to_ptr.hbm [resolvable:$true] %s73_s11 }
  0x13   :  { %s51_s13 = sshll.u32 %s11258_s12, 4  ;;  %s11259_s0 = smov [#allocation10]   ;;  %s52_s13 = int_to_ptr.vmem [resolvable:$true] %s51_s13 }
  0x14   :  { %54 = dma.hbm_to_vmem [thread:$0]  %s50_s9, 64, %s52_s13, [#allocation6]  }
  0x15   :  { %s75_s14 = sshll.u32 %s11259_s0, 4  ;;  %s97_s17 = sshll.u32 %s11560_s6, 4  ;;  %s76_s14 = int_to_ptr.vmem [resolvable:$true] %s75_s14  ;;  %s98_s17 = int_to_ptr.hbm [resolvable:$true] %s97_s17 }
  0x16   :  { %78 = dma.hbm_to_vmem [thread:$0]  %s74_s11, 32, %s76_s14, [#allocation9]  }
  0x17   :  { %s11260_s2 = smov [#allocation13]  }
  0x18   :  { %s99_s18 = sshll.u32 %s11260_s2, 4  ;;  %s100_s18 = int_to_ptr.vmem [resolvable:$true] %s99_s18 }
  0x19   :  { %102 = dma.hbm_to_vmem [thread:$0]  %s98_s17, 16, %s100_s18, [#allocation12]  }
  0x1a   :  { %11236 = dma.done.wait [#allocation3], 3072  }
  0x1b   :  { %11237 = vsyncadd [#allocation3], 4294964224 }
  0x1c   :  { %11238 = dma.done.wait [#allocation6], 98368  }
  0x1d   :  { %11239 = vsyncadd [#allocation6], 4294868928 }
  0x1e   :  { %11240 = dma.done.wait [#allocation9], 8224  }
  0x1f   :  { %11241 = vsyncadd [#allocation9], 4294959072 }
  0x20   :  { %11242 = dma.done.wait [#allocation12], 2064  }
  0x21   :  { %11243 = vsyncadd [#allocation12], 4294965232  ;;  %v6871_v0 = vld [vmem:[#allocation5 + $0xe0] sm:$0xf]  ;;  %v10179_v1 = vld [vmem:[#allocation5 + $0xec] sm:$0xf0] }
  0x22   :  { %v6999_v2 = vld [vmem:[#allocation5 + $0x1e0] sm:$0xf]  ;;  %v6872_v3 = vor.u32 %v10179_v1, %v6871_v0  ;;  %v10211_v4 = vld [vmem:[#allocation5 + $0x1ec] sm:$0xf0]  ;;  %s11261_s4 = smov [#allocation14]   ;;  %s6728_s20 = sshll.u32 %s11561_s7, 4  ;;  %s6729_s20 = int_to_ptr.hbm [resolvable:$true] %s6728_s20 }
  0x23   :  { %v7127_v5 = vld [vmem:[#allocation5 + $0x2e0] sm:$0xf]  ;;  %v10243_v6 = vld [vmem:[#allocation5 + $0x2ec] sm:$0xf0]  ;;  %v7000_v7 = vor.u32 %v10211_v4, %v6999_v2  ;;  %s6726_s6 = sshll.u32 %s11261_s4, 4  ;;  %s11262_s21 = smov [#allocation15]   ;;  %s6727_s6 = int_to_ptr.vmem [resolvable:$true] %s6726_s6 }
  0x24   :  { %v7128_v8 = vor.u32 %v10243_v6, %v7127_v5  ;;  %v7255_v9 = vld [vmem:[#allocation5 + $0x3e0] sm:$0xf]  ;;  %v10275_v10 = vld [vmem:[#allocation5 + $0x3ec] sm:$0xf0]  ;;  %4797 = vmatpush.bf16.msra.mxu0 %v6872_v3  ;;  %s6737_s22 = sshll.u32 %s11262_s21, 4  ;;  %s6739_s24 = sshll.u32 %s11562_s8, 4  ;;  %s6738_s22 = int_to_ptr.vmem [resolvable:$true] %s6737_s22  ;;  %s6740_s24 = int_to_ptr.hbm [resolvable:$true] %s6739_s24 }
  0x25   :  { %v6855_v11 = vld [vmem:[#allocation5 + $0xc0] sm:$0xf]  ;;  %v7256_v12 = vor.u32 %v10275_v10, %v7255_v9  ;;  %v10175_v13 = vld [vmem:[#allocation5 + $0xcc] sm:$0xf0]  ;;  %4810 = vmatpush.bf16.msra.mxu1 %v7000_v7 }
  0x26   :  { %v6983_v14 = vld [vmem:[#allocation5 + $0x1c0] sm:$0xf]  ;;  %v10207_v15 = vld [vmem:[#allocation5 + $0x1cc] sm:$0xf0]  ;;  %4823 = vmatpush.bf16.msra.mxu2 %v7128_v8  ;;  %v6856_v16 = vor.u32 %v10175_v13, %v6855_v11 }
  0x27   :  { %v6984_v17 = vor.u32 %v10207_v15, %v6983_v14  ;;  %v7111_v18 = vld [vmem:[#allocation5 + $0x2c0] sm:$0xf]  ;;  %v10239_v19 = vld [vmem:[#allocation5 + $0x2cc] sm:$0xf0]  ;;  %4836 = vmatpush.bf16.msra.mxu3 %v7256_v12 }
  0x28   :  { %v7239_v20 = vld [vmem:[#allocation5 + $0x3c0] sm:$0xf]  ;;  %v7112_v21 = vor.u32 %v10239_v19, %v7111_v18  ;;  %v10271_v22 = vld [vmem:[#allocation5 + $0x3cc] sm:$0xf0]  ;;  %4798 = vmatpush.bf16.msra.mxu0 %v6856_v16 }
  0x29   :  { %v6839_v23 = vld [vmem:[#allocation5 + $0xa0] sm:$0xf]  ;;  %v10171_v24 = vld [vmem:[#allocation5 + $0xac] sm:$0xf0]  ;;  %v7240_v25 = vor.u32 %v10271_v22, %v7239_v20  ;;  %4811 = vmatpush.bf16.msra.mxu1 %v6984_v17 }
  0x2a   :  { %v6967_v26 = vld [vmem:[#allocation5 + $0x1a0] sm:$0xf]  ;;  %v10203_v27 = vld [vmem:[#allocation5 + $0x1ac] sm:$0xf0]  ;;  %v6840_v29 = vor.u32 %v10171_v24, %v6839_v23  ;;  %4824 = vmatpush.bf16.msra.mxu2 %v7112_v21 }
  0x2b   :  { %v7095_v28 = vld [vmem:[#allocation5 + $0x2a0] sm:$0xf]  ;;  %v10235_v30 = vld [vmem:[#allocation5 + $0x2ac] sm:$0xf0]  ;;  %v6968_v33 = vor.u32 %v10203_v27, %v6967_v26  ;;  %4837 = vmatpush.bf16.msra.mxu3 %v7240_v25 }
  0x2c   :  { %v7223_v31 = vld [vmem:[#allocation5 + $0x3a0] sm:$0xf]  ;;  %v10267_v32 = vld [vmem:[#allocation5 + $0x3ac] sm:$0xf0]  ;;  %v7096_v34 = vor.u32 %v10235_v30, %v7095_v28  ;;  %4799 = vmatpush.bf16.msra.mxu0 %v6840_v29 }
  0x2d   :  { %v6823_v35 = vld [vmem:[#allocation5 + $0x80] sm:$0xf]  ;;  %v10167_v36 = vld [vmem:[#allocation5 + $0x8c] sm:$0xf0]  ;;  %v7224_v38 = vor.u32 %v10267_v32, %v7223_v31  ;;  %4812 = vmatpush.bf16.msra.mxu1 %v6968_v33 }
  0x2e   :  { %v6951_v37 = vld [vmem:[#allocation5 + $0x180] sm:$0xf]  ;;  %v10199_v39 = vld [vmem:[#allocation5 + $0x18c] sm:$0xf0]  ;;  %v6824_v44 = vor.u32 %v10167_v36, %v6823_v35  ;;  %4825 = vmatpush.bf16.msra.mxu2 %v7096_v34 }
  0x2f   :  { %v7079_v40 = vld [vmem:[#allocation5 + $0x280] sm:$0xf]  ;;  %v10231_v41 = vld [vmem:[#allocation5 + $0x28c] sm:$0xf0]  ;;  %v6952_v45 = vor.u32 %v10199_v39, %v6951_v37  ;;  %4838 = vmatpush.bf16.msra.mxu3 %v7224_v38 }
  0x30   :  { %v7207_v42 = vld [vmem:[#allocation5 + $0x380] sm:$0xf]  ;;  %v10263_v43 = vld [vmem:[#allocation5 + $0x38c] sm:$0xf0]  ;;  %v7080_v46 = vor.u32 %v10231_v41, %v7079_v40  ;;  %4800 = vmatpush.bf16.msra.mxu0 %v6824_v44 }
  0x31   :  { %v6807_v47 = vld [vmem:[#allocation5 + $0x60] sm:$0xf]  ;;  %v10163_v48 = vld [vmem:[#allocation5 + $0x6c] sm:$0xf0]  ;;  %v7208_v50 = vor.u32 %v10263_v43, %v7207_v42  ;;  %4813 = vmatpush.bf16.msra.mxu1 %v6952_v45 }
  0x32   :  { %v6935_v49 = vld [vmem:[#allocation5 + $0x160] sm:$0xf]  ;;  %v10195_v51 = vld [vmem:[#allocation5 + $0x16c] sm:$0xf0]  ;;  %v6808_v56 = vor.u32 %v10163_v48, %v6807_v47  ;;  %4826 = vmatpush.bf16.msra.mxu2 %v7080_v46 }
  0x33   :  { %v7063_v52 = vld [vmem:[#allocation5 + $0x260] sm:$0xf]  ;;  %v10227_v53 = vld [vmem:[#allocation5 + $0x26c] sm:$0xf0]  ;;  %v6936_v57 = vor.u32 %v10195_v51, %v6935_v49  ;;  %4839 = vmatpush.bf16.msra.mxu3 %v7208_v50 }
  0x34   :  { %v7191_v54 = vld [vmem:[#allocation5 + $0x360] sm:$0xf]  ;;  %v10259_v55 = vld [vmem:[#allocation5 + $0x36c] sm:$0xf0]  ;;  %v7064_v58 = vor.u32 %v10227_v53, %v7063_v52  ;;  %4801 = vmatpush.bf16.msra.mxu0 %v6808_v56 }
  0x35   :  { %v6791_v59 = vld [vmem:[#allocation5 + $0x40] sm:$0xf]  ;;  %v10159_v60 = vld [vmem:[#allocation5 + $0x4c] sm:$0xf0]  ;;  %v7192_v62 = vor.u32 %v10259_v55, %v7191_v54  ;;  %4814 = vmatpush.bf16.msra.mxu1 %v6936_v57 }
  0x36   :  { %v6919_v61 = vld [vmem:[#allocation5 + $0x140] sm:$0xf]  ;;  %v10191_v63 = vld [vmem:[#allocation5 + $0x14c] sm:$0xf0]  ;;  %v6792_v4 = vor.u32 %v10159_v60, %v6791_v59  ;;  %4827 = vmatpush.bf16.msra.mxu2 %v7064_v58 }
  0x37   :  { %v7047_v0 = vld [vmem:[#allocation5 + $0x240] sm:$0xf]  ;;  %v10223_v1 = vld [vmem:[#allocation5 + $0x24c] sm:$0xf0]  ;;  %v6920_v5 = vor.u32 %v10191_v63, %v6919_v61  ;;  %4840 = vmatpush.bf16.msra.mxu3 %v7192_v62 }
  0x38   :  { %v7175_v2 = vld [vmem:[#allocation5 + $0x340] sm:$0xf]  ;;  %v10255_v3 = vld [vmem:[#allocation5 + $0x34c] sm:$0xf0]  ;;  %v7048_v6 = vor.u32 %v10223_v1, %v7047_v0  ;;  %4802 = vmatpush.bf16.msra.mxu0 %v6792_v4 }
  0x39   :  { %v6775_v7 = vld [vmem:[#allocation5 + $0x20] sm:$0xf]  ;;  %v10155_v8 = vld [vmem:[#allocation5 + $0x2c] sm:$0xf0]  ;;  %v7176_v10 = vor.u32 %v10255_v3, %v7175_v2  ;;  %4815 = vmatpush.bf16.msra.mxu1 %v6920_v5 }
  0x3a   :  { %v6903_v9 = vld [vmem:[#allocation5 + $0x120] sm:$0xf]  ;;  %v10187_v11 = vld [vmem:[#allocation5 + $0x12c] sm:$0xf0]  ;;  %v6776_v16 = vor.u32 %v10155_v8, %v6775_v7  ;;  %4828 = vmatpush.bf16.msra.mxu2 %v7048_v6 }
  0x3b   :  { %v7031_v12 = vld [vmem:[#allocation5 + $0x220] sm:$0xf]  ;;  %v10219_v13 = vld [vmem:[#allocation5 + $0x22c] sm:$0xf0]  ;;  %v6904_v19 = vor.u32 %v10187_v11, %v6903_v9  ;;  %4841 = vmatpush.bf16.msra.mxu3 %v7176_v10  ;;  %v134_v10 = vld [vmem:[#allocation2 + $0x18] sm:$0xff] }
  0x3c   :  { %v7159_v14 = vld [vmem:[#allocation5 + $0x320] sm:$0xf]  ;;  %v10251_v15 = vld [vmem:[#allocation5 + $0x32c] sm:$0xf0]  ;;  %v7032_v20 = vor.u32 %v10219_v13, %v7031_v12  ;;  %4803 = vmatpush.bf16.msra.mxu0 %v6776_v16 }
  0x3d   :  { %v6759_v17 = vld [vmem:[#allocation5] sm:$0xf]  ;;  %v10151_v18 = vld [vmem:[#allocation5 + $0xc] sm:$0xf0]  ;;  %v7160_v24 = vor.u32 %v10251_v15, %v7159_v14  ;;  %4816 = vmatpush.bf16.msra.mxu1 %v6904_v19  ;;  %v11333_v15 = vpack.c.bf16 %v134_v10, %v134_v10  ;;  %v132_v19 = vld [vmem:[#allocation2 + $0x8] sm:$0xff] }
  0x3e   :  { %v6887_v21 = vld [vmem:[#allocation5 + $0x100] sm:$0xf]  ;;  %v10183_v22 = vld [vmem:[#allocation5 + $0x10c] sm:$0xf0]  ;;  %v6760_v31 = vor.u32 %v10151_v18, %v6759_v17  ;;  %4829 = vmatpush.bf16.msra.mxu2 %v7032_v20 }
  0x3f   :  { %v7015_v23 = vld [vmem:[#allocation5 + $0x200] sm:$0xf]  ;;  %v10215_v25 = vld [vmem:[#allocation5 + $0x20c] sm:$0xf0]  ;;  %v6888_v35 = vor.u32 %v10183_v22, %v6887_v21  ;;  %4842 = vmatpush.bf16.msra.mxu3 %v7160_v24 }
  0x40   :  { %v7143_v26 = vld [vmem:[#allocation5 + $0x300] sm:$0xf]  ;;  %v10247_v27 = vld [vmem:[#allocation5 + $0x30c] sm:$0xf0]  ;;  %v7016_v36 = vor.u32 %v10215_v25, %v7015_v23  ;;  %4804 = vmatpush.bf16.msra.mxu0 %v6760_v31  ;;  %v11338_v25 = vpack.c.bf16 %v132_v19, %v132_v19 }
  0x41   :  { %v7383_v28 = vld [vmem:[#allocation5 + $0x4e0] sm:$0xf]  ;;  %v10307_v29 = vld [vmem:[#allocation5 + $0x4ec] sm:$0xf0]  ;;  %v7144_v39 = vor.u32 %v10247_v27, %v7143_v26  ;;  %4817 = vmatpush.bf16.msra.mxu1 %v6888_v35 }
  0x42   :  { %v7511_v30 = vld [vmem:[#allocation5 + $0x5e0] sm:$0xf]  ;;  %v10339_v32 = vld [vmem:[#allocation5 + $0x5ec] sm:$0xf0]  ;;  %v7384_v40 = vor.u32 %v10307_v29, %v7383_v28  ;;  %4830 = vmatpush.bf16.msra.mxu2 %v7016_v36 }
  0x43   :  { %v7639_v33 = vld [vmem:[#allocation5 + $0x6e0] sm:$0xf]  ;;  %v10371_v34 = vld [vmem:[#allocation5 + $0x6ec] sm:$0xf0]  ;;  %v7512_v41 = vor.u32 %v10339_v32, %v7511_v30  ;;  %4843 = vmatpush.bf16.msra.mxu3 %v7144_v39 }
  0x44   :  { %v7767_v37 = vld [vmem:[#allocation5 + $0x7e0] sm:$0xf]  ;;  %v10403_v38 = vld [vmem:[#allocation5 + $0x7ec] sm:$0xf0]  ;;  %v7640_v42 = vor.u32 %v10371_v34, %v7639_v33  ;;  %4849 = vmatpush.bf16.msrb.mxu0 %v7384_v40  ;;  %4818 = vmatmul.bf16.vlgmr.msra.gmra.mxu1 %v11338_v25 }
  0x45   :  { %v7367_v43 = vld [vmem:[#allocation5 + $0x4c0] sm:$0xf]  ;;  %v10303_v44 = vld [vmem:[#allocation5 + $0x4cc] sm:$0xf0]  ;;  %v7768_v46 = vor.u32 %v10403_v38, %v7767_v37  ;;  %4862 = vmatpush.bf16.msrb.mxu1 %v7512_v41 }
  0x46   :  { %v7495_v45 = vld [vmem:[#allocation5 + $0x5c0] sm:$0xf]  ;;  %v10335_v47 = vld [vmem:[#allocation5 + $0x5cc] sm:$0xf0]  ;;  %v7368_v52 = vor.u32 %v10303_v44, %v7367_v43  ;;  %4875 = vmatpush.bf16.msrb.mxu2 %v7640_v42  ;;  %4844 = vmatmul.bf16.vlgmr.msra.gmra.mxu3 %v11333_v15 }
  0x47   :  { %v7623_v48 = vld [vmem:[#allocation5 + $0x6c0] sm:$0xf]  ;;  %v10367_v49 = vld [vmem:[#allocation5 + $0x6cc] sm:$0xf0]  ;;  %v7496_v54 = vor.u32 %v10335_v47, %v7495_v45  ;;  %4888 = vmatpush.bf16.msrb.mxu3 %v7768_v46 }
  0x48   :  { %v7751_v50 = vld [vmem:[#allocation5 + $0x7c0] sm:$0xf]  ;;  %v10399_v51 = vld [vmem:[#allocation5 + $0x7cc] sm:$0xf0]  ;;  %v7624_v55 = vor.u32 %v10367_v49, %v7623_v48  ;;  %4850 = vmatpush.bf16.msrb.mxu0 %v7368_v52 }
  0x49   :  { %v7351_v53 = vld [vmem:[#allocation5 + $0x4a0] sm:$0xf]  ;;  %v10299_v56 = vld [vmem:[#allocation5 + $0x4ac] sm:$0xf0]  ;;  %v7752_v59 = vor.u32 %v10399_v51, %v7751_v50  ;;  %4863 = vmatpush.bf16.msrb.mxu1 %v7496_v54 }
  0x4a   :  { %v7479_v57 = vld [vmem:[#allocation5 + $0x5a0] sm:$0xf]  ;;  %v10331_v58 = vld [vmem:[#allocation5 + $0x5ac] sm:$0xf0]  ;;  %v7352_v0 = vor.u32 %v10299_v56, %v7351_v53  ;;  %4876 = vmatpush.bf16.msrb.mxu2 %v7624_v55 }
  0x4b   :  { %v7607_v60 = vld [vmem:[#allocation5 + $0x6a0] sm:$0xf]  ;;  %v10363_v61 = vld [vmem:[#allocation5 + $0x6ac] sm:$0xf0]  ;;  %v7480_v1 = vor.u32 %v10331_v58, %v7479_v57  ;;  %4889 = vmatpush.bf16.msrb.mxu3 %v7752_v59 }
  0x4c   :  { %v7735_v62 = vld [vmem:[#allocation5 + $0x7a0] sm:$0xf]  ;;  %v10395_v63 = vld [vmem:[#allocation5 + $0x7ac] sm:$0xf0]  ;;  %v7608_v5 = vor.u32 %v10363_v61, %v7607_v60  ;;  %4851 = vmatpush.bf16.msrb.mxu0 %v7352_v0 }
  0x4d   :  { %v7335_v2 = vld [vmem:[#allocation5 + $0x480] sm:$0xf]  ;;  %v133_v3 = vld [vmem:[#allocation2 + $0x10] sm:$0xff]  ;;  %v7736_v11 = vor.u32 %v10395_v63, %v7735_v62  ;;  %4864 = vmatpush.bf16.msrb.mxu1 %v7480_v1 }
  0x4e   :  { %v131_v4 = vld [vmem:[#allocation2] sm:$0xff]  ;;  %v10295_v6 = vld [vmem:[#allocation5 + $0x48c] sm:$0xf0]  ;;  %v11329_v8 = vpack.c.bf16 %v133_v3, %v133_v3  ;;  %4877 = vmatpush.bf16.msrb.mxu2 %v7608_v5 }
  0x4f   :  { %v7463_v7 = vld [vmem:[#allocation5 + $0x580] sm:$0xf]  ;;  %v11331_v9 = vpack.c.bf16 %v131_v4, %v131_v4  ;;  %v10327_v12 = vld [vmem:[#allocation5 + $0x58c] sm:$0xf0]  ;;  %v7336_v18 = vor.u32 %v10295_v6, %v7335_v2  ;;  %4890 = vmatpush.bf16.msrb.mxu3 %v7736_v11 }
  0x50   :  { %v7591_v13 = vld [vmem:[#allocation5 + $0x680] sm:$0xf]  ;;  %v10359_v14 = vld [vmem:[#allocation5 + $0x68c] sm:$0xf0]  ;;  %4831 = vmatmul.bf16.vlgmr.msra.gmra.mxu2 %v11329_v8  ;;  %v7464_v20 = vor.u32 %v10327_v12, %v7463_v7 }
  0x51   :  { %v7719_v16 = vld [vmem:[#allocation5 + $0x780] sm:$0xf]  ;;  %v10391_v17 = vld [vmem:[#allocation5 + $0x78c] sm:$0xf0]  ;;  %4805 = vmatmul.bf16.vlgmr.msra.gmra.mxu0 %v11331_v9  ;;  %v7592_v21 = vor.u32 %v10359_v14, %v7591_v13 }
  0x52   :  { %v7319_v22 = vld [vmem:[#allocation5 + $0x460] sm:$0xf]  ;;  %v10291_v23 = vld [vmem:[#allocation5 + $0x46c] sm:$0xf0]  ;;  %v7720_v26 = vor.u32 %v10391_v17, %v7719_v16  ;;  %4852 = vmatpush.bf16.msrb.mxu0 %v7336_v18  ;;  %4865 = vmatpush.bf16.msrb.mxu1 %v7464_v20 }
  0x53   :  { %v7447_v24 = vld [vmem:[#allocation5 + $0x560] sm:$0xf]  ;;  %v10323_v27 = vld [vmem:[#allocation5 + $0x56c] sm:$0xf0]  ;;  %v7320_v32 = vor.u32 %v10291_v23, %v7319_v22  ;;  %4878 = vmatpush.bf16.msrb.mxu2 %v7592_v21  ;;  %v138_v23 = vld [vmem:[#allocation2 + $0x38] sm:$0xff] }
  0x54   :  { %v7575_v28 = vld [vmem:[#allocation5 + $0x660] sm:$0xf]  ;;  %v10355_v29 = vld [vmem:[#allocation5 + $0x66c] sm:$0xf0]  ;;  %v7448_v33 = vor.u32 %v10323_v27, %v7447_v24  ;;  %4891 = vmatpush.bf16.msrb.mxu3 %v7720_v26 }
  0x55   :  { %v7703_v30 = vld [vmem:[#allocation5 + $0x760] sm:$0xf]  ;;  %v10387_v31 = vld [vmem:[#allocation5 + $0x76c] sm:$0xf0]  ;;  %v7576_v34 = vor.u32 %v10355_v29, %v7575_v28  ;;  %v136_v29 = vld [vmem:[#allocation2 + $0x28] sm:$0xff] }
  0x56   :  { %v7303_v35 = vld [vmem:[#allocation5 + $0x440] sm:$0xf]  ;;  %v10287_v36 = vld [vmem:[#allocation5 + $0x44c] sm:$0xf0]  ;;  %v7704_v38 = vor.u32 %v10387_v31, %v7703_v30  ;;  %4853 = vmatpush.bf16.msrb.mxu0 %v7320_v32  ;;  %4866 = vmatpush.bf16.msrb.mxu1 %v7448_v33 }
  0x57   :  { %v7431_v37 = vld [vmem:[#allocation5 + $0x540] sm:$0xf]  ;;  %v10319_v39 = vld [vmem:[#allocation5 + $0x54c] sm:$0xf0]  ;;  %v7304_v44 = vor.u32 %v10287_v36, %v7303_v35  ;;  %4879 = vmatpush.bf16.msrb.mxu2 %v7576_v34 }
  0x58   :  { %v7559_v40 = vld [vmem:[#allocation5 + $0x640] sm:$0xf]  ;;  %v10351_v41 = vld [vmem:[#allocation5 + $0x64c] sm:$0xf0]  ;;  %v7432_v45 = vor.u32 %v10319_v39, %v7431_v37  ;;  %4892 = vmatpush.bf16.msrb.mxu3 %v7704_v38  ;;  %v11345_v38 = vpack.c.bf16 %v138_v23, %v138_v23 }
  0x59   :  { %v7687_v42 = vld [vmem:[#allocation5 + $0x740] sm:$0xf]  ;;  %v10383_v43 = vld [vmem:[#allocation5 + $0x74c] sm:$0xf0]  ;;  %v7560_v46 = vor.u32 %v10351_v41, %v7559_v40  ;;  %v11347_v40 = vpack.c.bf16 %v136_v29, %v136_v29 }
  0x5a   :  { %v7287_v47 = vld [vmem:[#allocation5 + $0x420] sm:$0xf]  ;;  %v10283_v48 = vld [vmem:[#allocation5 + $0x42c] sm:$0xf0]  ;;  %v7688_v50 = vor.u32 %v10383_v43, %v7687_v42  ;;  %4854 = vmatpush.bf16.msrb.mxu0 %v7304_v44  ;;  %4867 = vmatpush.bf16.msrb.mxu1 %v7432_v45 }
  0x5b   :  { %v7415_v49 = vld [vmem:[#allocation5 + $0x520] sm:$0xf]  ;;  %v10315_v51 = vld [vmem:[#allocation5 + $0x52c] sm:$0xf0]  ;;  %v7288_v56 = vor.u32 %v10283_v48, %v7287_v47  ;;  %4880 = vmatpush.bf16.msrb.mxu2 %v7560_v46 }
  0x5c   :  { %v7543_v52 = vld [vmem:[#allocation5 + $0x620] sm:$0xf]  ;;  %v10347_v53 = vld [vmem:[#allocation5 + $0x62c] sm:$0xf0]  ;;  %v7416_v59 = vor.u32 %v10315_v51, %v7415_v49  ;;  %4893 = vmatpush.bf16.msrb.mxu3 %v7688_v50 }
  0x5d   :  { %v7671_v54 = vld [vmem:[#allocation5 + $0x720] sm:$0xf]  ;;  %v10379_v55 = vld [vmem:[#allocation5 + $0x72c] sm:$0xf0]  ;;  %v7544_v60 = vor.u32 %v10347_v53, %v7543_v52 }
  0x5e   :  { %v7271_v57 = vld [vmem:[#allocation5 + $0x400] sm:$0xf]  ;;  %v10279_v58 = vld [vmem:[#allocation5 + $0x40c] sm:$0xf0]  ;;  %v7672_v0 = vor.u32 %v10379_v55, %v7671_v54  ;;  %4855 = vmatpush.bf16.msrb.mxu0 %v7288_v56  ;;  %4868 = vmatpush.bf16.msrb.mxu1 %v7416_v59 }
  0x5f   :  { %v7399_v61 = vld [vmem:[#allocation5 + $0x500] sm:$0xf]  ;;  %v10311_v62 = vld [vmem:[#allocation5 + $0x50c] sm:$0xf0]  ;;  %v7272_v7 = vor.u32 %v10279_v58, %v7271_v57  ;;  %4881 = vmatpush.bf16.msrb.mxu2 %v7544_v60 }
  0x60   :  { %v7527_v63 = vld [vmem:[#allocation5 + $0x600] sm:$0xf]  ;;  %v10343_v1 = vld [vmem:[#allocation5 + $0x60c] sm:$0xf0]  ;;  %v7400_v13 = vor.u32 %v10311_v62, %v7399_v61  ;;  %4894 = vmatpush.bf16.msrb.mxu3 %v7672_v0 }
  0x61   :  { %v7655_v2 = vld [vmem:[#allocation5 + $0x700] sm:$0xf]  ;;  %v10375_v3 = vld [vmem:[#allocation5 + $0x70c] sm:$0xf0]  ;;  %v7528_v14 = vor.u32 %v10343_v1, %v7527_v63 }
  0x62   :  { %v7895_v4 = vld [vmem:[#allocation5 + $0x8e0] sm:$0xf]  ;;  %v10435_v5 = vld [vmem:[#allocation5 + $0x8ec] sm:$0xf0]  ;;  %v7656_v19 = vor.u32 %v10375_v3, %v7655_v2  ;;  %4856 = vmatpush.bf16.msrb.mxu0 %v7272_v7  ;;  %4869 = vmatpush.bf16.msrb.mxu1 %v7400_v13 }
  0x63   :  { %v8023_v6 = vld [vmem:[#allocation5 + $0x9e0] sm:$0xf]  ;;  %v10467_v10 = vld [vmem:[#allocation5 + $0x9ec] sm:$0xf0]  ;;  %v7896_v20 = vor.u32 %v10435_v5, %v7895_v4  ;;  %4882 = vmatpush.bf16.msrb.mxu2 %v7528_v14 }
  0x64   :  { %v8151_v11 = vld [vmem:[#allocation5 + $0xae0] sm:$0xf]  ;;  %v10499_v12 = vld [vmem:[#allocation5 + $0xaec] sm:$0xf0]  ;;  %v8024_v24 = vor.u32 %v10467_v10, %v8023_v6  ;;  %4895 = vmatpush.bf16.msrb.mxu3 %v7656_v19 }
  0x65   :  { %v8279_v16 = vld [vmem:[#allocation5 + $0xbe0] sm:$0xf]  ;;  %v10531_v17 = vld [vmem:[#allocation5 + $0xbec] sm:$0xf0]  ;;  %v8152_v26 = vor.u32 %v10499_v12, %v8151_v11  ;;  %4870 = vmatmul.bf16.vlgmr.msrb.gmra.mxu1 %v11347_v40 }
  0x66   :  { %v137_v18 = vld [vmem:[#allocation2 + $0x30] sm:$0xff]  ;;  %v7879_v21 = vld [vmem:[#allocation5 + $0x8c0] sm:$0xf]  ;;  %v8280_v30 = vor.u32 %v10531_v17, %v8279_v16  ;;  %4901 = vmatpush.bf16.msra.mxu0 %v7896_v20  ;;  %4914 = vmatpush.bf16.msra.mxu1 %v8024_v24 }
  0x67   :  { %v135_v22 = vld [vmem:[#allocation2 + $0x20] sm:$0xff]  ;;  %v10431_v27 = vld [vmem:[#allocation5 + $0x8cc] sm:$0xf0]  ;;  %v11341_v34 = vpack.c.bf16 %v137_v18, %v137_v18  ;;  %4927 = vmatpush.bf16.msra.mxu2 %v8152_v26  ;;  %4896 = vmatmul.bf16.vlgmr.msrb.gmra.mxu3 %v11345_v38 }
  0x68   :  { %v8007_v28 = vld [vmem:[#allocation5 + $0x9c0] sm:$0xf]  ;;  %v10463_v31 = vld [vmem:[#allocation5 + $0x9cc] sm:$0xf0]  ;;  %v11343_v37 = vpack.c.bf16 %v135_v22, %v135_v22  ;;  %v7880_v39 = vor.u32 %v10431_v27, %v7879_v21  ;;  %4940 = vmatpush.bf16.msra.mxu3 %v8280_v30 }
  0x69   :  { %v8135_v32 = vld [vmem:[#allocation5 + $0xac0] sm:$0xf]  ;;  %v10495_v33 = vld [vmem:[#allocation5 + $0xacc] sm:$0xf0]  ;;  %v8008_v41 = vor.u32 %v10463_v31, %v8007_v28  ;;  %4883 = vmatmul.bf16.vlgmr.msrb.gmra.mxu2 %v11341_v34 }
  0x6a   :  { %v8263_v35 = vld [vmem:[#allocation5 + $0xbc0] sm:$0xf]  ;;  %v10527_v36 = vld [vmem:[#allocation5 + $0xbcc] sm:$0xf0]  ;;  %v8136_v42 = vor.u32 %v10495_v33, %v8135_v32  ;;  %4857 = vmatmul.bf16.vlgmr.msrb.gmra.mxu0 %v11343_v37 }
  0x6b   :  { %v7863_v43 = vld [vmem:[#allocation5 + $0x8a0] sm:$0xf]  ;;  %v10427_v44 = vld [vmem:[#allocation5 + $0x8ac] sm:$0xf0]  ;;  %v8264_v46 = vor.u32 %v10527_v36, %v8263_v35  ;;  %4902 = vmatpush.bf16.msra.mxu0 %v7880_v39  ;;  %4915 = vmatpush.bf16.msra.mxu1 %v8008_v41 }
  0x6c   :  { %v7991_v45 = vld [vmem:[#allocation5 + $0x9a0] sm:$0xf]  ;;  %v10459_v47 = vld [vmem:[#allocation5 + $0x9ac] sm:$0xf0]  ;;  %v7864_v52 = vor.u32 %v10427_v44, %v7863_v43  ;;  %4928 = vmatpush.bf16.msra.mxu2 %v8136_v42 }
  0x6d   :  { %v8119_v48 = vld [vmem:[#allocation5 + $0xaa0] sm:$0xf]  ;;  %v10491_v49 = vld [vmem:[#allocation5 + $0xaac] sm:$0xf0]  ;;  %v7992_v53 = vor.u32 %v10459_v47, %v7991_v45  ;;  %4941 = vmatpush.bf16.msra.mxu3 %v8264_v46 }
  0x6e   :  { %v8247_v50 = vld [vmem:[#allocation5 + $0xba0] sm:$0xf]  ;;  %v10523_v51 = vld [vmem:[#allocation5 + $0xbac] sm:$0xf0]  ;;  %v8120_v54 = vor.u32 %v10491_v49, %v8119_v48 }
  0x6f   :  { %v7847_v55 = vld [vmem:[#allocation5 + $0x880] sm:$0xf]  ;;  %v10423_v56 = vld [vmem:[#allocation5 + $0x88c] sm:$0xf0]  ;;  %v8248_v58 = vor.u32 %v10523_v51, %v8247_v50  ;;  %4903 = vmatpush.bf16.msra.mxu0 %v7864_v52  ;;  %4916 = vmatpush.bf16.msra.mxu1 %v7992_v53 }
  0x70   :  { %v7975_v57 = vld [vmem:[#allocation5 + $0x980] sm:$0xf]  ;;  %v10455_v59 = vld [vmem:[#allocation5 + $0x98c] sm:$0xf0]  ;;  %v7848_v0 = vor.u32 %v10423_v56, %v7847_v55  ;;  %4929 = vmatpush.bf16.msra.mxu2 %v8120_v54 }
  0x71   :  { %v8103_v60 = vld [vmem:[#allocation5 + $0xa80] sm:$0xf]  ;;  %v10487_v61 = vld [vmem:[#allocation5 + $0xa8c] sm:$0xf0]  ;;  %v7976_v1 = vor.u32 %v10455_v59, %v7975_v57  ;;  %4942 = vmatpush.bf16.msra.mxu3 %v8248_v58 }
  0x72   :  { %v8231_v62 = vld [vmem:[#allocation5 + $0xb80] sm:$0xf]  ;;  %v10519_v63 = vld [vmem:[#allocation5 + $0xb8c] sm:$0xf0]  ;;  %v8104_v2 = vor.u32 %v10487_v61, %v8103_v60 }
  0x73   :  { %v7831_v3 = vld [vmem:[#allocation5 + $0x860] sm:$0xf]  ;;  %v10419_v4 = vld [vmem:[#allocation5 + $0x86c] sm:$0xf0]  ;;  %v8232_v6 = vor.u32 %v10519_v63, %v8231_v62  ;;  %4904 = vmatpush.bf16.msra.mxu0 %v7848_v0  ;;  %4917 = vmatpush.bf16.msra.mxu1 %v7976_v1 }
  0x74   :  { %v7959_v5 = vld [vmem:[#allocation5 + $0x960] sm:$0xf]  ;;  %v10451_v7 = vld [vmem:[#allocation5 + $0x96c] sm:$0xf0]  ;;  %v7832_v14 = vor.u32 %v10419_v4, %v7831_v3  ;;  %4930 = vmatpush.bf16.msra.mxu2 %v8104_v2 }
  0x75   :  { %v8087_v10 = vld [vmem:[#allocation5 + $0xa60] sm:$0xf]  ;;  %v10483_v11 = vld [vmem:[#allocation5 + $0xa6c] sm:$0xf0]  ;;  %v7960_v16 = vor.u32 %v10451_v7, %v7959_v5  ;;  %4943 = vmatpush.bf16.msra.mxu3 %v8232_v6  ;;  %v140_v7 = vld [vmem:[#allocation2 + $0x48] sm:$0xff] }
  0x76   :  { %v8215_v12 = vld [vmem:[#allocation5 + $0xb60] sm:$0xf]  ;;  %v10515_v13 = vld [vmem:[#allocation5 + $0xb6c] sm:$0xf0]  ;;  %v8088_v17 = vor.u32 %v10483_v11, %v8087_v10  ;;  %v142_v10 = vld [vmem:[#allocation2 + $0x58] sm:$0xff] }
  0x77   :  { %v7815_v18 = vld [vmem:[#allocation5 + $0x840] sm:$0xf]  ;;  %v10415_v19 = vld [vmem:[#allocation5 + $0x84c] sm:$0xf0]  ;;  %v8216_v21 = vor.u32 %v10515_v13, %v8215_v12  ;;  %4905 = vmatpush.bf16.msra.mxu0 %v7832_v14  ;;  %4918 = vmatpush.bf16.msra.mxu1 %v7960_v16 }
  0x78   :  { %v7943_v20 = vld [vmem:[#allocation5 + $0x940] sm:$0xf]  ;;  %v10447_v22 = vld [vmem:[#allocation5 + $0x94c] sm:$0xf0]  ;;  %v7816_v28 = vor.u32 %v10415_v19, %v7815_v18  ;;  %4931 = vmatpush.bf16.msra.mxu2 %v8088_v17 }
  0x79   :  { %v8071_v23 = vld [vmem:[#allocation5 + $0xa40] sm:$0xf]  ;;  %v10479_v24 = vld [vmem:[#allocation5 + $0xa4c] sm:$0xf0]  ;;  %v7944_v29 = vor.u32 %v10447_v22, %v7943_v20  ;;  %4944 = vmatpush.bf16.msra.mxu3 %v8216_v21 }
  0x7a   :  { %v8199_v26 = vld [vmem:[#allocation5 + $0xb40] sm:$0xf]  ;;  %v10511_v27 = vld [vmem:[#allocation5 + $0xb4c] sm:$0xf0]  ;;  %v8072_v30 = vor.u32 %v10479_v24, %v8071_v23  ;;  %v11357_v23 = vpack.c.bf16 %v140_v7, %v140_v7 }
  0x7b   :  { %v7799_v31 = vld [vmem:[#allocation5 + $0x820] sm:$0xf]  ;;  %v10411_v32 = vld [vmem:[#allocation5 + $0x82c] sm:$0xf0]  ;;  %v8200_v35 = vor.u32 %v10511_v27, %v8199_v26  ;;  %4906 = vmatpush.bf16.msra.mxu0 %v7816_v28  ;;  %4919 = vmatpush.bf16.msra.mxu1 %v7944_v29  ;;  %v11359_v27 = vpack.c.bf16 %v142_v10, %v142_v10 }
  0x7c   :  { %v7927_v33 = vld [vmem:[#allocation5 + $0x920] sm:$0xf]  ;;  %v10443_v36 = vld [vmem:[#allocation5 + $0x92c] sm:$0xf0]  ;;  %v7800_v44 = vor.u32 %v10411_v32, %v7799_v31  ;;  %4932 = vmatpush.bf16.msra.mxu2 %v8072_v30 }
  0x7d   :  { %v8055_v39 = vld [vmem:[#allocation5 + $0xa20] sm:$0xf]  ;;  %v10475_v41 = vld [vmem:[#allocation5 + $0xa2c] sm:$0xf0]  ;;  %v7928_v48 = vor.u32 %v10443_v36, %v7927_v33  ;;  %4945 = vmatpush.bf16.msra.mxu3 %v8200_v35 }
  0x7e   :  { %v8183_v42 = vld [vmem:[#allocation5 + $0xb20] sm:$0xf]  ;;  %v10507_v43 = vld [vmem:[#allocation5 + $0xb2c] sm:$0xf0]  ;;  %v8056_v49 = vor.u32 %v10475_v41, %v8055_v39 }
  0x7f   :  { %v7783_v45 = vld [vmem:[#allocation5 + $0x800] sm:$0xf]  ;;  %v10407_v46 = vld [vmem:[#allocation5 + $0x80c] sm:$0xf0]  ;;  %v8184_v53 = vor.u32 %v10507_v43, %v8183_v42  ;;  %4907 = vmatpush.bf16.msra.mxu0 %v7800_v44  ;;  %4920 = vmatpush.bf16.msra.mxu1 %v7928_v48 }
  0x80   :  { %v7911_v47 = vld [vmem:[#allocation5 + $0x900] sm:$0xf]  ;;  %v10439_v50 = vld [vmem:[#allocation5 + $0x90c] sm:$0xf0]  ;;  %v7784_v59 = vor.u32 %v10407_v46, %v7783_v45  ;;  %4933 = vmatpush.bf16.msra.mxu2 %v8056_v49 }
  0x81   :  { %v8039_v51 = vld [vmem:[#allocation5 + $0xa00] sm:$0xf]  ;;  %v10471_v52 = vld [vmem:[#allocation5 + $0xa0c] sm:$0xf0]  ;;  %v7912_v63 = vor.u32 %v10439_v50, %v7911_v47  ;;  %4946 = vmatpush.bf16.msra.mxu3 %v8184_v53 }
  0x82   :  { %v8167_v54 = vld [vmem:[#allocation5 + $0xb00] sm:$0xf]  ;;  %v10503_v55 = vld [vmem:[#allocation5 + $0xb0c] sm:$0xf0]  ;;  %v8040_v0 = vor.u32 %v10471_v52, %v8039_v51 }
  0x83   :  { %v8407_v56 = vld [vmem:[#allocation5 + $0xce0] sm:$0xf]  ;;  %v10563_v57 = vld [vmem:[#allocation5 + $0xcec] sm:$0xf0]  ;;  %v8168_v4 = vor.u32 %v10503_v55, %v8167_v54  ;;  %4908 = vmatpush.bf16.msra.mxu0 %v7784_v59  ;;  %4921 = vmatpush.bf16.msra.mxu1 %v7912_v63 }
  0x84   :  { %v8535_v58 = vld [vmem:[#allocation5 + $0xde0] sm:$0xf]  ;;  %v10595_v60 = vld [vmem:[#allocation5 + $0xdec] sm:$0xf0]  ;;  %v8408_v5 = vor.u32 %v10563_v57, %v8407_v56  ;;  %4934 = vmatpush.bf16.msra.mxu2 %v8040_v0 }
  0x85   :  { %v8663_v61 = vld [vmem:[#allocation5 + $0xee0] sm:$0xf]  ;;  %v10627_v62 = vld [vmem:[#allocation5 + $0xeec] sm:$0xf0]  ;;  %v8536_v11 = vor.u32 %v10595_v60, %v8535_v58  ;;  %4947 = vmatpush.bf16.msra.mxu3 %v8168_v4 }
  0x86   :  { %v8791_v1 = vld [vmem:[#allocation5 + $0xfe0] sm:$0xf]  ;;  %v10659_v2 = vld [vmem:[#allocation5 + $0xfec] sm:$0xf0]  ;;  %v8664_v12 = vor.u32 %v10627_v62, %v8663_v61  ;;  %4922 = vmatmul.bf16.vlgmr.msra.gmra.mxu1 %v11357_v23 }
  0x87   :  { %v139_v3 = vld [vmem:[#allocation2 + $0x40] sm:$0xff]  ;;  %v141_v6 = vld [vmem:[#allocation2 + $0x50] sm:$0xff]  ;;  %v8792_v17 = vor.u32 %v10659_v2, %v8791_v1  ;;  %4953 = vmatpush.bf16.msrb.mxu0 %v8408_v5  ;;  %4966 = vmatpush.bf16.msrb.mxu1 %v8536_v11 }
  0x88   :  { %v8391_v13 = vld [vmem:[#allocation5 + $0xcc0] sm:$0xf]  ;;  %v10559_v14 = vld [vmem:[#allocation5 + $0xccc] sm:$0xf0]  ;;  %v11353_v18 = vpack.c.bf16 %v139_v3, %v139_v3  ;;  %v11355_v22 = vpack.c.bf16 %v141_v6, %v141_v6  ;;  %4979 = vmatpush.bf16.msrb.mxu2 %v8664_v12  ;;  %4948 = vmatmul.bf16.vlgmr.msra.gmra.mxu3 %v11359_v27 }
  0x89   :  { %v8519_v16 = vld [vmem:[#allocation5 + $0xdc0] sm:$0xf]  ;;  %v10591_v19 = vld [vmem:[#allocation5 + $0xdcc] sm:$0xf0]  ;;  %v8392_v28 = vor.u32 %v10559_v14, %v8391_v13  ;;  %4992 = vmatpush.bf16.msrb.mxu3 %v8792_v17 }
  0x8a   :  { %v8647_v20 = vld [vmem:[#allocation5 + $0xec0] sm:$0xf]  ;;  %v10623_v21 = vld [vmem:[#allocation5 + $0xecc] sm:$0xf0]  ;;  %v8520_v29 = vor.u32 %v10591_v19, %v8519_v16  ;;  %4909 = vmatmul.bf16.vlgmr.msra.gmra.mxu0 %v11353_v18  ;;  %4935 = vmatmul.bf16.vlgmr.msra.gmra.mxu2 %v11355_v22 }
  0x8b   :  { %v8775_v24 = vld [vmem:[#allocation5 + $0xfc0] sm:$0xf]  ;;  %v10655_v26 = vld [vmem:[#allocation5 + $0xfcc] sm:$0xf0]  ;;  %v8648_v30 = vor.u32 %v10623_v21, %v8647_v20  ;;  %4954 = vmatpush.bf16.msrb.mxu0 %v8392_v28 }
  0x8c   :  { %v8375_v31 = vld [vmem:[#allocation5 + $0xca0] sm:$0xf]  ;;  %v10555_v32 = vld [vmem:[#allocation5 + $0xcac] sm:$0xf0]  ;;  %v8776_v35 = vor.u32 %v10655_v26, %v8775_v24  ;;  %4967 = vmatpush.bf16.msrb.mxu1 %v8520_v29 }
  0x8d   :  { %v8503_v33 = vld [vmem:[#allocation5 + $0xda0] sm:$0xf]  ;;  %v10587_v36 = vld [vmem:[#allocation5 + $0xdac] sm:$0xf0]  ;;  %v8376_v44 = vor.u32 %v10555_v32, %v8375_v31  ;;  %4980 = vmatpush.bf16.msrb.mxu2 %v8648_v30 }
  0x8e   :  { %v8631_v39 = vld [vmem:[#allocation5 + $0xea0] sm:$0xf]  ;;  %v10619_v41 = vld [vmem:[#allocation5 + $0xeac] sm:$0xf0]  ;;  %v8504_v45 = vor.u32 %v10587_v36, %v8503_v33  ;;  %4993 = vmatpush.bf16.msrb.mxu3 %v8776_v35 }
  0x8f   :  { %v8759_v42 = vld [vmem:[#allocation5 + $0xfa0] sm:$0xf]  ;;  %v10651_v43 = vld [vmem:[#allocation5 + $0xfac] sm:$0xf0]  ;;  %v8632_v46 = vor.u32 %v10619_v41, %v8631_v39  ;;  %4955 = vmatpush.bf16.msrb.mxu0 %v8376_v44 }
  0x90   :  { %v8359_v47 = vld [vmem:[#allocation5 + $0xc80] sm:$0xf]  ;;  %v10551_v48 = vld [vmem:[#allocation5 + $0xc8c] sm:$0xf0]  ;;  %v8760_v50 = vor.u32 %v10651_v43, %v8759_v42  ;;  %4968 = vmatpush.bf16.msrb.mxu1 %v8504_v45 }
  0x91   :  { %v8487_v49 = vld [vmem:[#allocation5 + $0xd80] sm:$0xf]  ;;  %v10583_v51 = vld [vmem:[#allocation5 + $0xd8c] sm:$0xf0]  ;;  %v8360_v56 = vor.u32 %v10551_v48, %v8359_v47  ;;  %4981 = vmatpush.bf16.msrb.mxu2 %v8632_v46 }
  0x92   :  { %v8615_v52 = vld [vmem:[#allocation5 + $0xe80] sm:$0xf]  ;;  %v10615_v53 = vld [vmem:[#allocation5 + $0xe8c] sm:$0xf0]  ;;  %v8488_v57 = vor.u32 %v10583_v51, %v8487_v49  ;;  %4994 = vmatpush.bf16.msrb.mxu3 %v8760_v50 }
  0x93   :  { %v8743_v54 = vld [vmem:[#allocation5 + $0xf80] sm:$0xf]  ;;  %v10647_v55 = vld [vmem:[#allocation5 + $0xf8c] sm:$0xf0]  ;;  %v8616_v58 = vor.u32 %v10615_v53, %v8615_v52  ;;  %4956 = vmatpush.bf16.msrb.mxu0 %v8360_v56 }
  0x94   :  { %v8343_v59 = vld [vmem:[#allocation5 + $0xc60] sm:$0xf]  ;;  %v10547_v60 = vld [vmem:[#allocation5 + $0xc6c] sm:$0xf0]  ;;  %v8744_v62 = vor.u32 %v10647_v55, %v8743_v54  ;;  %4969 = vmatpush.bf16.msrb.mxu1 %v8488_v57 }
  0x95   :  { %v8471_v61 = vld [vmem:[#allocation5 + $0xd60] sm:$0xf]  ;;  %v10579_v63 = vld [vmem:[#allocation5 + $0xd6c] sm:$0xf0]  ;;  %v8344_v4 = vor.u32 %v10547_v60, %v8343_v59  ;;  %4982 = vmatpush.bf16.msrb.mxu2 %v8616_v58 }
  0x96   :  { %v8599_v0 = vld [vmem:[#allocation5 + $0xe60] sm:$0xf]  ;;  %v10611_v1 = vld [vmem:[#allocation5 + $0xe6c] sm:$0xf0]  ;;  %v8472_v5 = vor.u32 %v10579_v63, %v8471_v61  ;;  %4995 = vmatpush.bf16.msrb.mxu3 %v8744_v62 }
  0x97   :  { %v8727_v2 = vld [vmem:[#allocation5 + $0xf60] sm:$0xf]  ;;  %v10643_v3 = vld [vmem:[#allocation5 + $0xf6c] sm:$0xf0]  ;;  %v8600_v6 = vor.u32 %v10611_v1, %v8599_v0  ;;  %4957 = vmatpush.bf16.msrb.mxu0 %v8344_v4  ;;  %v146_v4 = vld [vmem:[#allocation2 + $0x78] sm:$0xff] }
  0x98   :  { %v8327_v7 = vld [vmem:[#allocation5 + $0xc40] sm:$0xf]  ;;  %v10543_v10 = vld [vmem:[#allocation5 + $0xc4c] sm:$0xf0]  ;;  %v8728_v12 = vor.u32 %v10643_v3, %v8727_v2  ;;  %4970 = vmatpush.bf16.msrb.mxu1 %v8472_v5  ;;  %v144_v3 = vld [vmem:[#allocation2 + $0x68] sm:$0xff] }
  0x99   :  { %v8455_v11 = vld [vmem:[#allocation5 + $0xd40] sm:$0xf]  ;;  %v10575_v13 = vld [vmem:[#allocation5 + $0xd4c] sm:$0xf0]  ;;  %v8328_v20 = vor.u32 %v10543_v10, %v8327_v7  ;;  %4983 = vmatpush.bf16.msrb.mxu2 %v8600_v6 }
  0x9a   :  { %v8583_v14 = vld [vmem:[#allocation5 + $0xe40] sm:$0xf]  ;;  %v10607_v16 = vld [vmem:[#allocation5 + $0xe4c] sm:$0xf0]  ;;  %v8456_v21 = vor.u32 %v10575_v13, %v8455_v11  ;;  %4996 = vmatpush.bf16.msrb.mxu3 %v8728_v12 }
  0x9b   :  { %v8711_v17 = vld [vmem:[#allocation5 + $0xf40] sm:$0xf]  ;;  %v10639_v19 = vld [vmem:[#allocation5 + $0xf4c] sm:$0xf0]  ;;  %v8584_v24 = vor.u32 %v10607_v16, %v8583_v14  ;;  %4958 = vmatpush.bf16.msrb.mxu0 %v8328_v20  ;;  %v11369_v20 = vpack.c.bf16 %v144_v3, %v144_v3 }
  0x9c   :  { %v8311_v26 = vld [vmem:[#allocation5 + $0xc20] sm:$0xf]  ;;  %v10539_v28 = vld [vmem:[#allocation5 + $0xc2c] sm:$0xf0]  ;;  %v8712_v30 = vor.u32 %v10639_v19, %v8711_v17  ;;  %4971 = vmatpush.bf16.msrb.mxu1 %v8456_v21 }
  0x9d   :  { %v8439_v29 = vld [vmem:[#allocation5 + $0xd20] sm:$0xf]  ;;  %v10571_v31 = vld [vmem:[#allocation5 + $0xd2c] sm:$0xf0]  ;;  %v8312_v39 = vor.u32 %v10539_v28, %v8311_v26  ;;  %4984 = vmatpush.bf16.msrb.mxu2 %v8584_v24  ;;  %v11371_v26 = vpack.c.bf16 %v146_v4, %v146_v4 }
  0x9e   :  { %v8567_v32 = vld [vmem:[#allocation5 + $0xe20] sm:$0xf]  ;;  %v10603_v33 = vld [vmem:[#allocation5 + $0xe2c] sm:$0xf0]  ;;  %v8440_v43 = vor.u32 %v10571_v31, %v8439_v29  ;;  %4997 = vmatpush.bf16.msrb.mxu3 %v8712_v30 }
  0x9f   :  { %v8695_v35 = vld [vmem:[#allocation5 + $0xf20] sm:$0xf]  ;;  %v10635_v36 = vld [vmem:[#allocation5 + $0xf2c] sm:$0xf0]  ;;  %v8568_v44 = vor.u32 %v10603_v33, %v8567_v32  ;;  %4959 = vmatpush.bf16.msrb.mxu0 %v8312_v39 }
  0xa0   :  { %v8295_v41 = vld [vmem:[#allocation5 + $0xc00] sm:$0xf]  ;;  %v10535_v42 = vld [vmem:[#allocation5 + $0xc0c] sm:$0xf0]  ;;  %v8696_v48 = vor.u32 %v10635_v36, %v8695_v35  ;;  %4972 = vmatpush.bf16.msrb.mxu1 %v8440_v43 }
  0xa1   :  { %v8423_v45 = vld [vmem:[#allocation5 + $0xd00] sm:$0xf]  ;;  %v10567_v46 = vld [vmem:[#allocation5 + $0xd0c] sm:$0xf0]  ;;  %v8296_v55 = vor.u32 %v10535_v42, %v8295_v41  ;;  %4985 = vmatpush.bf16.msrb.mxu2 %v8568_v44 }
  0xa2   :  { %v8551_v47 = vld [vmem:[#allocation5 + $0xe00] sm:$0xf]  ;;  %v10599_v49 = vld [vmem:[#allocation5 + $0xe0c] sm:$0xf0]  ;;  %v8424_v59 = vor.u32 %v10567_v46, %v8423_v45  ;;  %4998 = vmatpush.bf16.msrb.mxu3 %v8696_v48 }
  0xa3   :  { %v8679_v50 = vld [vmem:[#allocation5 + $0xf00] sm:$0xf]  ;;  %v10631_v51 = vld [vmem:[#allocation5 + $0xf0c] sm:$0xf0]  ;;  %v8552_v60 = vor.u32 %v10599_v49, %v8551_v47  ;;  %4960 = vmatpush.bf16.msrb.mxu0 %v8296_v55 }
  0xa4   :  { %v8919_v52 = vld [vmem:[#allocation5 + $0x10e0] sm:$0xf]  ;;  %v10691_v53 = vld [vmem:[#allocation5 + $0x10ec] sm:$0xf0]  ;;  %v8680_v0 = vor.u32 %v10631_v51, %v8679_v50  ;;  %4973 = vmatpush.bf16.msrb.mxu1 %v8424_v59 }
  0xa5   :  { %v9047_v54 = vld [vmem:[#allocation5 + $0x11e0] sm:$0xf]  ;;  %v10723_v56 = vld [vmem:[#allocation5 + $0x11ec] sm:$0xf0]  ;;  %v8920_v1 = vor.u32 %v10691_v53, %v8919_v52  ;;  %4986 = vmatpush.bf16.msrb.mxu2 %v8552_v60 }
  0xa6   :  { %v9175_v57 = vld [vmem:[#allocation5 + $0x12e0] sm:$0xf]  ;;  %v10755_v58 = vld [vmem:[#allocation5 + $0x12ec] sm:$0xf0]  ;;  %v9048_v5 = vor.u32 %v10723_v56, %v9047_v54  ;;  %4999 = vmatpush.bf16.msrb.mxu3 %v8680_v0 }
  0xa7   :  { %v9303_v61 = vld [vmem:[#allocation5 + $0x13e0] sm:$0xf]  ;;  %v10787_v62 = vld [vmem:[#allocation5 + $0x13ec] sm:$0xf0]  ;;  %v9176_v6 = vor.u32 %v10755_v58, %v9175_v57  ;;  %5005 = vmatpush.bf16.msra.mxu0 %v8920_v1  ;;  %4974 = vmatmul.bf16.vlgmr.msrb.gmra.mxu1 %v11369_v20 }
  0xa8   :  { %v143_v63 = vld [vmem:[#allocation2 + $0x60] sm:$0xff]  ;;  %v145_v2 = vld [vmem:[#allocation2 + $0x70] sm:$0xff]  ;;  %v9304_v12 = vor.u32 %v10787_v62, %v9303_v61  ;;  %5018 = vmatpush.bf16.msra.mxu1 %v9048_v5 }
  0xa9   :  { %v8903_v7 = vld [vmem:[#allocation5 + $0x10c0] sm:$0xf]  ;;  %v10687_v10 = vld [vmem:[#allocation5 + $0x10cc] sm:$0xf0]  ;;  %v11365_v13 = vpack.c.bf16 %v143_v63, %v143_v63  ;;  %v11367_v19 = vpack.c.bf16 %v145_v2, %v145_v2  ;;  %5031 = vmatpush.bf16.msra.mxu2 %v9176_v6  ;;  %5000 = vmatmul.bf16.vlgmr.msrb.gmra.mxu3 %v11371_v26 }
  0xaa   :  { %v9031_v11 = vld [vmem:[#allocation5 + $0x11c0] sm:$0xf]  ;;  %v10719_v14 = vld [vmem:[#allocation5 + $0x11cc] sm:$0xf0]  ;;  %v8904_v28 = vor.u32 %v10687_v10, %v8903_v7  ;;  %5044 = vmatpush.bf16.msra.mxu3 %v9304_v12 }
  0xab   :  { %v9159_v16 = vld [vmem:[#allocation5 + $0x12c0] sm:$0xf]  ;;  %v10751_v17 = vld [vmem:[#allocation5 + $0x12cc] sm:$0xf0]  ;;  %v9032_v29 = vor.u32 %v10719_v14, %v9031_v11  ;;  %4961 = vmatmul.bf16.vlgmr.msrb.gmra.mxu0 %v11365_v13  ;;  %4987 = vmatmul.bf16.vlgmr.msrb.gmra.mxu2 %v11367_v19 }
  0xac   :  { %v9287_v21 = vld [vmem:[#allocation5 + $0x13c0] sm:$0xf]  ;;  %v10783_v24 = vld [vmem:[#allocation5 + $0x13cc] sm:$0xf0]  ;;  %v9160_v30 = vor.u32 %v10751_v17, %v9159_v16  ;;  %5006 = vmatpush.bf16.msra.mxu0 %v8904_v28 }
  0xad   :  { %v8887_v31 = vld [vmem:[#allocation5 + $0x10a0] sm:$0xf]  ;;  %v10683_v32 = vld [vmem:[#allocation5 + $0x10ac] sm:$0xf0]  ;;  %v9288_v35 = vor.u32 %v10783_v24, %v9287_v21  ;;  %5019 = vmatpush.bf16.msra.mxu1 %v9032_v29 }
  0xae   :  { %v9015_v33 = vld [vmem:[#allocation5 + $0x11a0] sm:$0xf]  ;;  %v10715_v36 = vld [vmem:[#allocation5 + $0x11ac] sm:$0xf0]  ;;  %v8888_v44 = vor.u32 %v10683_v32, %v8887_v31  ;;  %5032 = vmatpush.bf16.msra.mxu2 %v9160_v30 }
  0xaf   :  { %v9143_v39 = vld [vmem:[#allocation5 + $0x12a0] sm:$0xf]  ;;  %v10747_v41 = vld [vmem:[#allocation5 + $0x12ac] sm:$0xf0]  ;;  %v9016_v45 = vor.u32 %v10715_v36, %v9015_v33  ;;  %5045 = vmatpush.bf16.msra.mxu3 %v9288_v35 }
  0xb0   :  { %v9271_v42 = vld [vmem:[#allocation5 + $0x13a0] sm:$0xf]  ;;  %v10779_v43 = vld [vmem:[#allocation5 + $0x13ac] sm:$0xf0]  ;;  %v9144_v46 = vor.u32 %v10747_v41, %v9143_v39  ;;  %5007 = vmatpush.bf16.msra.mxu0 %v8888_v44 }
  0xb1   :  { %v8871_v47 = vld [vmem:[#allocation5 + $0x1080] sm:$0xf]  ;;  %v10679_v48 = vld [vmem:[#allocation5 + $0x108c] sm:$0xf0]  ;;  %v9272_v50 = vor.u32 %v10779_v43, %v9271_v42  ;;  %5020 = vmatpush.bf16.msra.mxu1 %v9016_v45 }
  0xb2   :  { %v8999_v49 = vld [vmem:[#allocation5 + $0x1180] sm:$0xf]  ;;  %v10711_v51 = vld [vmem:[#allocation5 + $0x118c] sm:$0xf0]  ;;  %v8872_v56 = vor.u32 %v10679_v48, %v8871_v47  ;;  %5033 = vmatpush.bf16.msra.mxu2 %v9144_v46 }
  0xb3   :  { %v9127_v52 = vld [vmem:[#allocation5 + $0x1280] sm:$0xf]  ;;  %v10743_v53 = vld [vmem:[#allocation5 + $0x128c] sm:$0xf0]  ;;  %v9000_v57 = vor.u32 %v10711_v51, %v8999_v49  ;;  %5046 = vmatpush.bf16.msra.mxu3 %v9272_v50 }
  0xb4   :  { %v9255_v54 = vld [vmem:[#allocation5 + $0x1380] sm:$0xf]  ;;  %v10775_v55 = vld [vmem:[#allocation5 + $0x138c] sm:$0xf0]  ;;  %v9128_v58 = vor.u32 %v10743_v53, %v9127_v52  ;;  %5008 = vmatpush.bf16.msra.mxu0 %v8872_v56 }
  0xb5   :  { %v8855_v59 = vld [vmem:[#allocation5 + $0x1060] sm:$0xf]  ;;  %v10675_v60 = vld [vmem:[#allocation5 + $0x106c] sm:$0xf0]  ;;  %v9256_v62 = vor.u32 %v10775_v55, %v9255_v54  ;;  %5021 = vmatpush.bf16.msra.mxu1 %v9000_v57 }
  0xb6   :  { %v8983_v61 = vld [vmem:[#allocation5 + $0x1160] sm:$0xf]  ;;  %v10707_v63 = vld [vmem:[#allocation5 + $0x116c] sm:$0xf0]  ;;  %v8856_v4 = vor.u32 %v10675_v60, %v8855_v59  ;;  %5034 = vmatpush.bf16.msra.mxu2 %v9128_v58 }
  0xb7   :  { %v9111_v0 = vld [vmem:[#allocation5 + $0x1260] sm:$0xf]  ;;  %v10739_v1 = vld [vmem:[#allocation5 + $0x126c] sm:$0xf0]  ;;  %v8984_v5 = vor.u32 %v10707_v63, %v8983_v61  ;;  %5047 = vmatpush.bf16.msra.mxu3 %v9256_v62 }
  0xb8   :  { %v9239_v2 = vld [vmem:[#allocation5 + $0x1360] sm:$0xf]  ;;  %v10771_v3 = vld [vmem:[#allocation5 + $0x136c] sm:$0xf0]  ;;  %v9112_v6 = vor.u32 %v10739_v1, %v9111_v0  ;;  %5009 = vmatpush.bf16.msra.mxu0 %v8856_v4 }
  0xb9   :  { %v8839_v7 = vld [vmem:[#allocation5 + $0x1040] sm:$0xf]  ;;  %v10671_v10 = vld [vmem:[#allocation5 + $0x104c] sm:$0xf0]  ;;  %v9240_v12 = vor.u32 %v10771_v3, %v9239_v2  ;;  %5022 = vmatpush.bf16.msra.mxu1 %v8984_v5 }
  0xba   :  { %v8967_v11 = vld [vmem:[#allocation5 + $0x1140] sm:$0xf]  ;;  %v10703_v14 = vld [vmem:[#allocation5 + $0x114c] sm:$0xf0]  ;;  %v8840_v28 = vor.u32 %v10671_v10, %v8839_v7  ;;  %5035 = vmatpush.bf16.msra.mxu2 %v9112_v6  ;;  %v148_v7 = vld [vmem:[#allocation2 + $0x88] sm:$0xff] }
  0xbb   :  { %v9095_v16 = vld [vmem:[#allocation5 + $0x1240] sm:$0xf]  ;;  %v10735_v17 = vld [vmem:[#allocation5 + $0x124c] sm:$0xf0]  ;;  %v8968_v29 = vor.u32 %v10703_v14, %v8967_v11  ;;  %5048 = vmatpush.bf16.msra.mxu3 %v9240_v12  ;;  %v150_v10 = vld [vmem:[#allocation2 + $0x98] sm:$0xff] }
  0xbc   :  { %v9223_v21 = vld [vmem:[#allocation5 + $0x1340] sm:$0xf]  ;;  %v10767_v24 = vld [vmem:[#allocation5 + $0x134c] sm:$0xf0]  ;;  %v9096_v30 = vor.u32 %v10735_v17, %v9095_v16  ;;  %5010 = vmatpush.bf16.msra.mxu0 %v8840_v28 }
  0xbd   :  { %v8823_v31 = vld [vmem:[#allocation5 + $0x1020] sm:$0xf]  ;;  %v10667_v32 = vld [vmem:[#allocation5 + $0x102c] sm:$0xf0]  ;;  %v9224_v35 = vor.u32 %v10767_v24, %v9223_v21  ;;  %5023 = vmatpush.bf16.msra.mxu1 %v8968_v29 }
  0xbe   :  { %v8951_v33 = vld [vmem:[#allocation5 + $0x1120] sm:$0xf]  ;;  %v10699_v36 = vld [vmem:[#allocation5 + $0x112c] sm:$0xf0]  ;;  %v8824_v44 = vor.u32 %v10667_v32, %v8823_v31  ;;  %5036 = vmatpush.bf16.msra.mxu2 %v9096_v30  ;;  %v11381_v32 = vpack.c.bf16 %v148_v7, %v148_v7 }
  0xbf   :  { %v9079_v39 = vld [vmem:[#allocation5 + $0x1220] sm:$0xf]  ;;  %v10731_v41 = vld [vmem:[#allocation5 + $0x122c] sm:$0xf0]  ;;  %v8952_v47 = vor.u32 %v10699_v36, %v8951_v33  ;;  %5049 = vmatpush.bf16.msra.mxu3 %v9224_v35  ;;  %v11383_v36 = vpack.c.bf16 %v150_v10, %v150_v10 }
  0xc0   :  { %v9207_v42 = vld [vmem:[#allocation5 + $0x1320] sm:$0xf]  ;;  %v10763_v43 = vld [vmem:[#allocation5 + $0x132c] sm:$0xf0]  ;;  %v9080_v48 = vor.u32 %v10731_v41, %v9079_v39  ;;  %5011 = vmatpush.bf16.msra.mxu0 %v8824_v44 }
  0xc1   :  { %v8807_v45 = vld [vmem:[#allocation5 + $0x1000] sm:$0xf]  ;;  %v10663_v46 = vld [vmem:[#allocation5 + $0x100c] sm:$0xf0]  ;;  %v9208_v52 = vor.u32 %v10763_v43, %v9207_v42  ;;  %5024 = vmatpush.bf16.msra.mxu1 %v8952_v47 }
  0xc2   :  { %v8935_v49 = vld [vmem:[#allocation5 + $0x1100] sm:$0xf]  ;;  %v10695_v50 = vld [vmem:[#allocation5 + $0x110c] sm:$0xf0]  ;;  %v8808_v59 = vor.u32 %v10663_v46, %v8807_v45  ;;  %5037 = vmatpush.bf16.msra.mxu2 %v9080_v48 }
  0xc3   :  { %v9063_v51 = vld [vmem:[#allocation5 + $0x1200] sm:$0xf]  ;;  %v10727_v53 = vld [vmem:[#allocation5 + $0x120c] sm:$0xf0]  ;;  %v8936_v63 = vor.u32 %v10695_v50, %v8935_v49  ;;  %5050 = vmatpush.bf16.msra.mxu3 %v9208_v52 }
  0xc4   :  { %v9191_v54 = vld [vmem:[#allocation5 + $0x1300] sm:$0xf]  ;;  %v10759_v55 = vld [vmem:[#allocation5 + $0x130c] sm:$0xf0]  ;;  %v9064_v0 = vor.u32 %v10727_v53, %v9063_v51  ;;  %5012 = vmatpush.bf16.msra.mxu0 %v8808_v59 }
  0xc5   :  { %v9431_v56 = vld [vmem:[#allocation5 + $0x14e0] sm:$0xf]  ;;  %v10819_v57 = vld [vmem:[#allocation5 + $0x14ec] sm:$0xf0]  ;;  %v9192_v4 = vor.u32 %v10759_v55, %v9191_v54  ;;  %5025 = vmatpush.bf16.msra.mxu1 %v8936_v63 }
  0xc6   :  { %v9559_v58 = vld [vmem:[#allocation5 + $0x15e0] sm:$0xf]  ;;  %v10851_v60 = vld [vmem:[#allocation5 + $0x15ec] sm:$0xf0]  ;;  %v9432_v5 = vor.u32 %v10819_v57, %v9431_v56  ;;  %5038 = vmatpush.bf16.msra.mxu2 %v9064_v0 }
  0xc7   :  { %v9687_v61 = vld [vmem:[#allocation5 + $0x16e0] sm:$0xf]  ;;  %v10883_v62 = vld [vmem:[#allocation5 + $0x16ec] sm:$0xf0]  ;;  %v9560_v11 = vor.u32 %v10851_v60, %v9559_v58  ;;  %5051 = vmatpush.bf16.msra.mxu3 %v9192_v4 }
  0xc8   :  { %v9815_v1 = vld [vmem:[#allocation5 + $0x17e0] sm:$0xf]  ;;  %v10915_v2 = vld [vmem:[#allocation5 + $0x17ec] sm:$0xf0]  ;;  %v9688_v12 = vor.u32 %v10883_v62, %v9687_v61  ;;  %5057 = vmatpush.bf16.msrb.mxu0 %v9432_v5  ;;  %5026 = vmatmul.bf16.vlgmr.msra.gmra.mxu1 %v11381_v32 }
  0xc9   :  { %v147_v3 = vld [vmem:[#allocation2 + $0x80] sm:$0xff]  ;;  %v149_v6 = vld [vmem:[#allocation2 + $0x90] sm:$0xff]  ;;  %v9816_v21 = vor.u32 %v10915_v2, %v9815_v1  ;;  %5070 = vmatpush.bf16.msrb.mxu1 %v9560_v11 }
  0xca   :  { %v9415_v14 = vld [vmem:[#allocation5 + $0x14c0] sm:$0xf]  ;;  %v10815_v16 = vld [vmem:[#allocation5 + $0x14cc] sm:$0xf0]  ;;  %v11377_v24 = vpack.c.bf16 %v147_v3, %v147_v3  ;;  %v11379_v31 = vpack.c.bf16 %v149_v6, %v149_v6  ;;  %5083 = vmatpush.bf16.msrb.mxu2 %v9688_v12  ;;  %5052 = vmatmul.bf16.vlgmr.msra.gmra.mxu3 %v11383_v36 }
  0xcb   :  { %v9543_v17 = vld [vmem:[#allocation5 + $0x15c0] sm:$0xf]  ;;  %v10847_v28 = vld [vmem:[#allocation5 + $0x15cc] sm:$0xf0]  ;;  %v9416_v39 = vor.u32 %v10815_v16, %v9415_v14  ;;  %5096 = vmatpush.bf16.msrb.mxu3 %v9816_v21 }
  0xcc   :  { %v9671_v29 = vld [vmem:[#allocation5 + $0x16c0] sm:$0xf]  ;;  %v10879_v30 = vld [vmem:[#allocation5 + $0x16cc] sm:$0xf0]  ;;  %v9544_v41 = vor.u32 %v10847_v28, %v9543_v17  ;;  %5013 = vmatmul.bf16.vlgmr.msra.gmra.mxu0 %v11377_v24  ;;  %5039 = vmatmul.bf16.vlgmr.msra.gmra.mxu2 %v11379_v31 }
  0xcd   :  { %v9799_v33 = vld [vmem:[#allocation5 + $0x17c0] sm:$0xf]  ;;  %v10911_v35 = vld [vmem:[#allocation5 + $0x17cc] sm:$0xf0]  ;;  %v9672_v42 = vor.u32 %v10879_v30, %v9671_v29  ;;  %5058 = vmatpush.bf16.msrb.mxu0 %v9416_v39 }
  0xce   :  { %v9399_v43 = vld [vmem:[#allocation5 + $0x14a0] sm:$0xf]  ;;  %v10811_v44 = vld [vmem:[#allocation5 + $0x14ac] sm:$0xf0]  ;;  %v9800_v46 = vor.u32 %v10911_v35, %v9799_v33  ;;  %5071 = vmatpush.bf16.msrb.mxu1 %v9544_v41  ;;  %v4806_v28 = vpop.f32.mrf.mxu0 }
  0xcf   :  { %v9527_v45 = vld [vmem:[#allocation5 + $0x15a0] sm:$0xf]  ;;  %v10843_v47 = vld [vmem:[#allocation5 + $0x15ac] sm:$0xf0]  ;;  %v9400_v52 = vor.u32 %v10811_v44, %v9399_v43  ;;  %5084 = vmatpush.bf16.msrb.mxu2 %v9672_v42 }
  0xd0   :  { %v9655_v48 = vld [vmem:[#allocation5 + $0x16a0] sm:$0xf]  ;;  %v10875_v49 = vld [vmem:[#allocation5 + $0x16ac] sm:$0xf0]  ;;  %v9528_v54 = vor.u32 %v10843_v47, %v9527_v45  ;;  %5097 = vmatpush.bf16.msrb.mxu3 %v9800_v46 }
  0xd1   :  { %v9783_v50 = vld [vmem:[#allocation5 + $0x17a0] sm:$0xf]  ;;  %v10907_v51 = vld [vmem:[#allocation5 + $0x17ac] sm:$0xf0]  ;;  %v9656_v55 = vor.u32 %v10875_v49, %v9655_v48  ;;  %5059 = vmatpush.bf16.msrb.mxu0 %v9400_v52  ;;  %v4819_v49 = vpop.f32.mrf.mxu1 }
  0xd2   :  { %v9383_v53 = vld [vmem:[#allocation5 + $0x1480] sm:$0xf]  ;;  %v10807_v56 = vld [vmem:[#allocation5 + $0x148c] sm:$0xf0]  ;;  %v9784_v59 = vor.u32 %v10907_v51, %v9783_v50  ;;  %5072 = vmatpush.bf16.msrb.mxu1 %v9528_v54 }
  0xd3   :  { %v9511_v57 = vld [vmem:[#allocation5 + $0x1580] sm:$0xf]  ;;  %v10839_v58 = vld [vmem:[#allocation5 + $0x158c] sm:$0xf0]  ;;  %v9384_v1 = vor.u32 %v10807_v56, %v9383_v53  ;;  %5085 = vmatpush.bf16.msrb.mxu2 %v9656_v55 }
  0xd4   :  { %v9639_v60 = vld [vmem:[#allocation5 + $0x1680] sm:$0xf]  ;;  %v10871_v61 = vld [vmem:[#allocation5 + $0x168c] sm:$0xf0]  ;;  %v9512_v3 = vor.u32 %v10839_v58, %v9511_v57  ;;  %5098 = vmatpush.bf16.msrb.mxu3 %v9784_v59 }
  0xd5   :  { %v947_v62 = vld [vmem:[#allocation7] sm:$0xf]  ;;  %v10903_v0 = vld [vmem:[#allocation5 + $0x178c] sm:$0xf0]  ;;  %v9640_v4 = vor.u32 %v10871_v61, %v9639_v60  ;;  %5060 = vmatpush.bf16.msrb.mxu0 %v9384_v1  ;;  %v4832_v60 = vpop.f32.mrf.mxu2 }
  0xd6   :  { %v9767_v63 = vld [vmem:[#allocation5 + $0x1780] sm:$0xf]  ;;  %v10803_v5 = vld [vmem:[#allocation5 + $0x146c] sm:$0xf0]  ;;  %v949_v7 = vperm.slane %v947_v62, 0  ;;  %5073 = vmatpush.bf16.msrb.mxu1 %v9512_v3 }
  0xd7   :  { %v9367_v2 = vld [vmem:[#allocation5 + $0x1460] sm:$0xf]  ;;  %v9768_v10 = vor.u32 %v10903_v0, %v9767_v63  ;;  %v10835_v11 = vld [vmem:[#allocation5 + $0x156c] sm:$0xf0]  ;;  %5086 = vmatpush.bf16.msrb.mxu2 %v9640_v4  ;;  %v4845_v0 = vpop.f32.mrf.mxu3  ;;  %v4808_v4 = vpop.f32.mrf.mxu0 }
  0xd8   :  { %v9495_v6 = vld [vmem:[#allocation5 + $0x1560] sm:$0xf]  ;;  %v10867_v14 = vld [vmem:[#allocation5 + $0x166c] sm:$0xf0]  ;;  %v9368_v21 = vor.u32 %v10803_v5, %v9367_v2  ;;  %v4807_v41 = vadd.f32 %v4806_v28, %v949_v7  ;;  %v10177_v28 = vld [vmem:[#allocation5 + $0xe4] sm:$0xf] }
  0xd9   :  { %v9623_v12 = vld [vmem:[#allocation5 + $0x1660] sm:$0xf]  ;;  %v10899_v17 = vld [vmem:[#allocation5 + $0x176c] sm:$0xf0]  ;;  %v9496_v29 = vor.u32 %v10835_v11, %v9495_v6  ;;  %5099 = vmatpush.bf16.msrb.mxu3 %v9768_v10  ;;  %v7241_v4 = vld [vmem:[#allocation5 + $0x3d0] sm:$0xf0] }
  0xda   :  { %v9751_v16 = vld [vmem:[#allocation5 + $0x1760] sm:$0xf]  ;;  %v9624_v30 = vor.u32 %v10867_v14, %v9623_v12  ;;  %v10799_v35 = vld [vmem:[#allocation5 + $0x144c] sm:$0xf0]  ;;  %5061 = vmatpush.bf16.msrb.mxu0 %v9368_v21  ;;  %v4820_v55 = vadd.f32 %v4819_v49, %v4807_v41  ;;  %v7129_v41 = vld [vmem:[#allocation5 + $0x2f0] sm:$0xf0] }
  0xdb   :  { %v9351_v33 = vld [vmem:[#allocation5 + $0x1440] sm:$0xf]  ;;  %v9752_v42 = vor.u32 %v10899_v17, %v9751_v16  ;;  %v10831_v43 = vld [vmem:[#allocation5 + $0x154c] sm:$0xf0]  ;;  %5074 = vmatpush.bf16.msrb.mxu1 %v9496_v29  ;;  %v6873_v29 = vld [vmem:[#allocation5 + $0xf0] sm:$0xf0] }
  0xdc   :  { %v9479_v39 = vld [vmem:[#allocation5 + $0x1540] sm:$0xf]  ;;  %v10863_v45 = vld [vmem:[#allocation5 + $0x164c] sm:$0xf0]  ;;  %v9352_v48 = vor.u32 %v10799_v35, %v9351_v33  ;;  %5087 = vmatpush.bf16.msrb.mxu2 %v9624_v30  ;;  %v4833_v63 = vadd.f32 %v4832_v60, %v4820_v55  ;;  %v10209_v30 = vld [vmem:[#allocation5 + $0x1e4] sm:$0xf]  ;;  %v6876_v49 = vor.u32 %v10177_v28, %v6873_v29 }
  0xdd   :  { %v9607_v44 = vld [vmem:[#allocation5 + $0x1640] sm:$0xf]  ;;  %v10895_v47 = vld [vmem:[#allocation5 + $0x174c] sm:$0xf0]  ;;  %v9480_v50 = vor.u32 %v10831_v43, %v9479_v39  ;;  %5100 = vmatpush.bf16.msrb.mxu3 %v9752_v42  ;;  %v7001_v35 = vld [vmem:[#allocation5 + $0x1f0] sm:$0xf0]  ;;  %v4821_v42 = vpop.f32.mrf.mxu1 }
  0xde   :  { %v9735_v46 = vld [vmem:[#allocation5 + $0x1740] sm:$0xf]  ;;  %v9608_v51 = vor.u32 %v10863_v45, %v9607_v44  ;;  %v10795_v53 = vld [vmem:[#allocation5 + $0x142c] sm:$0xf0]  ;;  %5062 = vmatpush.bf16.msrb.mxu0 %v9352_v48  ;;  %v11389_v12 = vadd.f32 %v4845_v0, %v4833_v63  ;;  %v10241_v39 = vld [vmem:[#allocation5 + $0x2e4] sm:$0xf] }
  0xdf   :  { %v9335_v52 = vld [vmem:[#allocation5 + $0x1420] sm:$0xf]  ;;  %v9736_v56 = vor.u32 %v10895_v47, %v9735_v46  ;;  %v10827_v57 = vld [vmem:[#allocation5 + $0x152c] sm:$0xf0]  ;;  %5075 = vmatpush.bf16.msrb.mxu1 %v9480_v50  ;;  %v10273_v45 = vld [vmem:[#allocation5 + $0x3e4] sm:$0xf]  ;;  %v7132_v55 = vor.u32 %v10241_v39, %v7129_v41 }
  0xe0   :  { %v9463_v54 = vld [vmem:[#allocation5 + $0x1520] sm:$0xf]  ;;  %v10859_v59 = vld [vmem:[#allocation5 + $0x162c] sm:$0xf0]  ;;  %v9336_v1 = vor.u32 %v10795_v53, %v9335_v52  ;;  %5088 = vmatpush.bf16.msrb.mxu2 %v9608_v51  ;;  %v7257_v46 = vld [vmem:[#allocation5 + $0x3f0] sm:$0xf0]  ;;  %v4834_v53 = vpop.f32.mrf.mxu2 }
  0xe1   :  { %v9591_v58 = vld [vmem:[#allocation5 + $0x1620] sm:$0xf]  ;;  %v10891_v62 = vld [vmem:[#allocation5 + $0x172c] sm:$0xf0]  ;;  %v9464_v5 = vor.u32 %v10827_v57, %v9463_v54  ;;  %5101 = vmatpush.bf16.msrb.mxu3 %v9736_v56  ;;  %v152_v51 = vld [vmem:[#allocation2 + $0xa8] sm:$0xff]  ;;  %v7004_v54 = vor.u32 %v10209_v30, %v7001_v35  ;;  %v7260_v60 = vor.u32 %v10273_v45, %v7257_v46 }
  0xe2   :  { %v9719_v61 = vld [vmem:[#allocation5 + $0x1720] sm:$0xf]  ;;  %v10791_v3 = vld [vmem:[#allocation5 + $0x140c] sm:$0xf0]  ;;  %v9592_v6 = vor.u32 %v10859_v59, %v9591_v58  ;;  %5063 = vmatpush.bf16.msrb.mxu0 %v9336_v1  ;;  %v154_v52 = vld [vmem:[#allocation2 + $0xb8] sm:$0xff]  ;;  %v4847_v59 = vpop.f32.mrf.mxu3 }
  0xe3   :  { %v9319_v2 = vld [vmem:[#allocation5 + $0x1400] sm:$0xf]  ;;  %v10823_v10 = vld [vmem:[#allocation5 + $0x150c] sm:$0xf0]  ;;  %v9720_v14 = vor.u32 %v10891_v62, %v9719_v61  ;;  %5076 = vmatpush.bf16.msrb.mxu1 %v9464_v5  ;;  %v10173_v56 = vld [vmem:[#allocation5 + $0xc4] sm:$0xf]  ;;  %v11397_v5 = vpack.c.bf16 %v154_v52, %v154_v52 }
  0xe4   :  { %v9447_v7 = vld [vmem:[#allocation5 + $0x1500] sm:$0xf]  ;;  %v10855_v16 = vld [vmem:[#allocation5 + $0x160c] sm:$0xf0]  ;;  %v9320_v33 = vor.u32 %v10791_v3, %v9319_v2  ;;  %5089 = vmatpush.bf16.msrb.mxu2 %v9592_v6  ;;  %v6857_v57 = vld [vmem:[#allocation5 + $0xd0] sm:$0xf0]  ;;  %v11395_v2 = vpack.c.bf16 %v152_v51, %v152_v51 }
  0xe5   :  { %v9575_v11 = vld [vmem:[#allocation5 + $0x1600] sm:$0xf]  ;;  %v10887_v21 = vld [vmem:[#allocation5 + $0x170c] sm:$0xf0]  ;;  %v9448_v43 = vor.u32 %v10823_v10, %v9447_v7  ;;  %5102 = vmatpush.bf16.msrb.mxu3 %v9720_v14  ;;  %v10205_v58 = vld [vmem:[#allocation5 + $0x1c4] sm:$0xf]  ;;  %v6860_v6 = vor.u32 %v10173_v56, %v6857_v57  ;;  %v4871_v59 = vpop.f32.mrf.mxu1 }
  0xe6   :  { %v9703_v17 = vld [vmem:[#allocation5 + $0x1700] sm:$0xf]  ;;  %v9576_v44 = vor.u32 %v10855_v16, %v9575_v11  ;;  %v153_v50 = vld [vmem:[#allocation2 + $0xb0] sm:$0xff]  ;;  %5064 = vmatpush.bf16.msrb.mxu0 %v9320_v33  ;;  %v10237_v63 = vld [vmem:[#allocation5 + $0x2c4] sm:$0xf] }
  0xe7   :  { %v151_v47 = vld [vmem:[#allocation2 + $0xa0] sm:$0xff]  ;;  %v9704_v48 = vor.u32 %v10887_v21, %v9703_v17  ;;  %v6985_v62 = vld [vmem:[#allocation5 + $0x1d0] sm:$0xf0]  ;;  %5077 = vmatpush.bf16.msrb.mxu1 %v9448_v43  ;;  %v11393_v1 = vpack.c.bf16 %v153_v50, %v153_v50  ;;  %v4858_v52 = vpop.f32.mrf.mxu0 }
  0xe8   :  { %v11391_v61 = vpack.c.bf16 %v151_v47, %v151_v47  ;;  %v7113_v0 = vld [vmem:[#allocation5 + $0x2d0] sm:$0xf0]  ;;  %5090 = vmatpush.bf16.msrb.mxu2 %v9576_v44  ;;  %v10269_v3 = vld [vmem:[#allocation5 + $0x3c4] sm:$0xf]  ;;  %v6988_v7 = vor.u32 %v10205_v58, %v6985_v62  ;;  %v4859_v58 = vadd.f32 %v4858_v52, %v11389_v12 }
  0xe9   :  { %5103 = vmatpush.bf16.msrb.mxu3 %v9704_v48  ;;  %v7116_v10 = vor.u32 %v10237_v63, %v7113_v0  ;;  %v10169_v11 = vld [vmem:[#allocation5 + $0xa4] sm:$0xf]  ;;  %v6841_v14 = vld [vmem:[#allocation5 + $0xb0] sm:$0xf0]  ;;  %v7244_v17 = vor.u32 %v10269_v3, %v7241_v4 }
  0xea   :  { %5109 = vmatpush.bf16.msra.mxu0 %v6876_v49  ;;  %v10201_v16 = vld [vmem:[#allocation5 + $0x1a4] sm:$0xf]  ;;  %v6969_v21 = vld [vmem:[#allocation5 + $0x1b0] sm:$0xf0]  ;;  %5078 = vmatmul.bf16.vlgmr.msrb.gmra.mxu1 %v11395_v2  ;;  %v6844_v35 = vor.u32 %v10169_v11, %v6841_v14 }
  0xeb   :  { %5122 = vmatpush.bf16.msra.mxu1 %v7004_v54  ;;  %5065 = vmatmul.bf16.vlgmr.msrb.gmra.mxu0 %v11391_v61  ;;  %v10233_v28 = vld [vmem:[#allocation5 + $0x2a4] sm:$0xf]  ;;  %v7097_v29 = vld [vmem:[#allocation5 + $0x2b0] sm:$0xf0]  ;;  %v6972_v39 = vor.u32 %v10201_v16, %v6969_v21 }
  0xec   :  { %5135 = vmatpush.bf16.msra.mxu2 %v7132_v55  ;;  %v10265_v30 = vld [vmem:[#allocation5 + $0x3a4] sm:$0xf]  ;;  %v7225_v33 = vld [vmem:[#allocation5 + $0x3b0] sm:$0xf0]  ;;  %5104 = vmatmul.bf16.vlgmr.msrb.gmra.mxu3 %v11397_v5  ;;  %v7100_v41 = vor.u32 %v10233_v28, %v7097_v29  ;;  %v4884_v21 = vpop.f32.mrf.mxu2 }
  0xed   :  { %5148 = vmatpush.bf16.msra.mxu3 %v7260_v60  ;;  %5091 = vmatmul.bf16.vlgmr.msrb.gmra.mxu2 %v11393_v1  ;;  %v10165_v42 = vld [vmem:[#allocation5 + $0x84] sm:$0xf]  ;;  %v6825_v43 = vld [vmem:[#allocation5 + $0x90] sm:$0xf0]  ;;  %v7228_v45 = vor.u32 %v10265_v30, %v7225_v33 }
  0xee   :  { %5110 = vmatpush.bf16.msra.mxu0 %v6860_v6  ;;  %v10197_v44 = vld [vmem:[#allocation5 + $0x184] sm:$0xf]  ;;  %v6953_v46 = vld [vmem:[#allocation5 + $0x190] sm:$0xf0]  ;;  %v6828_v51 = vor.u32 %v10165_v42, %v6825_v43  ;;  %v4872_v6 = vadd.f32 %v4871_v59, %v4859_v58 }
  0xef   :  { %5123 = vmatpush.bf16.msra.mxu1 %v6988_v7  ;;  %v10229_v47 = vld [vmem:[#allocation5 + $0x284] sm:$0xf]  ;;  %v7081_v48 = vld [vmem:[#allocation5 + $0x290] sm:$0xf0]  ;;  %v6956_v53 = vor.u32 %v10197_v44, %v6953_v46  ;;  %v4860_v44 = vpop.f32.mrf.mxu0 }
  0xf0   :  { %5136 = vmatpush.bf16.msra.mxu2 %v7116_v10  ;;  %v10261_v49 = vld [vmem:[#allocation5 + $0x384] sm:$0xf]  ;;  %v7209_v50 = vld [vmem:[#allocation5 + $0x390] sm:$0xf0]  ;;  %v7084_v54 = vor.u32 %v10229_v47, %v7081_v48  ;;  %v4885_v33 = vadd.f32 %v4884_v21, %v4872_v6 }
  0xf1   :  { %5149 = vmatpush.bf16.msra.mxu3 %v7244_v17  ;;  %v10161_v55 = vld [vmem:[#allocation5 + $0x64] sm:$0xf]  ;;  %v6809_v56 = vld [vmem:[#allocation5 + $0x70] sm:$0xf0]  ;;  %v7212_v60 = vor.u32 %v10261_v49, %v7209_v50  ;;  %v4873_v50 = vpop.f32.mrf.mxu1 }
  0xf2   :  { %5111 = vmatpush.bf16.msra.mxu0 %v6844_v35  ;;  %v10193_v57 = vld [vmem:[#allocation5 + $0x164] sm:$0xf]  ;;  %v6937_v62 = vld [vmem:[#allocation5 + $0x170] sm:$0xf0]  ;;  %v6812_v7 = vor.u32 %v10161_v55, %v6809_v56  ;;  %v4897_v35 = vpop.f32.mrf.mxu3 }
  0xf3   :  { %5124 = vmatpush.bf16.msra.mxu1 %v6972_v39  ;;  %v10225_v63 = vld [vmem:[#allocation5 + $0x264] sm:$0xf]  ;;  %v7065_v0 = vld [vmem:[#allocation5 + $0x270] sm:$0xf0]  ;;  %v6940_v10 = vor.u32 %v10193_v57, %v6937_v62  ;;  %v11404_v43 = vadd.f32 %v4897_v35, %v4885_v33 }
  0xf4   :  { %5137 = vmatpush.bf16.msra.mxu2 %v7100_v41  ;;  %v10257_v3 = vld [vmem:[#allocation5 + $0x364] sm:$0xf]  ;;  %v7193_v4 = vld [vmem:[#allocation5 + $0x370] sm:$0xf0]  ;;  %v7068_v11 = vor.u32 %v10225_v63, %v7065_v0 }
  0xf5   :  { %5150 = vmatpush.bf16.msra.mxu3 %v7228_v45  ;;  %v10157_v14 = vld [vmem:[#allocation5 + $0x44] sm:$0xf]  ;;  %v6793_v16 = vld [vmem:[#allocation5 + $0x50] sm:$0xf0]  ;;  %v7196_v12 = vor.u32 %v10257_v3, %v7193_v4  ;;  %v4886_v4 = vpop.f32.mrf.mxu2 }
  0xf6   :  { %5112 = vmatpush.bf16.msra.mxu0 %v6828_v51  ;;  %v10189_v17 = vld [vmem:[#allocation5 + $0x144] sm:$0xf]  ;;  %v6921_v28 = vld [vmem:[#allocation5 + $0x150] sm:$0xf0]  ;;  %v6796_v42 = vor.u32 %v10157_v14, %v6793_v16 }
  0xf7   :  { %5125 = vmatpush.bf16.msra.mxu1 %v6956_v53  ;;  %v10221_v29 = vld [vmem:[#allocation5 + $0x244] sm:$0xf]  ;;  %v7049_v30 = vld [vmem:[#allocation5 + $0x250] sm:$0xf0]  ;;  %v6924_v45 = vor.u32 %v10189_v17, %v6921_v28 }
  0xf8   :  { %5138 = vmatpush.bf16.msra.mxu2 %v7084_v54  ;;  %v10253_v39 = vld [vmem:[#allocation5 + $0x344] sm:$0xf]  ;;  %v7177_v41 = vld [vmem:[#allocation5 + $0x350] sm:$0xf0]  ;;  %v7052_v46 = vor.u32 %v10221_v29, %v7049_v30 }
  0xf9   :  { %5151 = vmatpush.bf16.msra.mxu3 %v7212_v60  ;;  %v10153_v47 = vld [vmem:[#allocation5 + $0x24] sm:$0xf]  ;;  %v6777_v48 = vld [vmem:[#allocation5 + $0x30] sm:$0xf0]  ;;  %v7180_v51 = vor.u32 %v10253_v39, %v7177_v41 }
  0xfa   :  { %5113 = vmatpush.bf16.msra.mxu0 %v6812_v7  ;;  %v10185_v49 = vld [vmem:[#allocation5 + $0x124] sm:$0xf]  ;;  %v6905_v52 = vld [vmem:[#allocation5 + $0x130] sm:$0xf0]  ;;  %v6780_v57 = vor.u32 %v10153_v47, %v6777_v48  ;;  %v4899_v14 = vpop.f32.mrf.mxu3 }
  0xfb   :  { %5126 = vmatpush.bf16.msra.mxu1 %v6940_v10  ;;  %v10217_v53 = vld [vmem:[#allocation5 + $0x224] sm:$0xf]  ;;  %v7033_v54 = vld [vmem:[#allocation5 + $0x230] sm:$0xf0]  ;;  %v6908_v60 = vor.u32 %v10185_v49, %v6905_v52 }
  0xfc   :  { %5139 = vmatpush.bf16.msra.mxu2 %v7068_v11  ;;  %v10249_v55 = vld [vmem:[#allocation5 + $0x324] sm:$0xf]  ;;  %v7161_v56 = vld [vmem:[#allocation5 + $0x330] sm:$0xf0]  ;;  %v7036_v62 = vor.u32 %v10217_v53, %v7033_v54 }
  0xfd   :  { %5152 = vmatpush.bf16.msra.mxu3 %v7196_v12  ;;  %v10149_v58 = vld [vmem:[#allocation5 + $0x4] sm:$0xf]  ;;  %v6761_v59 = vld [vmem:[#allocation5 + $0x10] sm:$0xf0]  ;;  %v7164_v6 = vor.u32 %v10249_v55, %v7161_v56 }
  0xfe   :  { %5114 = vmatpush.bf16.msra.mxu0 %v6796_v42  ;;  %v10181_v63 = vld [vmem:[#allocation5 + $0x104] sm:$0xf]  ;;  %v6889_v0 = vld [vmem:[#allocation5 + $0x110] sm:$0xf0]  ;;  %v6764_v12 = vor.u32 %v10149_v58, %v6761_v59 }
  0xff   :  { %5127 = vmatpush.bf16.msra.mxu1 %v6924_v45  ;;  %v10213_v3 = vld [vmem:[#allocation5 + $0x204] sm:$0xf]  ;;  %v7017_v7 = vld [vmem:[#allocation5 + $0x210] sm:$0xf0]  ;;  %v6892_v33 = vor.u32 %v10181_v63, %v6889_v0 }
 0x100   :  { %5140 = vmatpush.bf16.msra.mxu2 %v7052_v46  ;;  %v10245_v10 = vld [vmem:[#allocation5 + $0x304] sm:$0xf]  ;;  %v7145_v11 = vld [vmem:[#allocation5 + $0x310] sm:$0xf0]  ;;  %v7020_v35 = vor.u32 %v10213_v3, %v7017_v7 }
 0x101   :  { %5153 = vmatpush.bf16.msra.mxu3 %v7180_v51  ;;  %v10305_v16 = vld [vmem:[#allocation5 + $0x4e4] sm:$0xf]  ;;  %v7385_v17 = vld [vmem:[#allocation5 + $0x4f0] sm:$0xf0]  ;;  %v7148_v42 = vor.u32 %v10245_v10, %v7145_v11 }
 0x102   :  { %v10337_v21 = vld [vmem:[#allocation5 + $0x5e4] sm:$0xf]  ;;  %5115 = vmatpush.bf16.msra.mxu0 %v6780_v57  ;;  %v7513_v28 = vld [vmem:[#allocation5 + $0x5f0] sm:$0xf0]  ;;  %v7388_v44 = vor.u32 %v10305_v16, %v7385_v17 }
 0x103   :  { %v10369_v29 = vld [vmem:[#allocation5 + $0x6e4] sm:$0xf]  ;;  %v7641_v30 = vld [vmem:[#allocation5 + $0x6f0] sm:$0xf0]  ;;  %5128 = vmatpush.bf16.msra.mxu1 %v6908_v60  ;;  %v7516_v45 = vor.u32 %v10337_v21, %v7513_v28 }
 0x104   :  { %5141 = vmatpush.bf16.msra.mxu2 %v7036_v62  ;;  %v10401_v39 = vld [vmem:[#allocation5 + $0x7e4] sm:$0xf]  ;;  %v7769_v41 = vld [vmem:[#allocation5 + $0x7f0] sm:$0xf0]  ;;  %v7644_v46 = vor.u32 %v10369_v29, %v7641_v30 }
 0x105   :  { %5154 = vmatpush.bf16.msra.mxu3 %v7164_v6  ;;  %v10301_v47 = vld [vmem:[#allocation5 + $0x4c4] sm:$0xf]  ;;  %v7369_v48 = vld [vmem:[#allocation5 + $0x4d0] sm:$0xf0]  ;;  %v7772_v50 = vor.u32 %v10401_v39, %v7769_v41 }
 0x106   :  { %v10333_v49 = vld [vmem:[#allocation5 + $0x5c4] sm:$0xf]  ;;  %5116 = vmatpush.bf16.msra.mxu0 %v6764_v12  ;;  %v7497_v51 = vld [vmem:[#allocation5 + $0x5d0] sm:$0xf0]  ;;  %v7372_v56 = vor.u32 %v10301_v47, %v7369_v48 }
 0x107   :  { %v10365_v52 = vld [vmem:[#allocation5 + $0x6c4] sm:$0xf]  ;;  %v7625_v53 = vld [vmem:[#allocation5 + $0x6d0] sm:$0xf0]  ;;  %5129 = vmatpush.bf16.msra.mxu1 %v6892_v33  ;;  %v7500_v57 = vor.u32 %v10333_v49, %v7497_v51  ;;  %v4910_v33 = vpop.f32.mrf.mxu0 }
 0x108   :  { %5142 = vmatpush.bf16.msra.mxu2 %v7020_v35  ;;  %v10397_v54 = vld [vmem:[#allocation5 + $0x7c4] sm:$0xf]  ;;  %v7753_v55 = vld [vmem:[#allocation5 + $0x7d0] sm:$0xf0]  ;;  %v7628_v58 = vor.u32 %v10365_v52, %v7625_v53  ;;  %v4911_v41 = vadd.f32 %v4910_v33, %v11404_v43 }
 0x109   :  { %5155 = vmatpush.bf16.msra.mxu3 %v7148_v42  ;;  %v10297_v59 = vld [vmem:[#allocation5 + $0x4a4] sm:$0xf]  ;;  %v7353_v60 = vld [vmem:[#allocation5 + $0x4b0] sm:$0xf0]  ;;  %v7756_v63 = vor.u32 %v10397_v54, %v7753_v55  ;;  %5117 = vmatmul.bf16.vlgmr.msra.gmra.mxu0 %v11331_v9 }
 0x10a   :  { %5161 = vmatpush.bf16.msrb.mxu0 %v7388_v44  ;;  %v10329_v62 = vld [vmem:[#allocation5 + $0x5a4] sm:$0xf]  ;;  %v7481_v0 = vld [vmem:[#allocation5 + $0x5b0] sm:$0xf0]  ;;  %v7356_v10 = vor.u32 %v10297_v59, %v7353_v60  ;;  %5130 = vmatmul.bf16.vlgmr.msra.gmra.mxu1 %v11338_v25  ;;  %v4923_v44 = vpop.f32.mrf.mxu1 }
 0x10b   :  { %5174 = vmatpush.bf16.msrb.mxu1 %v7516_v45  ;;  %v10361_v3 = vld [vmem:[#allocation5 + $0x6a4] sm:$0xf]  ;;  %v7609_v4 = vld [vmem:[#allocation5 + $0x6b0] sm:$0xf0]  ;;  %5143 = vmatmul.bf16.vlgmr.msra.gmra.mxu2 %v11329_v8  ;;  %v7484_v11 = vor.u32 %v10329_v62, %v7481_v0  ;;  %v4924_v51 = vadd.f32 %v4923_v44, %v4911_v41 }
 0x10c   :  { %5187 = vmatpush.bf16.msrb.mxu2 %v7644_v46  ;;  %v10393_v6 = vld [vmem:[#allocation5 + $0x7a4] sm:$0xf]  ;;  %v7737_v7 = vld [vmem:[#allocation5 + $0x7b0] sm:$0xf0]  ;;  %5156 = vmatmul.bf16.vlgmr.msra.gmra.mxu3 %v11333_v15  ;;  %v7612_v14 = vor.u32 %v10361_v3, %v7609_v4 }
 0x10d   :  { %5200 = vmatpush.bf16.msrb.mxu3 %v7772_v50  ;;  %v10293_v16 = vld [vmem:[#allocation5 + $0x484] sm:$0xf]  ;;  %v7337_v17 = vld [vmem:[#allocation5 + $0x490] sm:$0xf0]  ;;  %v7740_v12 = vor.u32 %v10393_v6, %v7737_v7  ;;  %v4936_v0 = vpop.f32.mrf.mxu2 }
 0x10e   :  { %5162 = vmatpush.bf16.msrb.mxu0 %v7372_v56  ;;  %v10325_v21 = vld [vmem:[#allocation5 + $0x584] sm:$0xf]  ;;  %v7465_v28 = vld [vmem:[#allocation5 + $0x590] sm:$0xf0]  ;;  %v7340_v42 = vor.u32 %v10293_v16, %v7337_v17  ;;  %v4937_v7 = vadd.f32 %v4936_v0, %v4924_v51 }
 0x10f   :  { %5175 = vmatpush.bf16.msrb.mxu1 %v7500_v57  ;;  %v10357_v29 = vld [vmem:[#allocation5 + $0x684] sm:$0xf]  ;;  %v7593_v30 = vld [vmem:[#allocation5 + $0x690] sm:$0xf0]  ;;  %v7468_v45 = vor.u32 %v10325_v21, %v7465_v28  ;;  %v4912_v16 = vpop.f32.mrf.mxu0 }
 0x110   :  { %5188 = vmatpush.bf16.msrb.mxu2 %v7628_v58  ;;  %v10389_v35 = vld [vmem:[#allocation5 + $0x784] sm:$0xf]  ;;  %v7721_v39 = vld [vmem:[#allocation5 + $0x790] sm:$0xf0]  ;;  %v7596_v46 = vor.u32 %v10357_v29, %v7593_v30 }
 0x111   :  { %5201 = vmatpush.bf16.msrb.mxu3 %v7756_v63  ;;  %v10289_v47 = vld [vmem:[#allocation5 + $0x464] sm:$0xf]  ;;  %v7321_v48 = vld [vmem:[#allocation5 + $0x470] sm:$0xf0]  ;;  %v7724_v50 = vor.u32 %v10389_v35, %v7721_v39 }
 0x112   :  { %5163 = vmatpush.bf16.msrb.mxu0 %v7356_v10  ;;  %v10321_v49 = vld [vmem:[#allocation5 + $0x564] sm:$0xf]  ;;  %v7449_v52 = vld [vmem:[#allocation5 + $0x570] sm:$0xf0]  ;;  %v7324_v57 = vor.u32 %v10289_v47, %v7321_v48  ;;  %v4949_v10 = vpop.f32.mrf.mxu3  ;;  %v4925_v21 = vpop.f32.mrf.mxu1 }
 0x113   :  { %5176 = vmatpush.bf16.msrb.mxu1 %v7484_v11  ;;  %v10353_v53 = vld [vmem:[#allocation5 + $0x664] sm:$0xf]  ;;  %v7577_v54 = vld [vmem:[#allocation5 + $0x670] sm:$0xf0]  ;;  %v7452_v43 = vor.u32 %v10321_v49, %v7449_v52 }
 0x114   :  { %5189 = vmatpush.bf16.msrb.mxu2 %v7612_v14  ;;  %v10385_v55 = vld [vmem:[#allocation5 + $0x764] sm:$0xf]  ;;  %v7705_v56 = vld [vmem:[#allocation5 + $0x770] sm:$0xf0]  ;;  %v7580_v58 = vor.u32 %v10353_v53, %v7577_v54 }
 0x115   :  { %5202 = vmatpush.bf16.msrb.mxu3 %v7740_v12  ;;  %v10285_v59 = vld [vmem:[#allocation5 + $0x444] sm:$0xf]  ;;  %v7305_v60 = vld [vmem:[#allocation5 + $0x450] sm:$0xf0]  ;;  %v7708_v63 = vor.u32 %v10385_v55, %v7705_v56  ;;  %v11411_v12 = vadd.f32 %v4949_v10, %v4937_v7 }
 0x116   :  { %5164 = vmatpush.bf16.msrb.mxu0 %v7340_v42  ;;  %v10317_v62 = vld [vmem:[#allocation5 + $0x544] sm:$0xf]  ;;  %v7433_v3 = vld [vmem:[#allocation5 + $0x550] sm:$0xf0]  ;;  %v7308_v17 = vor.u32 %v10285_v59, %v7305_v60 }
 0x117   :  { %5177 = vmatpush.bf16.msrb.mxu1 %v7468_v45  ;;  %v10349_v4 = vld [vmem:[#allocation5 + $0x644] sm:$0xf]  ;;  %v7561_v6 = vld [vmem:[#allocation5 + $0x650] sm:$0xf0]  ;;  %v7436_v28 = vor.u32 %v10317_v62, %v7433_v3 }
 0x118   :  { %5190 = vmatpush.bf16.msrb.mxu2 %v7596_v46  ;;  %v10381_v11 = vld [vmem:[#allocation5 + $0x744] sm:$0xf]  ;;  %v7689_v14 = vld [vmem:[#allocation5 + $0x750] sm:$0xf0]  ;;  %v7564_v29 = vor.u32 %v10349_v4, %v7561_v6 }
 0x119   :  { %5203 = vmatpush.bf16.msrb.mxu3 %v7724_v50  ;;  %v10281_v30 = vld [vmem:[#allocation5 + $0x424] sm:$0xf]  ;;  %v7289_v33 = vld [vmem:[#allocation5 + $0x430] sm:$0xf0]  ;;  %v7692_v39 = vor.u32 %v10381_v11, %v7689_v14 }
 0x11a   :  { %5165 = vmatpush.bf16.msrb.mxu0 %v7324_v57  ;;  %v10313_v35 = vld [vmem:[#allocation5 + $0x524] sm:$0xf]  ;;  %v7417_v41 = vld [vmem:[#allocation5 + $0x530] sm:$0xf0]  ;;  %v7292_v47 = vor.u32 %v10281_v30, %v7289_v33 }
 0x11b   :  { %5178 = vmatpush.bf16.msrb.mxu1 %v7452_v43  ;;  %v10345_v42 = vld [vmem:[#allocation5 + $0x624] sm:$0xf]  ;;  %v7545_v44 = vld [vmem:[#allocation5 + $0x630] sm:$0xf0]  ;;  %v7420_v50 = vor.u32 %v10313_v35, %v7417_v41 }
 0x11c   :  { %5191 = vmatpush.bf16.msrb.mxu2 %v7580_v58  ;;  %v10377_v45 = vld [vmem:[#allocation5 + $0x724] sm:$0xf]  ;;  %v7673_v46 = vld [vmem:[#allocation5 + $0x730] sm:$0xf0]  ;;  %v7548_v51 = vor.u32 %v10345_v42, %v7545_v44  ;;  %v4938_v58 = vpop.f32.mrf.mxu2 }
 0x11d   :  { %5204 = vmatpush.bf16.msrb.mxu3 %v7708_v63  ;;  %v10277_v48 = vld [vmem:[#allocation5 + $0x404] sm:$0xf]  ;;  %v7273_v49 = vld [vmem:[#allocation5 + $0x410] sm:$0xf0]  ;;  %v7676_v55 = vor.u32 %v10377_v45, %v7673_v46  ;;  %v4951_v63 = vpop.f32.mrf.mxu3 }
 0x11e   :  { %5166 = vmatpush.bf16.msrb.mxu0 %v7308_v17  ;;  %v10309_v52 = vld [vmem:[#allocation5 + $0x504] sm:$0xf]  ;;  %v7401_v53 = vld [vmem:[#allocation5 + $0x510] sm:$0xf0]  ;;  %v7276_v0 = vor.u32 %v10277_v48, %v7273_v49 }
 0x11f   :  { %5179 = vmatpush.bf16.msrb.mxu1 %v7436_v28  ;;  %v10341_v54 = vld [vmem:[#allocation5 + $0x604] sm:$0xf]  ;;  %v7529_v56 = vld [vmem:[#allocation5 + $0x610] sm:$0xf0]  ;;  %v7404_v7 = vor.u32 %v10309_v52, %v7401_v53 }
 0x120   :  { %5192 = vmatpush.bf16.msrb.mxu2 %v7564_v29  ;;  %v10373_v57 = vld [vmem:[#allocation5 + $0x704] sm:$0xf]  ;;  %v7657_v43 = vld [vmem:[#allocation5 + $0x710] sm:$0xf0]  ;;  %v7532_v10 = vor.u32 %v10341_v54, %v7529_v56 }
 0x121   :  { %5205 = vmatpush.bf16.msrb.mxu3 %v7692_v39  ;;  %v10433_v59 = vld [vmem:[#allocation5 + $0x8e4] sm:$0xf]  ;;  %v7897_v60 = vld [vmem:[#allocation5 + $0x8f0] sm:$0xf0]  ;;  %v7660_v16 = vor.u32 %v10373_v57, %v7657_v43 }
 0x122   :  { %v10465_v62 = vld [vmem:[#allocation5 + $0x9e4] sm:$0xf]  ;;  %5167 = vmatpush.bf16.msrb.mxu0 %v7292_v47  ;;  %v8025_v3 = vld [vmem:[#allocation5 + $0x9f0] sm:$0xf0]  ;;  %v7900_v17 = vor.u32 %v10433_v59, %v7897_v60 }
 0x123   :  { %v10497_v4 = vld [vmem:[#allocation5 + $0xae4] sm:$0xf]  ;;  %v8153_v6 = vld [vmem:[#allocation5 + $0xaf0] sm:$0xf0]  ;;  %5180 = vmatpush.bf16.msrb.mxu1 %v7420_v50  ;;  %v8028_v21 = vor.u32 %v10465_v62, %v8025_v3 }
 0x124   :  { %5193 = vmatpush.bf16.msrb.mxu2 %v7548_v51  ;;  %v10529_v11 = vld [vmem:[#allocation5 + $0xbe4] sm:$0xf]  ;;  %v8281_v14 = vld [vmem:[#allocation5 + $0xbf0] sm:$0xf0]  ;;  %v8156_v28 = vor.u32 %v10497_v4, %v8153_v6 }
 0x125   :  { %5206 = vmatpush.bf16.msrb.mxu3 %v7676_v55  ;;  %v10429_v29 = vld [vmem:[#allocation5 + $0x8c4] sm:$0xf]  ;;  %v7881_v30 = vld [vmem:[#allocation5 + $0x8d0] sm:$0xf0]  ;;  %v8284_v35 = vor.u32 %v10529_v11, %v8281_v14 }
 0x126   :  { %v10461_v33 = vld [vmem:[#allocation5 + $0x9c4] sm:$0xf]  ;;  %5168 = vmatpush.bf16.msrb.mxu0 %v7276_v0  ;;  %v8009_v39 = vld [vmem:[#allocation5 + $0x9d0] sm:$0xf0]  ;;  %v7884_v46 = vor.u32 %v10429_v29, %v7881_v30 }
 0x127   :  { %v10493_v41 = vld [vmem:[#allocation5 + $0xac4] sm:$0xf]  ;;  %v8137_v42 = vld [vmem:[#allocation5 + $0xad0] sm:$0xf0]  ;;  %5181 = vmatpush.bf16.msrb.mxu1 %v7404_v7  ;;  %v8012_v47 = vor.u32 %v10461_v33, %v8009_v39 }
 0x128   :  { %5194 = vmatpush.bf16.msrb.mxu2 %v7532_v10  ;;  %v10525_v44 = vld [vmem:[#allocation5 + $0xbc4] sm:$0xf]  ;;  %v8265_v45 = vld [vmem:[#allocation5 + $0xbd0] sm:$0xf0]  ;;  %v8140_v48 = vor.u32 %v10493_v41, %v8137_v42  ;;  %v4962_v7 = vpop.f32.mrf.mxu0 }
 0x129   :  { %5207 = vmatpush.bf16.msrb.mxu3 %v7660_v16  ;;  %v10425_v49 = vld [vmem:[#allocation5 + $0x8a4] sm:$0xf]  ;;  %v7865_v50 = vld [vmem:[#allocation5 + $0x8b0] sm:$0xf0]  ;;  %v8268_v52 = vor.u32 %v10525_v44, %v8265_v45  ;;  %5169 = vmatmul.bf16.vlgmr.msrb.gmra.mxu0 %v11343_v37  ;;  %v4963_v14 = vadd.f32 %v4962_v7, %v11411_v12 }
 0x12a   :  { %5213 = vmatpush.bf16.msra.mxu0 %v7900_v17  ;;  %v10457_v51 = vld [vmem:[#allocation5 + $0x9a4] sm:$0xf]  ;;  %v7993_v53 = vld [vmem:[#allocation5 + $0x9b0] sm:$0xf0]  ;;  %v7868_v43 = vor.u32 %v10425_v49, %v7865_v50  ;;  %5182 = vmatmul.bf16.vlgmr.msrb.gmra.mxu1 %v11347_v40  ;;  %v4975_v17 = vpop.f32.mrf.mxu1 }
 0x12b   :  { %5226 = vmatpush.bf16.msra.mxu1 %v8028_v21  ;;  %5195 = vmatmul.bf16.vlgmr.msrb.gmra.mxu2 %v11341_v34  ;;  %v10489_v54 = vld [vmem:[#allocation5 + $0xaa4] sm:$0xf]  ;;  %v8121_v55 = vld [vmem:[#allocation5 + $0xab0] sm:$0xf0]  ;;  %v7996_v58 = vor.u32 %v10457_v51, %v7993_v53  ;;  %v4976_v39 = vadd.f32 %v4975_v17, %v4963_v14 }
 0x12c   :  { %5239 = vmatpush.bf16.msra.mxu2 %v8156_v28  ;;  %v10521_v56 = vld [vmem:[#allocation5 + $0xba4] sm:$0xf]  ;;  %v8249_v57 = vld [vmem:[#allocation5 + $0xbb0] sm:$0xf0]  ;;  %5208 = vmatmul.bf16.vlgmr.msrb.gmra.mxu3 %v11345_v38  ;;  %v8124_v59 = vor.u32 %v10489_v54, %v8121_v55 }
 0x12d   :  { %5252 = vmatpush.bf16.msra.mxu3 %v8284_v35  ;;  %v10421_v60 = vld [vmem:[#allocation5 + $0x884] sm:$0xf]  ;;  %v7849_v62 = vld [vmem:[#allocation5 + $0x890] sm:$0xf0]  ;;  %v8252_v0 = vor.u32 %v10521_v56, %v8249_v57 }
 0x12e   :  { %5214 = vmatpush.bf16.msra.mxu0 %v7884_v46  ;;  %v10453_v63 = vld [vmem:[#allocation5 + $0x984] sm:$0xf]  ;;  %v7977_v3 = vld [vmem:[#allocation5 + $0x990] sm:$0xf0]  ;;  %v7852_v16 = vor.u32 %v10421_v60, %v7849_v62  ;;  %v4988_v53 = vpop.f32.mrf.mxu2 }
 0x12f   :  { %5227 = vmatpush.bf16.msra.mxu1 %v8012_v47  ;;  %v10485_v4 = vld [vmem:[#allocation5 + $0xa84] sm:$0xf]  ;;  %v8105_v6 = vld [vmem:[#allocation5 + $0xa90] sm:$0xf0]  ;;  %v7980_v21 = vor.u32 %v10453_v63, %v7977_v3  ;;  %v4989_v57 = vadd.f32 %v4988_v53, %v4976_v39 }
 0x130   :  { %5240 = vmatpush.bf16.msra.mxu2 %v8140_v48  ;;  %v10517_v10 = vld [vmem:[#allocation5 + $0xb84] sm:$0xf]  ;;  %v8233_v11 = vld [vmem:[#allocation5 + $0xb90] sm:$0xf0]  ;;  %v8108_v28 = vor.u32 %v10485_v4, %v8105_v6  ;;  %v4964_v60 = vpop.f32.mrf.mxu0 }
 0x131   :  { %5253 = vmatpush.bf16.msra.mxu3 %v8268_v52  ;;  %v10417_v29 = vld [vmem:[#allocation5 + $0x864] sm:$0xf]  ;;  %v7833_v30 = vld [vmem:[#allocation5 + $0x870] sm:$0xf0]  ;;  %v8236_v35 = vor.u32 %v10517_v10, %v8233_v11 }
 0x132   :  { %5215 = vmatpush.bf16.msra.mxu0 %v7868_v43  ;;  %v10449_v33 = vld [vmem:[#allocation5 + $0x964] sm:$0xf]  ;;  %v7961_v41 = vld [vmem:[#allocation5 + $0x970] sm:$0xf0]  ;;  %v7836_v47 = vor.u32 %v10417_v29, %v7833_v30  ;;  %v5001_v43 = vpop.f32.mrf.mxu3  ;;  %v4977_v63 = vpop.f32.mrf.mxu1 }
 0x133   :  { %5228 = vmatpush.bf16.msra.mxu1 %v7996_v58  ;;  %v10481_v42 = vld [vmem:[#allocation5 + $0xa64] sm:$0xf]  ;;  %v8089_v44 = vld [vmem:[#allocation5 + $0xa70] sm:$0xf0]  ;;  %v7964_v12 = vor.u32 %v10449_v33, %v7961_v41 }
 0x134   :  { %5241 = vmatpush.bf16.msra.mxu2 %v8124_v59  ;;  %v10513_v45 = vld [vmem:[#allocation5 + $0xb64] sm:$0xf]  ;;  %v8217_v46 = vld [vmem:[#allocation5 + $0xb70] sm:$0xf0]  ;;  %v8092_v48 = vor.u32 %v10481_v42, %v8089_v44 }
 0x135   :  { %5254 = vmatpush.bf16.msra.mxu3 %v8252_v0  ;;  %v10413_v49 = vld [vmem:[#allocation5 + $0x844] sm:$0xf]  ;;  %v7817_v50 = vld [vmem:[#allocation5 + $0x850] sm:$0xf0]  ;;  %v8220_v52 = vor.u32 %v10513_v45, %v8217_v46  ;;  %v11418_v0 = vadd.f32 %v5001_v43, %v4989_v57 }
 0x136   :  { %5216 = vmatpush.bf16.msra.mxu0 %v7852_v16  ;;  %v10445_v51 = vld [vmem:[#allocation5 + $0x944] sm:$0xf]  ;;  %v7945_v54 = vld [vmem:[#allocation5 + $0x950] sm:$0xf0]  ;;  %v7820_v62 = vor.u32 %v10413_v49, %v7817_v50 }
 0x137   :  { %5229 = vmatpush.bf16.msra.mxu1 %v7980_v21  ;;  %v10477_v55 = vld [vmem:[#allocation5 + $0xa44] sm:$0xf]  ;;  %v8073_v56 = vld [vmem:[#allocation5 + $0xa50] sm:$0xf0]  ;;  %v7948_v3 = vor.u32 %v10445_v51, %v7945_v54 }
 0x138   :  { %5242 = vmatpush.bf16.msra.mxu2 %v8108_v28  ;;  %v10509_v58 = vld [vmem:[#allocation5 + $0xb44] sm:$0xf]  ;;  %v8201_v59 = vld [vmem:[#allocation5 + $0xb50] sm:$0xf0]  ;;  %v8076_v4 = vor.u32 %v10477_v55, %v8073_v56 }
 0x139   :  { %5255 = vmatpush.bf16.msra.mxu3 %v8236_v35  ;;  %v10409_v6 = vld [vmem:[#allocation5 + $0x824] sm:$0xf]  ;;  %v7801_v7 = vld [vmem:[#allocation5 + $0x830] sm:$0xf0]  ;;  %v8204_v11 = vor.u32 %v10509_v58, %v8201_v59 }
 0x13a   :  { %5217 = vmatpush.bf16.msra.mxu0 %v7836_v47  ;;  %v10441_v10 = vld [vmem:[#allocation5 + $0x924] sm:$0xf]  ;;  %v7929_v14 = vld [vmem:[#allocation5 + $0x930] sm:$0xf0]  ;;  %v7804_v29 = vor.u32 %v10409_v6, %v7801_v7 }
 0x13b   :  { %5230 = vmatpush.bf16.msra.mxu1 %v7964_v12  ;;  %v10473_v16 = vld [vmem:[#allocation5 + $0xa24] sm:$0xf]  ;;  %v8057_v17 = vld [vmem:[#allocation5 + $0xa30] sm:$0xf0]  ;;  %v7932_v35 = vor.u32 %v10441_v10, %v7929_v14 }
 0x13c   :  { %5243 = vmatpush.bf16.msra.mxu2 %v8092_v48  ;;  %v10505_v21 = vld [vmem:[#allocation5 + $0xb24] sm:$0xf]  ;;  %v8185_v28 = vld [vmem:[#allocation5 + $0xb30] sm:$0xf0]  ;;  %v8060_v39 = vor.u32 %v10473_v16, %v8057_v17  ;;  %v4990_v48 = vpop.f32.mrf.mxu2 }
 0x13d   :  { %5256 = vmatpush.bf16.msra.mxu3 %v8220_v52  ;;  %v10405_v30 = vld [vmem:[#allocation5 + $0x804] sm:$0xf]  ;;  %v7785_v33 = vld [vmem:[#allocation5 + $0x810] sm:$0xf0]  ;;  %v8188_v45 = vor.u32 %v10505_v21, %v8185_v28  ;;  %v5003_v52 = vpop.f32.mrf.mxu3 }
 0x13e   :  { %5218 = vmatpush.bf16.msra.mxu0 %v7820_v62  ;;  %v10437_v41 = vld [vmem:[#allocation5 + $0x904] sm:$0xf]  ;;  %v7913_v42 = vld [vmem:[#allocation5 + $0x910] sm:$0xf0]  ;;  %v7788_v53 = vor.u32 %v10405_v30, %v7785_v33 }
 0x13f   :  { %5231 = vmatpush.bf16.msra.mxu1 %v7948_v3  ;;  %v10469_v44 = vld [vmem:[#allocation5 + $0xa04] sm:$0xf]  ;;  %v8041_v46 = vld [vmem:[#allocation5 + $0xa10] sm:$0xf0]  ;;  %v7916_v57 = vor.u32 %v10437_v41, %v7913_v42 }
 0x140   :  { %5244 = vmatpush.bf16.msra.mxu2 %v8076_v4  ;;  %v10501_v47 = vld [vmem:[#allocation5 + $0xb04] sm:$0xf]  ;;  %v8169_v12 = vld [vmem:[#allocation5 + $0xb10] sm:$0xf0]  ;;  %v8044_v43 = vor.u32 %v10469_v44, %v8041_v46 }
 0x141   :  { %5257 = vmatpush.bf16.msra.mxu3 %v8204_v11  ;;  %v10561_v49 = vld [vmem:[#allocation5 + $0xce4] sm:$0xf]  ;;  %v8409_v50 = vld [vmem:[#allocation5 + $0xcf0] sm:$0xf0]  ;;  %v8172_v60 = vor.u32 %v10501_v47, %v8169_v12 }
 0x142   :  { %v10593_v51 = vld [vmem:[#allocation5 + $0xde4] sm:$0xf]  ;;  %5219 = vmatpush.bf16.msra.mxu0 %v7804_v29  ;;  %v8537_v54 = vld [vmem:[#allocation5 + $0xdf0] sm:$0xf0]  ;;  %v8412_v62 = vor.u32 %v10561_v49, %v8409_v50 }
 0x143   :  { %v10625_v55 = vld [vmem:[#allocation5 + $0xee4] sm:$0xf]  ;;  %v8665_v56 = vld [vmem:[#allocation5 + $0xef0] sm:$0xf0]  ;;  %5232 = vmatpush.bf16.msra.mxu1 %v7932_v35  ;;  %v8540_v63 = vor.u32 %v10593_v51, %v8537_v54 }
 0x144   :  { %5245 = vmatpush.bf16.msra.mxu2 %v8060_v39  ;;  %v10657_v58 = vld [vmem:[#allocation5 + $0xfe4] sm:$0xf]  ;;  %v8793_v59 = vld [vmem:[#allocation5 + $0xff0] sm:$0xf0]  ;;  %v8668_v3 = vor.u32 %v10625_v55, %v8665_v56 }
 0x145   :  { %5258 = vmatpush.bf16.msra.mxu3 %v8188_v45  ;;  %v10557_v4 = vld [vmem:[#allocation5 + $0xcc4] sm:$0xf]  ;;  %v8393_v6 = vld [vmem:[#allocation5 + $0xcd0] sm:$0xf0]  ;;  %v8796_v10 = vor.u32 %v10657_v58, %v8793_v59 }
 0x146   :  { %v10589_v7 = vld [vmem:[#allocation5 + $0xdc4] sm:$0xf]  ;;  %5220 = vmatpush.bf16.msra.mxu0 %v7788_v53  ;;  %v8521_v11 = vld [vmem:[#allocation5 + $0xdd0] sm:$0xf0]  ;;  %v8396_v28 = vor.u32 %v10557_v4, %v8393_v6 }
 0x147   :  { %v10621_v14 = vld [vmem:[#allocation5 + $0xec4] sm:$0xf]  ;;  %v8649_v16 = vld [vmem:[#allocation5 + $0xed0] sm:$0xf0]  ;;  %5233 = vmatpush.bf16.msra.mxu1 %v7916_v57  ;;  %v8524_v29 = vor.u32 %v10589_v7, %v8521_v11 }
 0x148   :  { %5246 = vmatpush.bf16.msra.mxu2 %v8044_v43  ;;  %v10653_v17 = vld [vmem:[#allocation5 + $0xfc4] sm:$0xf]  ;;  %v8777_v21 = vld [vmem:[#allocation5 + $0xfd0] sm:$0xf0]  ;;  %v8652_v30 = vor.u32 %v10621_v14, %v8649_v16 }
 0x149   :  { %5259 = vmatpush.bf16.msra.mxu3 %v8172_v60  ;;  %v10553_v33 = vld [vmem:[#allocation5 + $0xca4] sm:$0xf]  ;;  %v8377_v35 = vld [vmem:[#allocation5 + $0xcb0] sm:$0xf0]  ;;  %5221 = vmatmul.bf16.vlgmr.msra.gmra.mxu0 %v11353_v18  ;;  %v8780_v41 = vor.u32 %v10653_v17, %v8777_v21  ;;  %v5014_v57 = vpop.f32.mrf.mxu0 }
 0x14a   :  { %5265 = vmatpush.bf16.msrb.mxu0 %v8412_v62  ;;  %v10585_v39 = vld [vmem:[#allocation5 + $0xda4] sm:$0xf]  ;;  %v8505_v42 = vld [vmem:[#allocation5 + $0xdb0] sm:$0xf0]  ;;  %5234 = vmatmul.bf16.vlgmr.msra.gmra.mxu1 %v11357_v23  ;;  %v8380_v12 = vor.u32 %v10553_v33, %v8377_v35  ;;  %v5015_v59 = vadd.f32 %v5014_v57, %v11418_v0  ;;  %v5027_v62 = vpop.f32.mrf.mxu1 }
 0x14b   :  { %5278 = vmatpush.bf16.msrb.mxu1 %v8540_v63  ;;  %v10617_v44 = vld [vmem:[#allocation5 + $0xea4] sm:$0xf]  ;;  %v8633_v45 = vld [vmem:[#allocation5 + $0xeb0] sm:$0xf0]  ;;  %5247 = vmatmul.bf16.vlgmr.msra.gmra.mxu2 %v11355_v22  ;;  %v8508_v48 = vor.u32 %v10585_v39, %v8505_v42 }
 0x14c   :  { %5291 = vmatpush.bf16.msrb.mxu2 %v8668_v3  ;;  %v10649_v46 = vld [vmem:[#allocation5 + $0xfa4] sm:$0xf]  ;;  %v8761_v47 = vld [vmem:[#allocation5 + $0xfb0] sm:$0xf0]  ;;  %5260 = vmatmul.bf16.vlgmr.msra.gmra.mxu3 %v11359_v27  ;;  %v8636_v49 = vor.u32 %v10617_v44, %v8633_v45  ;;  %v5028_v11 = vadd.f32 %v5027_v62, %v5015_v59 }
 0x14d   :  { %5304 = vmatpush.bf16.msrb.mxu3 %v8796_v10  ;;  %v10549_v50 = vld [vmem:[#allocation5 + $0xc84] sm:$0xf]  ;;  %v8361_v51 = vld [vmem:[#allocation5 + $0xc90] sm:$0xf0]  ;;  %v8764_v53 = vor.u32 %v10649_v46, %v8761_v47 }
 0x14e   :  { %5266 = vmatpush.bf16.msrb.mxu0 %v8396_v28  ;;  %v10581_v52 = vld [vmem:[#allocation5 + $0xd84] sm:$0xf]  ;;  %v8489_v54 = vld [vmem:[#allocation5 + $0xd90] sm:$0xf0]  ;;  %v8364_v60 = vor.u32 %v10549_v50, %v8361_v51 }
 0x14f   :  { %5279 = vmatpush.bf16.msrb.mxu1 %v8524_v29  ;;  %v10613_v55 = vld [vmem:[#allocation5 + $0xe84] sm:$0xf]  ;;  %v8617_v56 = vld [vmem:[#allocation5 + $0xe90] sm:$0xf0]  ;;  %v8492_v63 = vor.u32 %v10581_v52, %v8489_v54  ;;  %v5040_v42 = vpop.f32.mrf.mxu2 }
 0x150   :  { %5292 = vmatpush.bf16.msrb.mxu2 %v8652_v30  ;;  %v10645_v43 = vld [vmem:[#allocation5 + $0xf84] sm:$0xf]  ;;  %v8745_v58 = vld [vmem:[#allocation5 + $0xf90] sm:$0xf0]  ;;  %v8620_v3 = vor.u32 %v10613_v55, %v8617_v56  ;;  %v5041_v47 = vadd.f32 %v5040_v42, %v5028_v11 }
 0x151   :  { %5305 = vmatpush.bf16.msrb.mxu3 %v8780_v41  ;;  %v10545_v4 = vld [vmem:[#allocation5 + $0xc64] sm:$0xf]  ;;  %v8345_v6 = vld [vmem:[#allocation5 + $0xc70] sm:$0xf0]  ;;  %v8748_v10 = vor.u32 %v10645_v43, %v8745_v58  ;;  %v5016_v50 = vpop.f32.mrf.mxu0 }
 0x152   :  { %5267 = vmatpush.bf16.msrb.mxu0 %v8380_v12  ;;  %v10577_v7 = vld [vmem:[#allocation5 + $0xd64] sm:$0xf]  ;;  %v8473_v14 = vld [vmem:[#allocation5 + $0xd70] sm:$0xf0]  ;;  %v8348_v29 = vor.u32 %v10545_v4, %v8345_v6  ;;  %v5053_v12 = vpop.f32.mrf.mxu3  ;;  %v5029_v52 = vpop.f32.mrf.mxu1 }
 0x153   :  { %5280 = vmatpush.bf16.msrb.mxu1 %v8508_v48  ;;  %v10609_v16 = vld [vmem:[#allocation5 + $0xe64] sm:$0xf]  ;;  %v8601_v17 = vld [vmem:[#allocation5 + $0xe70] sm:$0xf0]  ;;  %v8476_v0 = vor.u32 %v10577_v7, %v8473_v14 }
 0x154   :  { %5293 = vmatpush.bf16.msrb.mxu2 %v8636_v49  ;;  %v10641_v21 = vld [vmem:[#allocation5 + $0xf64] sm:$0xf]  ;;  %v8729_v28 = vld [vmem:[#allocation5 + $0xf70] sm:$0xf0]  ;;  %v8604_v30 = vor.u32 %v10609_v16, %v8601_v17 }
 0x155   :  { %5306 = vmatpush.bf16.msrb.mxu3 %v8764_v53  ;;  %v10541_v33 = vld [vmem:[#allocation5 + $0xc44] sm:$0xf]  ;;  %v8329_v35 = vld [vmem:[#allocation5 + $0xc50] sm:$0xf0]  ;;  %v8732_v41 = vor.u32 %v10641_v21, %v8729_v28  ;;  %v11425_v53 = vadd.f32 %v5053_v12, %v5041_v47 }
 0x156   :  { %5268 = vmatpush.bf16.msrb.mxu0 %v8364_v60  ;;  %v10573_v39 = vld [vmem:[#allocation5 + $0xd44] sm:$0xf]  ;;  %v8457_v44 = vld [vmem:[#allocation5 + $0xd50] sm:$0xf0]  ;;  %v8332_v51 = vor.u32 %v10541_v33, %v8329_v35 }
 0x157   :  { %5281 = vmatpush.bf16.msrb.mxu1 %v8492_v63  ;;  %v10605_v45 = vld [vmem:[#allocation5 + $0xe44] sm:$0xf]  ;;  %v8585_v46 = vld [vmem:[#allocation5 + $0xe50] sm:$0xf0]  ;;  %v8460_v54 = vor.u32 %v10573_v39, %v8457_v44 }
 0x158   :  { %5294 = vmatpush.bf16.msrb.mxu2 %v8620_v3  ;;  %v10637_v48 = vld [vmem:[#allocation5 + $0xf44] sm:$0xf]  ;;  %v8713_v49 = vld [vmem:[#allocation5 + $0xf50] sm:$0xf0]  ;;  %v8588_v55 = vor.u32 %v10605_v45, %v8585_v46 }
 0x159   :  { %5307 = vmatpush.bf16.msrb.mxu3 %v8748_v10  ;;  %v10537_v56 = vld [vmem:[#allocation5 + $0xc24] sm:$0xf]  ;;  %v8313_v57 = vld [vmem:[#allocation5 + $0xc30] sm:$0xf0]  ;;  %v8716_v58 = vor.u32 %v10637_v48, %v8713_v49 }
 0x15a   :  { %5269 = vmatpush.bf16.msrb.mxu0 %v8348_v29  ;;  %v10569_v43 = vld [vmem:[#allocation5 + $0xd24] sm:$0xf]  ;;  %v8441_v59 = vld [vmem:[#allocation5 + $0xd30] sm:$0xf0]  ;;  %v8316_v4 = vor.u32 %v10537_v56, %v8313_v57 }
 0x15b   :  { %5282 = vmatpush.bf16.msrb.mxu1 %v8476_v0  ;;  %v10601_v60 = vld [vmem:[#allocation5 + $0xe24] sm:$0xf]  ;;  %v8569_v62 = vld [vmem:[#allocation5 + $0xe30] sm:$0xf0]  ;;  %v8444_v10 = vor.u32 %v10569_v43, %v8441_v59 }
 0x15c   :  { %5295 = vmatpush.bf16.msrb.mxu2 %v8604_v30  ;;  %v10633_v63 = vld [vmem:[#allocation5 + $0xf24] sm:$0xf]  ;;  %v8697_v3 = vld [vmem:[#allocation5 + $0xf30] sm:$0xf0]  ;;  %v8572_v11 = vor.u32 %v10601_v60, %v8569_v62  ;;  %v5042_v30 = vpop.f32.mrf.mxu2 }
 0x15d   :  { %5308 = vmatpush.bf16.msrb.mxu3 %v8732_v41  ;;  %v10533_v6 = vld [vmem:[#allocation5 + $0xc04] sm:$0xf]  ;;  %v8297_v7 = vld [vmem:[#allocation5 + $0xc10] sm:$0xf0]  ;;  %v8700_v21 = vor.u32 %v10633_v63, %v8697_v3  ;;  %v5055_v41 = vpop.f32.mrf.mxu3 }
 0x15e   :  { %5270 = vmatpush.bf16.msrb.mxu0 %v8332_v51  ;;  %v10565_v14 = vld [vmem:[#allocation5 + $0xd04] sm:$0xf]  ;;  %v8425_v16 = vld [vmem:[#allocation5 + $0xd10] sm:$0xf0]  ;;  %v8300_v42 = vor.u32 %v10533_v6, %v8297_v7 }
 0x15f   :  { %5283 = vmatpush.bf16.msrb.mxu1 %v8460_v54  ;;  %v10597_v17 = vld [vmem:[#allocation5 + $0xe04] sm:$0xf]  ;;  %v8553_v28 = vld [vmem:[#allocation5 + $0xe10] sm:$0xf0]  ;;  %v8428_v47 = vor.u32 %v10565_v14, %v8425_v16 }
 0x160   :  { %5296 = vmatpush.bf16.msrb.mxu2 %v8588_v55  ;;  %v10629_v29 = vld [vmem:[#allocation5 + $0xf04] sm:$0xf]  ;;  %v8681_v0 = vld [vmem:[#allocation5 + $0xf10] sm:$0xf0]  ;;  %v8556_v12 = vor.u32 %v10597_v17, %v8553_v28 }
 0x161   :  { %5309 = vmatpush.bf16.msrb.mxu3 %v8716_v58  ;;  %v10689_v33 = vld [vmem:[#allocation5 + $0x10e4] sm:$0xf]  ;;  %v8921_v35 = vld [vmem:[#allocation5 + $0x10f0] sm:$0xf0]  ;;  %v8684_v50 = vor.u32 %v10629_v29, %v8681_v0 }
 0x162   :  { %v10721_v39 = vld [vmem:[#allocation5 + $0x11e4] sm:$0xf]  ;;  %5271 = vmatpush.bf16.msrb.mxu0 %v8316_v4  ;;  %v9049_v44 = vld [vmem:[#allocation5 + $0x11f0] sm:$0xf0]  ;;  %v8924_v51 = vor.u32 %v10689_v33, %v8921_v35 }
 0x163   :  { %v10753_v45 = vld [vmem:[#allocation5 + $0x12e4] sm:$0xf]  ;;  %v9177_v46 = vld [vmem:[#allocation5 + $0x12f0] sm:$0xf0]  ;;  %5284 = vmatpush.bf16.msrb.mxu1 %v8444_v10  ;;  %v9052_v52 = vor.u32 %v10721_v39, %v9049_v44 }
 0x164   :  { %5297 = vmatpush.bf16.msrb.mxu2 %v8572_v11  ;;  %v10785_v48 = vld [vmem:[#allocation5 + $0x13e4] sm:$0xf]  ;;  %v9305_v49 = vld [vmem:[#allocation5 + $0x13f0] sm:$0xf0]  ;;  %v9180_v54 = vor.u32 %v10753_v45, %v9177_v46 }
 0x165   :  { %5310 = vmatpush.bf16.msrb.mxu3 %v8700_v21  ;;  %v10685_v55 = vld [vmem:[#allocation5 + $0x10c4] sm:$0xf]  ;;  %v8905_v56 = vld [vmem:[#allocation5 + $0x10d0] sm:$0xf0]  ;;  %v9308_v43 = vor.u32 %v10785_v48, %v9305_v49 }
 0x166   :  { %v10717_v57 = vld [vmem:[#allocation5 + $0x11c4] sm:$0xf]  ;;  %5272 = vmatpush.bf16.msrb.mxu0 %v8300_v42  ;;  %v9033_v58 = vld [vmem:[#allocation5 + $0x11d0] sm:$0xf0]  ;;  %v8908_v3 = vor.u32 %v10685_v55, %v8905_v56 }
 0x167   :  { %v10749_v59 = vld [vmem:[#allocation5 + $0x12c4] sm:$0xf]  ;;  %v9161_v60 = vld [vmem:[#allocation5 + $0x12d0] sm:$0xf0]  ;;  %5285 = vmatpush.bf16.msrb.mxu1 %v8428_v47  ;;  %v9036_v4 = vor.u32 %v10717_v57, %v9033_v58 }
 0x168   :  { %5298 = vmatpush.bf16.msrb.mxu2 %v8556_v12  ;;  %v10781_v62 = vld [vmem:[#allocation5 + $0x13c4] sm:$0xf]  ;;  %v9289_v63 = vld [vmem:[#allocation5 + $0x13d0] sm:$0xf0]  ;;  %v9164_v6 = vor.u32 %v10749_v59, %v9161_v60  ;;  %v5066_v47 = vpop.f32.mrf.mxu0 }
 0x169   :  { %5311 = vmatpush.bf16.msrb.mxu3 %v8684_v50  ;;  %v10681_v7 = vld [vmem:[#allocation5 + $0x10a4] sm:$0xf]  ;;  %v8889_v10 = vld [vmem:[#allocation5 + $0x10b0] sm:$0xf0]  ;;  %5273 = vmatmul.bf16.vlgmr.msrb.gmra.mxu0 %v11365_v13  ;;  %v9292_v14 = vor.u32 %v10781_v62, %v9289_v63  ;;  %v5067_v49 = vadd.f32 %v5066_v47, %v11425_v53 }
 0x16a   :  { %5317 = vmatpush.bf16.msra.mxu0 %v8924_v51  ;;  %v10713_v11 = vld [vmem:[#allocation5 + $0x11a4] sm:$0xf]  ;;  %v9017_v16 = vld [vmem:[#allocation5 + $0x11b0] sm:$0xf0]  ;;  %5286 = vmatmul.bf16.vlgmr.msrb.gmra.mxu1 %v11369_v20  ;;  %v8892_v0 = vor.u32 %v10681_v7, %v8889_v10  ;;  %v5079_v51 = vpop.f32.mrf.mxu1 }
 0x16b   :  { %5330 = vmatpush.bf16.msra.mxu1 %v9052_v52  ;;  %v10745_v17 = vld [vmem:[#allocation5 + $0x12a4] sm:$0xf]  ;;  %v9145_v21 = vld [vmem:[#allocation5 + $0x12b0] sm:$0xf0]  ;;  %5299 = vmatmul.bf16.vlgmr.msrb.gmra.mxu2 %v11367_v19  ;;  %v9020_v30 = vor.u32 %v10713_v11, %v9017_v16  ;;  %v5080_v58 = vadd.f32 %v5079_v51, %v5067_v49 }
 0x16c   :  { %5343 = vmatpush.bf16.msra.mxu2 %v9180_v54  ;;  %v10777_v28 = vld [vmem:[#allocation5 + $0x13a4] sm:$0xf]  ;;  %v9273_v29 = vld [vmem:[#allocation5 + $0x13b0] sm:$0xf0]  ;;  %5312 = vmatmul.bf16.vlgmr.msrb.gmra.mxu3 %v11371_v26  ;;  %v9148_v33 = vor.u32 %v10745_v17, %v9145_v21 }
 0x16d   :  { %5356 = vmatpush.bf16.msra.mxu3 %v9308_v43  ;;  %v10677_v35 = vld [vmem:[#allocation5 + $0x1084] sm:$0xf]  ;;  %v8873_v39 = vld [vmem:[#allocation5 + $0x1090] sm:$0xf0]  ;;  %v9276_v42 = vor.u32 %v10777_v28, %v9273_v29 }
 0x16e   :  { %5318 = vmatpush.bf16.msra.mxu0 %v8908_v3  ;;  %v10709_v41 = vld [vmem:[#allocation5 + $0x1184] sm:$0xf]  ;;  %v9001_v44 = vld [vmem:[#allocation5 + $0x1190] sm:$0xf0]  ;;  %v8876_v50 = vor.u32 %v10677_v35, %v8873_v39 }
 0x16f   :  { %5331 = vmatpush.bf16.msra.mxu1 %v9036_v4  ;;  %v10741_v45 = vld [vmem:[#allocation5 + $0x1284] sm:$0xf]  ;;  %v9129_v46 = vld [vmem:[#allocation5 + $0x1290] sm:$0xf0]  ;;  %v9004_v52 = vor.u32 %v10709_v41, %v9001_v44 }
 0x170   :  { %5344 = vmatpush.bf16.msra.mxu2 %v9164_v6  ;;  %v10773_v12 = vld [vmem:[#allocation5 + $0x1384] sm:$0xf]  ;;  %v9257_v48 = vld [vmem:[#allocation5 + $0x1390] sm:$0xf0]  ;;  %v9132_v54 = vor.u32 %v10741_v45, %v9129_v46  ;;  %v5092_v16 = vpop.f32.mrf.mxu2  ;;  %v5068_v35 = vpop.f32.mrf.mxu0 }
 0x171   :  { %5357 = vmatpush.bf16.msra.mxu3 %v9292_v14  ;;  %v10673_v55 = vld [vmem:[#allocation5 + $0x1064] sm:$0xf]  ;;  %v8857_v56 = vld [vmem:[#allocation5 + $0x1070] sm:$0xf0]  ;;  %v9260_v43 = vor.u32 %v10773_v12, %v9257_v48  ;;  %v5093_v29 = vadd.f32 %v5092_v16, %v5080_v58 }
 0x172   :  { %5319 = vmatpush.bf16.msra.mxu0 %v8892_v0  ;;  %v10705_v57 = vld [vmem:[#allocation5 + $0x1164] sm:$0xf]  ;;  %v8985_v59 = vld [vmem:[#allocation5 + $0x1170] sm:$0xf0]  ;;  %v8860_v4 = vor.u32 %v10673_v55, %v8857_v56  ;;  %v5105_v0 = vpop.f32.mrf.mxu3  ;;  %v5081_v41 = vpop.f32.mrf.mxu1 }
 0x173   :  { %5332 = vmatpush.bf16.msra.mxu1 %v9020_v30  ;;  %v10737_v60 = vld [vmem:[#allocation5 + $0x1264] sm:$0xf]  ;;  %v9113_v62 = vld [vmem:[#allocation5 + $0x1270] sm:$0xf0]  ;;  %v8988_v53 = vor.u32 %v10705_v57, %v8985_v59 }
 0x174   :  { %5345 = vmatpush.bf16.msra.mxu2 %v9148_v33  ;;  %v10769_v63 = vld [vmem:[#allocation5 + $0x1364] sm:$0xf]  ;;  %v9241_v3 = vld [vmem:[#allocation5 + $0x1370] sm:$0xf0]  ;;  %v9116_v6 = vor.u32 %v10737_v60, %v9113_v62 }
 0x175   :  { %5358 = vmatpush.bf16.msra.mxu3 %v9276_v42  ;;  %v10669_v7 = vld [vmem:[#allocation5 + $0x1044] sm:$0xf]  ;;  %v8841_v10 = vld [vmem:[#allocation5 + $0x1050] sm:$0xf0]  ;;  %v9244_v14 = vor.u32 %v10769_v63, %v9241_v3  ;;  %v11432_v42 = vadd.f32 %v5105_v0, %v5093_v29 }
 0x176   :  { %5320 = vmatpush.bf16.msra.mxu0 %v8876_v50  ;;  %v10701_v11 = vld [vmem:[#allocation5 + $0x1144] sm:$0xf]  ;;  %v8969_v17 = vld [vmem:[#allocation5 + $0x1150] sm:$0xf0]  ;;  %v8844_v39 = vor.u32 %v10669_v7, %v8841_v10 }
 0x177   :  { %5333 = vmatpush.bf16.msra.mxu1 %v9004_v52  ;;  %v10733_v21 = vld [vmem:[#allocation5 + $0x1244] sm:$0xf]  ;;  %v9097_v28 = vld [vmem:[#allocation5 + $0x1250] sm:$0xf0]  ;;  %v8972_v44 = vor.u32 %v10701_v11, %v8969_v17 }
 0x178   :  { %5346 = vmatpush.bf16.msra.mxu2 %v9132_v54  ;;  %v10765_v30 = vld [vmem:[#allocation5 + $0x1344] sm:$0xf]  ;;  %v9225_v33 = vld [vmem:[#allocation5 + $0x1350] sm:$0xf0]  ;;  %v9100_v45 = vor.u32 %v10733_v21, %v9097_v28 }
 0x179   :  { %5359 = vmatpush.bf16.msra.mxu3 %v9260_v43  ;;  %v10665_v46 = vld [vmem:[#allocation5 + $0x1024] sm:$0xf]  ;;  %v8825_v47 = vld [vmem:[#allocation5 + $0x1030] sm:$0xf0]  ;;  %v9228_v48 = vor.u32 %v10765_v30, %v9225_v33 }
 0x17a   :  { %5321 = vmatpush.bf16.msra.mxu0 %v8860_v4  ;;  %v10697_v12 = vld [vmem:[#allocation5 + $0x1124] sm:$0xf]  ;;  %v8953_v49 = vld [vmem:[#allocation5 + $0x1130] sm:$0xf0]  ;;  %v8828_v55 = vor.u32 %v10665_v46, %v8825_v47 }
 0x17b   :  { %5334 = vmatpush.bf16.msra.mxu1 %v8988_v53  ;;  %v10729_v50 = vld [vmem:[#allocation5 + $0x1224] sm:$0xf]  ;;  %v9081_v51 = vld [vmem:[#allocation5 + $0x1230] sm:$0xf0]  ;;  %v8956_v43 = vor.u32 %v10697_v12, %v8953_v49 }
 0x17c   :  { %5347 = vmatpush.bf16.msra.mxu2 %v9116_v6  ;;  %v10761_v52 = vld [vmem:[#allocation5 + $0x1324] sm:$0xf]  ;;  %v9209_v54 = vld [vmem:[#allocation5 + $0x1330] sm:$0xf0]  ;;  %v9084_v58 = vor.u32 %v10729_v50, %v9081_v51  ;;  %v5094_v6 = vpop.f32.mrf.mxu2 }
 0x17d   :  { %5360 = vmatpush.bf16.msra.mxu3 %v9244_v14  ;;  %v10661_v56 = vld [vmem:[#allocation5 + $0x1004] sm:$0xf]  ;;  %v8809_v57 = vld [vmem:[#allocation5 + $0x1010] sm:$0xf0]  ;;  %v9212_v63 = vor.u32 %v10761_v52, %v9209_v54  ;;  %v5107_v14 = vpop.f32.mrf.mxu3 }
 0x17e   :  { %5322 = vmatpush.bf16.msra.mxu0 %v8844_v39  ;;  %v10693_v59 = vld [vmem:[#allocation5 + $0x1104] sm:$0xf]  ;;  %v8937_v60 = vld [vmem:[#allocation5 + $0x1110] sm:$0xf0]  ;;  %v8812_v16 = vor.u32 %v10661_v56, %v8809_v57 }
 0x17f   :  { %5335 = vmatpush.bf16.msra.mxu1 %v8972_v44  ;;  %v10725_v62 = vld [vmem:[#allocation5 + $0x1204] sm:$0xf]  ;;  %v9065_v3 = vld [vmem:[#allocation5 + $0x1210] sm:$0xf0]  ;;  %v8940_v29 = vor.u32 %v10693_v59, %v8937_v60 }
 0x180   :  { %5348 = vmatpush.bf16.msra.mxu2 %v9100_v45  ;;  %v10757_v4 = vld [vmem:[#allocation5 + $0x1304] sm:$0xf]  ;;  %v9193_v53 = vld [vmem:[#allocation5 + $0x1310] sm:$0xf0]  ;;  %v9068_v0 = vor.u32 %v10725_v62, %v9065_v3 }
 0x181   :  { %5361 = vmatpush.bf16.msra.mxu3 %v9228_v48  ;;  %v10817_v7 = vld [vmem:[#allocation5 + $0x14e4] sm:$0xf]  ;;  %v9433_v10 = vld [vmem:[#allocation5 + $0x14f0] sm:$0xf0]  ;;  %v9196_v35 = vor.u32 %v10757_v4, %v9193_v53 }
 0x182   :  { %v10849_v11 = vld [vmem:[#allocation5 + $0x15e4] sm:$0xf]  ;;  %5323 = vmatpush.bf16.msra.mxu0 %v8828_v55  ;;  %v9561_v17 = vld [vmem:[#allocation5 + $0x15f0] sm:$0xf0]  ;;  %v9436_v39 = vor.u32 %v10817_v7, %v9433_v10 }
 0x183   :  { %v10881_v21 = vld [vmem:[#allocation5 + $0x16e4] sm:$0xf]  ;;  %v9689_v28 = vld [vmem:[#allocation5 + $0x16f0] sm:$0xf0]  ;;  %5336 = vmatpush.bf16.msra.mxu1 %v8956_v43  ;;  %v9564_v41 = vor.u32 %v10849_v11, %v9561_v17 }
 0x184   :  { %5349 = vmatpush.bf16.msra.mxu2 %v9084_v58  ;;  %v10913_v30 = vld [vmem:[#allocation5 + $0x17e4] sm:$0xf]  ;;  %v9817_v33 = vld [vmem:[#allocation5 + $0x17f0] sm:$0xf0]  ;;  %v9692_v44 = vor.u32 %v10881_v21, %v9689_v28 }
 0x185   :  { %5362 = vmatpush.bf16.msra.mxu3 %v9212_v63  ;;  %v10813_v45 = vld [vmem:[#allocation5 + $0x14c4] sm:$0xf]  ;;  %v9417_v46 = vld [vmem:[#allocation5 + $0x14d0] sm:$0xf0]  ;;  %v9820_v12 = vor.u32 %v10913_v30, %v9817_v33 }
 0x186   :  { %v10845_v47 = vld [vmem:[#allocation5 + $0x15c4] sm:$0xf]  ;;  %5324 = vmatpush.bf16.msra.mxu0 %v8812_v16  ;;  %v9545_v48 = vld [vmem:[#allocation5 + $0x15d0] sm:$0xf0]  ;;  %v9420_v54 = vor.u32 %v10813_v45, %v9417_v46  ;;  %v11017_v16 = vld [vmem:[#allocation7] sm:$0xf] }
 0x187   :  { %v10877_v49 = vld [vmem:[#allocation5 + $0x16c4] sm:$0xf]  ;;  %v9673_v50 = vld [vmem:[#allocation5 + $0x16d0] sm:$0xf0]  ;;  %5337 = vmatpush.bf16.msra.mxu1 %v8940_v29  ;;  %v9548_v55 = vor.u32 %v10845_v47, %v9545_v48  ;;  %v950_v17 = vperm.slane %v11017_v16, 1  ;;  %v5131_v48 = vpop.f32.mrf.mxu1 }
 0x188   :  { %5350 = vmatpush.bf16.msra.mxu2 %v9068_v0  ;;  %v10909_v51 = vld [vmem:[#allocation5 + $0x17c4] sm:$0xf]  ;;  %v9801_v52 = vld [vmem:[#allocation5 + $0x17d0] sm:$0xf0]  ;;  %v9676_v56 = vor.u32 %v10877_v49, %v9673_v50 }
 0x189   :  { %5363 = vmatpush.bf16.msra.mxu3 %v9196_v35  ;;  %v10809_v57 = vld [vmem:[#allocation5 + $0x14a4] sm:$0xf]  ;;  %v9401_v43 = vld [vmem:[#allocation5 + $0x14b0] sm:$0xf0]  ;;  %5325 = vmatmul.bf16.vlgmr.msra.gmra.mxu0 %v11377_v24  ;;  %v9804_v59 = vor.u32 %v10909_v51, %v9801_v52 }
 0x18a   :  { %5369 = vmatpush.bf16.msrb.mxu0 %v9436_v39  ;;  %v10841_v58 = vld [vmem:[#allocation5 + $0x15a4] sm:$0xf]  ;;  %v9529_v60 = vld [vmem:[#allocation5 + $0x15b0] sm:$0xf0]  ;;  %5338 = vmatmul.bf16.vlgmr.msra.gmra.mxu1 %v11381_v32  ;;  %v9404_v53 = vor.u32 %v10809_v57, %v9401_v43  ;;  %v5118_v39 = vpop.f32.mrf.mxu0 }
 0x18b   :  { %5382 = vmatpush.bf16.msrb.mxu1 %v9564_v41  ;;  %v10873_v62 = vld [vmem:[#allocation5 + $0x16a4] sm:$0xf]  ;;  %v9657_v63 = vld [vmem:[#allocation5 + $0x16b0] sm:$0xf0]  ;;  %5351 = vmatmul.bf16.vlgmr.msra.gmra.mxu2 %v11379_v31  ;;  %v9532_v7 = vor.u32 %v10841_v58, %v9529_v60 }
 0x18c   :  { %5395 = vmatpush.bf16.msrb.mxu2 %v9692_v44  ;;  %v10905_v3 = vld [vmem:[#allocation5 + $0x17a4] sm:$0xf]  ;;  %v9785_v4 = vld [vmem:[#allocation5 + $0x17b0] sm:$0xf0]  ;;  %5364 = vmatmul.bf16.vlgmr.msra.gmra.mxu3 %v11383_v36  ;;  %v9660_v10 = vor.u32 %v10873_v62, %v9657_v63 }
 0x18d   :  { %5408 = vmatpush.bf16.msrb.mxu3 %v9820_v12  ;;  %v10805_v6 = vld [vmem:[#allocation5 + $0x1484] sm:$0xf]  ;;  %v9385_v11 = vld [vmem:[#allocation5 + $0x1490] sm:$0xf0]  ;;  %v9788_v21 = vor.u32 %v10905_v3, %v9785_v4  ;;  %v5119_v12 = vadd.f32 %v5118_v39, %v950_v17 }
 0x18e   :  { %5370 = vmatpush.bf16.msrb.mxu0 %v9420_v54  ;;  %v10837_v14 = vld [vmem:[#allocation5 + $0x1584] sm:$0xf]  ;;  %v9513_v28 = vld [vmem:[#allocation5 + $0x1590] sm:$0xf0]  ;;  %v9388_v35 = vor.u32 %v10805_v6, %v9385_v11  ;;  %v5144_v63 = vpop.f32.mrf.mxu2 }
 0x18f   :  { %5383 = vmatpush.bf16.msrb.mxu1 %v9548_v55  ;;  %v10869_v29 = vld [vmem:[#allocation5 + $0x1684] sm:$0xf]  ;;  %v9641_v0 = vld [vmem:[#allocation5 + $0x1690] sm:$0xf0]  ;;  %v9516_v41 = vor.u32 %v10837_v14, %v9513_v28 }
 0x190   :  { %5396 = vmatpush.bf16.msrb.mxu2 %v9676_v56  ;;  %v10901_v30 = vld [vmem:[#allocation5 + $0x1784] sm:$0xf]  ;;  %v9769_v33 = vld [vmem:[#allocation5 + $0x1790] sm:$0xf0]  ;;  %v9644_v44 = vor.u32 %v10869_v29, %v9641_v0  ;;  %v5132_v56 = vadd.f32 %v5131_v48, %v5119_v12 }
 0x191   :  { %5409 = vmatpush.bf16.msrb.mxu3 %v9804_v59  ;;  %v10801_v45 = vld [vmem:[#allocation5 + $0x1464] sm:$0xf]  ;;  %v9369_v46 = vld [vmem:[#allocation5 + $0x1470] sm:$0xf0]  ;;  %v9772_v49 = vor.u32 %v10901_v30, %v9769_v33 }
 0x192   :  { %5371 = vmatpush.bf16.msrb.mxu0 %v9404_v53  ;;  %v10833_v47 = vld [vmem:[#allocation5 + $0x1564] sm:$0xf]  ;;  %v9497_v50 = vld [vmem:[#allocation5 + $0x1570] sm:$0xf0]  ;;  %v9372_v57 = vor.u32 %v10801_v45, %v9369_v46 }
 0x193   :  { %5384 = vmatpush.bf16.msrb.mxu1 %v9532_v7  ;;  %v10865_v51 = vld [vmem:[#allocation5 + $0x1664] sm:$0xf]  ;;  %v9625_v52 = vld [vmem:[#allocation5 + $0x1670] sm:$0xf0]  ;;  %v9500_v43 = vor.u32 %v10833_v47, %v9497_v50  ;;  %v5145_v7 = vadd.f32 %v5144_v63, %v5132_v56  ;;  %v10180_v63 = vld [vmem:[#allocation5 + $0xf4] sm:$0xf0] }
 0x194   :  { %5397 = vmatpush.bf16.msrb.mxu2 %v9660_v10  ;;  %v10897_v54 = vld [vmem:[#allocation5 + $0x1764] sm:$0xf]  ;;  %v9753_v55 = vld [vmem:[#allocation5 + $0x1770] sm:$0xf0]  ;;  %v9628_v58 = vor.u32 %v10865_v51, %v9625_v52  ;;  %v5157_v10 = vpop.f32.mrf.mxu3 }
 0x195   :  { %5410 = vmatpush.bf16.msrb.mxu3 %v9788_v21  ;;  %v10797_v59 = vld [vmem:[#allocation5 + $0x1444] sm:$0xf]  ;;  %v9353_v60 = vld [vmem:[#allocation5 + $0x1450] sm:$0xf0]  ;;  %v9756_v3 = vor.u32 %v10897_v54, %v9753_v55  ;;  %v11438_v17 = vadd.f32 %v5157_v10, %v5145_v7  ;;  %v5120_v21 = vpop.f32.mrf.mxu0  ;;  %v10244_v7 = vld [vmem:[#allocation5 + $0x2f4] sm:$0xf0] }
 0x196   :  { %5372 = vmatpush.bf16.msrb.mxu0 %v9388_v35  ;;  %v10829_v62 = vld [vmem:[#allocation5 + $0x1544] sm:$0xf]  ;;  %v9481_v4 = vld [vmem:[#allocation5 + $0x1550] sm:$0xf0]  ;;  %v9356_v16 = vor.u32 %v10797_v59, %v9353_v60  ;;  %v5133_v35 = vpop.f32.mrf.mxu1  ;;  %v5146_v56 = vpop.f32.mrf.mxu2 }
 0x197   :  { %5385 = vmatpush.bf16.msrb.mxu1 %v9516_v41  ;;  %v10861_v53 = vld [vmem:[#allocation5 + $0x1644] sm:$0xf]  ;;  %v9609_v6 = vld [vmem:[#allocation5 + $0x1650] sm:$0xf0]  ;;  %v9484_v28 = vor.u32 %v10829_v62, %v9481_v4  ;;  %v6879_v62 = vld [vmem:[#allocation5 + $0xe8] sm:$0xf] }
 0x198   :  { %5398 = vmatpush.bf16.msrb.mxu2 %v9644_v44  ;;  %v10893_v11 = vld [vmem:[#allocation5 + $0x1744] sm:$0xf]  ;;  %v9737_v14 = vld [vmem:[#allocation5 + $0x1750] sm:$0xf0]  ;;  %v9612_v29 = vor.u32 %v10861_v53, %v9609_v6  ;;  %v10212_v53 = vld [vmem:[#allocation5 + $0x1f4] sm:$0xf0] }
 0x199   :  { %5411 = vmatpush.bf16.msrb.mxu3 %v9772_v49  ;;  %v10793_v0 = vld [vmem:[#allocation5 + $0x1424] sm:$0xf]  ;;  %v9337_v30 = vld [vmem:[#allocation5 + $0x1430] sm:$0xf0]  ;;  %v9740_v39 = vor.u32 %v10893_v11, %v9737_v14  ;;  %v7135_v6 = vld [vmem:[#allocation5 + $0x2e8] sm:$0xf] }
 0x19a   :  { %5373 = vmatpush.bf16.msrb.mxu0 %v9372_v57  ;;  %v10825_v33 = vld [vmem:[#allocation5 + $0x1524] sm:$0xf]  ;;  %v9465_v41 = vld [vmem:[#allocation5 + $0x1530] sm:$0xf0]  ;;  %v9340_v12 = vor.u32 %v10793_v0, %v9337_v30  ;;  %v7263_v14 = vld [vmem:[#allocation5 + $0x3e8] sm:$0xf]  ;;  %v7136_v0 = vor.u32 %v10244_v7, %v7135_v6 }
 0x19b   :  { %5386 = vmatpush.bf16.msrb.mxu1 %v9500_v43  ;;  %v10857_v44 = vld [vmem:[#allocation5 + $0x1624] sm:$0xf]  ;;  %v9593_v45 = vld [vmem:[#allocation5 + $0x1630] sm:$0xf0]  ;;  %v9468_v50 = vor.u32 %v10825_v33, %v9465_v41  ;;  %v6863_v30 = vld [vmem:[#allocation5 + $0xc8] sm:$0xf] }
 0x19c   :  { %5399 = vmatpush.bf16.msrb.mxu2 %v9628_v58  ;;  %v10889_v46 = vld [vmem:[#allocation5 + $0x1724] sm:$0xf]  ;;  %v9721_v47 = vld [vmem:[#allocation5 + $0x1730] sm:$0xf0]  ;;  %v9596_v51 = vor.u32 %v10857_v44, %v9593_v45  ;;  %v5159_v60 = vpop.f32.mrf.mxu3  ;;  %v10176_v33 = vld [vmem:[#allocation5 + $0xd4] sm:$0xf0] }
 0x19d   :  { %5412 = vmatpush.bf16.msrb.mxu3 %v9756_v3  ;;  %v10789_v48 = vld [vmem:[#allocation5 + $0x1404] sm:$0xf]  ;;  %v9321_v49 = vld [vmem:[#allocation5 + $0x1410] sm:$0xf0]  ;;  %v9724_v57 = vor.u32 %v10889_v46, %v9721_v47  ;;  %v7007_v3 = vld [vmem:[#allocation5 + $0x1e8] sm:$0xf] }
 0x19e   :  { %5374 = vmatpush.bf16.msrb.mxu0 %v9356_v16  ;;  %v10821_v52 = vld [vmem:[#allocation5 + $0x1504] sm:$0xf]  ;;  %v9449_v54 = vld [vmem:[#allocation5 + $0x1510] sm:$0xf0]  ;;  %v9324_v4 = vor.u32 %v10789_v48, %v9321_v49  ;;  %v10276_v16 = vld [vmem:[#allocation5 + $0x3f4] sm:$0xf0] }
 0x19f   :  { %5387 = vmatpush.bf16.msrb.mxu1 %v9484_v28  ;;  %v10853_v55 = vld [vmem:[#allocation5 + $0x1604] sm:$0xf]  ;;  %v9577_v43 = vld [vmem:[#allocation5 + $0x1610] sm:$0xf0]  ;;  %v9452_v10 = vor.u32 %v10821_v52, %v9449_v54  ;;  %v6880_v28 = vor.u32 %v10180_v63, %v6879_v62  ;;  %v6991_v35 = vld [vmem:[#allocation5 + $0x1c8] sm:$0xf] }
 0x1a0   :  { %5400 = vmatpush.bf16.msrb.mxu2 %v9612_v29  ;;  %v10885_v58 = vld [vmem:[#allocation5 + $0x1704] sm:$0xf]  ;;  %v9705_v59 = vld [vmem:[#allocation5 + $0x1710] sm:$0xf0]  ;;  %v9580_v11 = vor.u32 %v10853_v55, %v9577_v43  ;;  %v7008_v29 = vor.u32 %v10212_v53, %v7007_v3  ;;  %v10208_v41 = vld [vmem:[#allocation5 + $0x1d4] sm:$0xf0] }
 0x1a1   :  { %5413 = vmatpush.bf16.msrb.mxu3 %v9740_v39  ;;  %v9708_v21 = vor.u32 %v10885_v58, %v9705_v59  ;;  %v7264_v39 = vor.u32 %v10276_v16, %v7263_v14  ;;  %v7119_v44 = vld [vmem:[#allocation5 + $0x2c8] sm:$0xf]  ;;  %v10240_v45 = vld [vmem:[#allocation5 + $0x2d4] sm:$0xf0]  ;;  %v6992_v48 = vor.u32 %v10208_v41, %v6991_v35 }
 0x1a2   :  { %5375 = vmatpush.bf16.msrb.mxu0 %v9340_v12  ;;  %v7247_v46 = vld [vmem:[#allocation5 + $0x3c8] sm:$0xf]  ;;  %v10272_v47 = vld [vmem:[#allocation5 + $0x3d4] sm:$0xf0]  ;;  %v6864_v12 = vor.u32 %v10176_v33, %v6863_v30  ;;  %v7120_v49 = vor.u32 %v10240_v45, %v7119_v44 }
 0x1a3   :  { %5388 = vmatpush.bf16.msrb.mxu1 %v9468_v50  ;;  %v6847_v50 = vld [vmem:[#allocation5 + $0xa8] sm:$0xf]  ;;  %v7248_v54 = vor.u32 %v10272_v47, %v7247_v46  ;;  %v10204_v55 = vld [vmem:[#allocation5 + $0x1b4] sm:$0xf0] }
 0x1a4   :  { %5401 = vmatpush.bf16.msrb.mxu2 %v9596_v51  ;;  %v10172_v51 = vld [vmem:[#allocation5 + $0xb4] sm:$0xf0]  ;;  %v6975_v52 = vld [vmem:[#allocation5 + $0x1a8] sm:$0xf] }
 0x1a5   :  { %5414 = vmatpush.bf16.msrb.mxu3 %v9724_v57  ;;  %v7103_v56 = vld [vmem:[#allocation5 + $0x2a8] sm:$0xf]  ;;  %v10236_v57 = vld [vmem:[#allocation5 + $0x2b4] sm:$0xf0]  ;;  %v6848_v59 = vor.u32 %v10172_v51, %v6847_v50  ;;  %v6976_v60 = vor.u32 %v10204_v55, %v6975_v52 }
 0x1a6   :  { %5376 = vmatpush.bf16.msrb.mxu0 %v9324_v4  ;;  %v7231_v43 = vld [vmem:[#allocation5 + $0x3a8] sm:$0xf]  ;;  %v10268_v58 = vld [vmem:[#allocation5 + $0x3b4] sm:$0xf0]  ;;  %v7104_v62 = vor.u32 %v10236_v57, %v7103_v56 }
 0x1a7   :  { %5389 = vmatpush.bf16.msrb.mxu1 %v9452_v10  ;;  %v6831_v63 = vld [vmem:[#allocation5 + $0x88] sm:$0xf]  ;;  %v10168_v3 = vld [vmem:[#allocation5 + $0x94] sm:$0xf0]  ;;  %v7232_v53 = vor.u32 %v10268_v58, %v7231_v43 }
 0x1a8   :  { %5402 = vmatpush.bf16.msrb.mxu2 %v9580_v11  ;;  %v6959_v4 = vld [vmem:[#allocation5 + $0x188] sm:$0xf]  ;;  %v10200_v6 = vld [vmem:[#allocation5 + $0x194] sm:$0xf0]  ;;  %v6832_v16 = vor.u32 %v10168_v3, %v6831_v63 }
 0x1a9   :  { %5415 = vmatpush.bf16.msrb.mxu3 %v9708_v21  ;;  %5377 = vmatmul.bf16.vlgmr.msrb.gmra.mxu0 %v11391_v61  ;;  %v7087_v7 = vld [vmem:[#allocation5 + $0x288] sm:$0xf]  ;;  %v10232_v10 = vld [vmem:[#allocation5 + $0x294] sm:$0xf0]  ;;  %v5170_v21 = vpop.f32.mrf.mxu0 }
 0x1aa   :  { %5421 = vmatpush.bf16.msra.mxu0 %v6880_v28  ;;  %5390 = vmatmul.bf16.vlgmr.msrb.gmra.mxu1 %v11395_v2  ;;  %v7215_v11 = vld [vmem:[#allocation5 + $0x388] sm:$0xf]  ;;  %v10264_v14 = vld [vmem:[#allocation5 + $0x394] sm:$0xf0]  ;;  %v6960_v28 = vor.u32 %v10200_v6, %v6959_v4  ;;  %v5171_v35 = vadd.f32 %v5170_v21, %v11438_v17 }
 0x1ab   :  { %5434 = vmatpush.bf16.msra.mxu1 %v7008_v29  ;;  %5403 = vmatmul.bf16.vlgmr.msrb.gmra.mxu2 %v11393_v1  ;;  %v7088_v29 = vor.u32 %v10232_v10, %v7087_v7  ;;  %v10164_v30 = vld [vmem:[#allocation5 + $0x74] sm:$0xf0]  ;;  %v6943_v33 = vld [vmem:[#allocation5 + $0x168] sm:$0xf]  ;;  %v7216_v41 = vor.u32 %v10264_v14, %v7215_v11 }
 0x1ac   :  { %5447 = vmatpush.bf16.msra.mxu2 %v7136_v0  ;;  %5416 = vmatmul.bf16.vlgmr.msrb.gmra.mxu3 %v11397_v5  ;;  %v6815_v0 = vld [vmem:[#allocation5 + $0x68] sm:$0xf]  ;;  %v10196_v44 = vld [vmem:[#allocation5 + $0x174] sm:$0xf0] }
 0x1ad   :  { %5460 = vmatpush.bf16.msra.mxu3 %v7264_v39  ;;  %v5183_v39 = vpop.f32.mrf.mxu1  ;;  %v7071_v45 = vld [vmem:[#allocation5 + $0x268] sm:$0xf]  ;;  %v10228_v46 = vld [vmem:[#allocation5 + $0x274] sm:$0xf0]  ;;  %v6944_v50 = vor.u32 %v10196_v44, %v6943_v33 }
 0x1ae   :  { %5422 = vmatpush.bf16.msra.mxu0 %v6864_v12  ;;  %v7199_v47 = vld [vmem:[#allocation5 + $0x368] sm:$0xf]  ;;  %v10260_v12 = vld [vmem:[#allocation5 + $0x374] sm:$0xf0]  ;;  %v7072_v51 = vor.u32 %v10228_v46, %v7071_v45  ;;  %v5196_v56 = vpop.f32.mrf.mxu2 }
 0x1af   :  { %5435 = vmatpush.bf16.msra.mxu1 %v6992_v48  ;;  %v5184_v48 = vadd.f32 %v5183_v39, %v5171_v35  ;;  %v6799_v52 = vld [vmem:[#allocation5 + $0x48] sm:$0xf]  ;;  %v7200_v17 = vor.u32 %v10260_v12, %v7199_v47  ;;  %v10192_v57 = vld [vmem:[#allocation5 + $0x154] sm:$0xf0] }
 0x1b0   :  { %5448 = vmatpush.bf16.msra.mxu2 %v7120_v49  ;;  %v6816_v49 = vor.u32 %v10164_v30, %v6815_v0  ;;  %v6927_v55 = vld [vmem:[#allocation5 + $0x148] sm:$0xf]  ;;  %v10224_v58 = vld [vmem:[#allocation5 + $0x254] sm:$0xf0] }
 0x1b1   :  { %5461 = vmatpush.bf16.msra.mxu3 %v7248_v54  ;;  %v10160_v54 = vld [vmem:[#allocation5 + $0x54] sm:$0xf0]  ;;  %v7055_v43 = vld [vmem:[#allocation5 + $0x248] sm:$0xf]  ;;  %v6928_v6 = vor.u32 %v10192_v57, %v6927_v55 }
 0x1b2   :  { %5423 = vmatpush.bf16.msra.mxu0 %v6848_v59  ;;  %v5197_v59 = vadd.f32 %v5196_v56, %v5184_v48  ;;  %v10256_v63 = vld [vmem:[#allocation5 + $0x354] sm:$0xf0]  ;;  %v6800_v3 = vor.u32 %v10160_v54, %v6799_v52  ;;  %v7056_v7 = vor.u32 %v10224_v58, %v7055_v43  ;;  %v6783_v10 = vld [vmem:[#allocation5 + $0x28] sm:$0xf] }
 0x1b3   :  { %5436 = vmatpush.bf16.msra.mxu1 %v6976_v60  ;;  %v5209_v60 = vpop.f32.mrf.mxu3  ;;  %v10156_v11 = vld [vmem:[#allocation5 + $0x34] sm:$0xf0]  ;;  %v6911_v14 = vld [vmem:[#allocation5 + $0x128] sm:$0xf] }
 0x1b4   :  { %5449 = vmatpush.bf16.msra.mxu2 %v7104_v62  ;;  %v7183_v62 = vld [vmem:[#allocation5 + $0x348] sm:$0xf]  ;;  %v11445_v4 = vadd.f32 %v5209_v60, %v5197_v59  ;;  %v10220_v0 = vld [vmem:[#allocation5 + $0x234] sm:$0xf0]  ;;  %v6784_v35 = vor.u32 %v10156_v11, %v6783_v10 }
 0x1b5   :  { %5462 = vmatpush.bf16.msra.mxu3 %v7232_v53  ;;  %v5172_v53 = vpop.f32.mrf.mxu0  ;;  %v7184_v21 = vor.u32 %v10256_v63, %v7183_v62  ;;  %v7167_v30 = vld [vmem:[#allocation5 + $0x328] sm:$0xf]  ;;  %v10252_v33 = vld [vmem:[#allocation5 + $0x334] sm:$0xf0] }
 0x1b6   :  { %5424 = vmatpush.bf16.msra.mxu0 %v6832_v16  ;;  %v5185_v16 = vpop.f32.mrf.mxu1  ;;  %v6767_v39 = vld [vmem:[#allocation5 + $0x8] sm:$0xf]  ;;  %v10184_v47 = vld [vmem:[#allocation5 + $0x114] sm:$0xf0]  ;;  %v5198_v48 = vpop.f32.mrf.mxu2 }
 0x1b7   :  { %5437 = vmatpush.bf16.msra.mxu1 %v6960_v28  ;;  %v10188_v28 = vld [vmem:[#allocation5 + $0x134] sm:$0xf0]  ;;  %v6895_v46 = vld [vmem:[#allocation5 + $0x108] sm:$0xf] }
 0x1b8   :  { %5450 = vmatpush.bf16.msra.mxu2 %v7088_v29  ;;  %v7039_v29 = vld [vmem:[#allocation5 + $0x228] sm:$0xf]  ;;  %v6912_v44 = vor.u32 %v10188_v28, %v6911_v14  ;;  %v10248_v52 = vld [vmem:[#allocation5 + $0x314] sm:$0xf0]  ;;  %v6896_v60 = vor.u32 %v10184_v47, %v6895_v46 }
 0x1b9   :  { %5463 = vmatpush.bf16.msra.mxu3 %v7216_v41  ;;  %v10152_v41 = vld [vmem:[#allocation5 + $0x14] sm:$0xf0]  ;;  %v7040_v45 = vor.u32 %v10220_v0, %v7039_v29  ;;  %v7023_v12 = vld [vmem:[#allocation5 + $0x208] sm:$0xf] }
 0x1ba   :  { %5425 = vmatpush.bf16.msra.mxu0 %v6816_v49  ;;  %v7168_v49 = vor.u32 %v10252_v33, %v7167_v30  ;;  %v7391_v55 = vld [vmem:[#allocation5 + $0x4e8] sm:$0xf]  ;;  %v10308_v56 = vld [vmem:[#allocation5 + $0x4f4] sm:$0xf0]  ;;  %v6768_v57 = vor.u32 %v10152_v41, %v6767_v39 }
 0x1bb   :  { %5438 = vmatpush.bf16.msra.mxu1 %v6944_v50  ;;  %v10216_v50 = vld [vmem:[#allocation5 + $0x214] sm:$0xf0]  ;;  %v5211_v54 = vpop.f32.mrf.mxu3  ;;  %v7647_v58 = vld [vmem:[#allocation5 + $0x6e8] sm:$0xf] }
 0x1bc   :  { %5451 = vmatpush.bf16.msra.mxu2 %v7072_v51  ;;  %v7151_v51 = vld [vmem:[#allocation5 + $0x308] sm:$0xf]  ;;  %v10340_v43 = vld [vmem:[#allocation5 + $0x5f4] sm:$0xf0]  ;;  %v7024_v62 = vor.u32 %v10216_v50, %v7023_v12 }
 0x1bd   :  { %5464 = vmatpush.bf16.msra.mxu3 %v7200_v17  ;;  %v7519_v17 = vld [vmem:[#allocation5 + $0x5e8] sm:$0xf]  ;;  %v10372_v59 = vld [vmem:[#allocation5 + $0x6f4] sm:$0xf0]  ;;  %v7152_v53 = vor.u32 %v10248_v52, %v7151_v51 }
 0x1be   :  { %5426 = vmatpush.bf16.msra.mxu0 %v6800_v3  ;;  %v7775_v63 = vld [vmem:[#allocation5 + $0x7e8] sm:$0xf]  ;;  %v10404_v3 = vld [vmem:[#allocation5 + $0x7f4] sm:$0xf0]  ;;  %v7648_v10 = vor.u32 %v10372_v59, %v7647_v58 }
 0x1bf   :  { %5439 = vmatpush.bf16.msra.mxu1 %v6928_v6  ;;  %v7392_v6 = vor.u32 %v10308_v56, %v7391_v55  ;;  %v7375_v11 = vld [vmem:[#allocation5 + $0x4c8] sm:$0xf]  ;;  %v10304_v14 = vld [vmem:[#allocation5 + $0x4d4] sm:$0xf0] }
 0x1c0   :  { %5452 = vmatpush.bf16.msra.mxu2 %v7056_v7  ;;  %v7520_v7 = vor.u32 %v10340_v43, %v7519_v17  ;;  %v7503_v16 = vld [vmem:[#allocation5 + $0x5c8] sm:$0xf]  ;;  %v10336_v28 = vld [vmem:[#allocation5 + $0x5d4] sm:$0xf0] }
 0x1c1   :  { %5465 = vmatpush.bf16.msra.mxu3 %v7184_v21  ;;  %v7776_v21 = vor.u32 %v10404_v3, %v7775_v63  ;;  %v7631_v29 = vld [vmem:[#allocation5 + $0x6c8] sm:$0xf]  ;;  %v10368_v0 = vld [vmem:[#allocation5 + $0x6d4] sm:$0xf0]  ;;  %v7504_v39 = vor.u32 %v10336_v28, %v7503_v16 }
 0x1c2   :  { %5427 = vmatpush.bf16.msra.mxu0 %v6784_v35  ;;  %v7759_v30 = vld [vmem:[#allocation5 + $0x7c8] sm:$0xf]  ;;  %v10400_v33 = vld [vmem:[#allocation5 + $0x7d4] sm:$0xf0]  ;;  %v7376_v35 = vor.u32 %v10304_v14, %v7375_v11  ;;  %v7632_v41 = vor.u32 %v10368_v0, %v7631_v29 }
 0x1c3   :  { %5440 = vmatpush.bf16.msra.mxu1 %v6912_v44  ;;  %v7359_v44 = vld [vmem:[#allocation5 + $0x4a8] sm:$0xf]  ;;  %v7760_v47 = vor.u32 %v10400_v33, %v7759_v30  ;;  %v10332_v12 = vld [vmem:[#allocation5 + $0x5b4] sm:$0xf0] }
 0x1c4   :  { %5453 = vmatpush.bf16.msra.mxu2 %v7040_v45  ;;  %v10300_v45 = vld [vmem:[#allocation5 + $0x4b4] sm:$0xf0]  ;;  %v7487_v46 = vld [vmem:[#allocation5 + $0x5a8] sm:$0xf] }
 0x1c5   :  { %5466 = vmatpush.bf16.msra.mxu3 %v7168_v49  ;;  %v7615_v48 = vld [vmem:[#allocation5 + $0x6a8] sm:$0xf]  ;;  %v10364_v49 = vld [vmem:[#allocation5 + $0x6b4] sm:$0xf0]  ;;  %v7360_v52 = vor.u32 %v10300_v45, %v7359_v44  ;;  %v7488_v54 = vor.u32 %v10332_v12, %v7487_v46 }
 0x1c6   :  { %5428 = vmatpush.bf16.msra.mxu0 %v6768_v57  ;;  %v7743_v50 = vld [vmem:[#allocation5 + $0x7a8] sm:$0xf]  ;;  %v10396_v51 = vld [vmem:[#allocation5 + $0x7b4] sm:$0xf0]  ;;  %v7616_v55 = vor.u32 %v10364_v49, %v7615_v48 }
 0x1c7   :  { %5441 = vmatpush.bf16.msra.mxu1 %v6896_v60  ;;  %v7343_v56 = vld [vmem:[#allocation5 + $0x488] sm:$0xf]  ;;  %v10296_v17 = vld [vmem:[#allocation5 + $0x494] sm:$0xf0]  ;;  %v7744_v43 = vor.u32 %v10396_v51, %v7743_v50 }
 0x1c8   :  { %5454 = vmatpush.bf16.msra.mxu2 %v7024_v62  ;;  %v7471_v57 = vld [vmem:[#allocation5 + $0x588] sm:$0xf]  ;;  %v10328_v58 = vld [vmem:[#allocation5 + $0x594] sm:$0xf0]  ;;  %v5222_v62 = vpop.f32.mrf.mxu0 }
 0x1c9   :  { %5467 = vmatpush.bf16.msra.mxu3 %v7152_v53  ;;  %5429 = vmatmul.bf16.vlgmr.msra.gmra.mxu0 %v11331_v9  ;;  %v7599_v59 = vld [vmem:[#allocation5 + $0x688] sm:$0xf]  ;;  %v10360_v60 = vld [vmem:[#allocation5 + $0x694] sm:$0xf0]  ;;  %v5223_v53 = vadd.f32 %v5222_v62, %v11445_v4 }
 0x1ca   :  { %5473 = vmatpush.bf16.msrb.mxu0 %v7392_v6  ;;  %5442 = vmatmul.bf16.vlgmr.msra.gmra.mxu1 %v11338_v25  ;;  %v7727_v63 = vld [vmem:[#allocation5 + $0x788] sm:$0xf]  ;;  %v10392_v3 = vld [vmem:[#allocation5 + $0x794] sm:$0xf0]  ;;  %v7344_v6 = vor.u32 %v10296_v17, %v7343_v56  ;;  %v7600_v11 = vor.u32 %v10360_v60, %v7599_v59 }
 0x1cb   :  { %5486 = vmatpush.bf16.msrb.mxu1 %v7520_v7  ;;  %5455 = vmatmul.bf16.vlgmr.msra.gmra.mxu2 %v11329_v8  ;;  %v5235_v7 = vpop.f32.mrf.mxu1  ;;  %v7327_v14 = vld [vmem:[#allocation5 + $0x468] sm:$0xf]  ;;  %v10292_v16 = vld [vmem:[#allocation5 + $0x474] sm:$0xf0]  ;;  %v7728_v28 = vor.u32 %v10392_v3, %v7727_v63 }
 0x1cc   :  { %5499 = vmatpush.bf16.msrb.mxu2 %v7648_v10  ;;  %5468 = vmatmul.bf16.vlgmr.msra.gmra.mxu3 %v11333_v15  ;;  %v7472_v10 = vor.u32 %v10328_v58, %v7471_v57  ;;  %v5236_v29 = vadd.f32 %v5235_v7, %v5223_v53  ;;  %v10324_v0 = vld [vmem:[#allocation5 + $0x574] sm:$0xf0]  ;;  %v7583_v30 = vld [vmem:[#allocation5 + $0x668] sm:$0xf] }
 0x1cd   :  { %5512 = vmatpush.bf16.msrb.mxu3 %v7776_v21  ;;  %v7455_v21 = vld [vmem:[#allocation5 + $0x568] sm:$0xf]  ;;  %v10356_v33 = vld [vmem:[#allocation5 + $0x674] sm:$0xf0] }
 0x1ce   :  { %5474 = vmatpush.bf16.msrb.mxu0 %v7376_v35  ;;  %v7711_v35 = vld [vmem:[#allocation5 + $0x768] sm:$0xf]  ;;  %v7456_v4 = vor.u32 %v10324_v0, %v7455_v21  ;;  %v7584_v44 = vor.u32 %v10356_v33, %v7583_v30  ;;  %v10288_v46 = vld [vmem:[#allocation5 + $0x454] sm:$0xf0]  ;;  %v5248_v48 = vpop.f32.mrf.mxu2 }
 0x1cf   :  { %5487 = vmatpush.bf16.msrb.mxu1 %v7504_v39  ;;  %v10388_v39 = vld [vmem:[#allocation5 + $0x774] sm:$0xf0]  ;;  %v7311_v45 = vld [vmem:[#allocation5 + $0x448] sm:$0xf] }
 0x1d0   :  { %5500 = vmatpush.bf16.msrb.mxu2 %v7632_v41  ;;  %v7328_v41 = vor.u32 %v10292_v16, %v7327_v14  ;;  %v7712_v12 = vor.u32 %v10388_v39, %v7711_v35  ;;  %v10320_v49 = vld [vmem:[#allocation5 + $0x554] sm:$0xf0]  ;;  %v7567_v50 = vld [vmem:[#allocation5 + $0x648] sm:$0xf]  ;;  %v5224_v17 = vpop.f32.mrf.mxu0  ;;  %v7312_v57 = vor.u32 %v10288_v46, %v7311_v45 }
 0x1d1   :  { %5513 = vmatpush.bf16.msrb.mxu3 %v7760_v47  ;;  %v7439_v47 = vld [vmem:[#allocation5 + $0x548] sm:$0xf]  ;;  %v10352_v51 = vld [vmem:[#allocation5 + $0x654] sm:$0xf0] }
 0x1d2   :  { %5475 = vmatpush.bf16.msrb.mxu0 %v7360_v52  ;;  %v5249_v52 = vadd.f32 %v5248_v48, %v5236_v29  ;;  %v10384_v56 = vld [vmem:[#allocation5 + $0x754] sm:$0xf0]  ;;  %v7440_v59 = vor.u32 %v10320_v49, %v7439_v47  ;;  %v7568_v60 = vor.u32 %v10352_v51, %v7567_v50  ;;  %v7295_v62 = vld [vmem:[#allocation5 + $0x428] sm:$0xf] }
 0x1d3   :  { %5488 = vmatpush.bf16.msrb.mxu1 %v7488_v54  ;;  %v5261_v54 = vpop.f32.mrf.mxu3  ;;  %v10284_v63 = vld [vmem:[#allocation5 + $0x434] sm:$0xf0]  ;;  %v7423_v3 = vld [vmem:[#allocation5 + $0x528] sm:$0xf] }
 0x1d4   :  { %5501 = vmatpush.bf16.msrb.mxu2 %v7616_v55  ;;  %v7695_v55 = vld [vmem:[#allocation5 + $0x748] sm:$0xf]  ;;  %v11452_v58 = vadd.f32 %v5261_v54, %v5249_v52  ;;  %v10380_v14 = vld [vmem:[#allocation5 + $0x734] sm:$0xf0]  ;;  %v7296_v16 = vor.u32 %v10284_v63, %v7295_v62 }
 0x1d5   :  { %5514 = vmatpush.bf16.msrb.mxu3 %v7744_v43  ;;  %v5237_v43 = vpop.f32.mrf.mxu1  ;;  %v7696_v53 = vor.u32 %v10384_v56, %v7695_v55  ;;  %v7551_v7 = vld [vmem:[#allocation5 + $0x628] sm:$0xf]  ;;  %v10312_v33 = vld [vmem:[#allocation5 + $0x514] sm:$0xf0] }
 0x1d6   :  { %5476 = vmatpush.bf16.msrb.mxu0 %v7344_v6  ;;  %v10316_v6 = vld [vmem:[#allocation5 + $0x534] sm:$0xf0]  ;;  %v7279_v21 = vld [vmem:[#allocation5 + $0x408] sm:$0xf]  ;;  %v5250_v45 = vpop.f32.mrf.mxu2 }
 0x1d7   :  { %5489 = vmatpush.bf16.msrb.mxu1 %v7472_v10  ;;  %v10348_v10 = vld [vmem:[#allocation5 + $0x634] sm:$0xf0]  ;;  %v7424_v29 = vor.u32 %v10316_v6, %v7423_v3  ;;  %v7407_v30 = vld [vmem:[#allocation5 + $0x508] sm:$0xf] }
 0x1d8   :  { %5502 = vmatpush.bf16.msrb.mxu2 %v7600_v11  ;;  %v7679_v11 = vld [vmem:[#allocation5 + $0x728] sm:$0xf]  ;;  %v7552_v0 = vor.u32 %v10348_v10, %v7551_v7  ;;  %v10436_v47 = vld [vmem:[#allocation5 + $0x8f4] sm:$0xf0]  ;;  %v7408_v54 = vor.u32 %v10312_v33, %v7407_v30 }
 0x1d9   :  { %5515 = vmatpush.bf16.msrb.mxu3 %v7728_v28  ;;  %v10280_v28 = vld [vmem:[#allocation5 + $0x414] sm:$0xf0]  ;;  %v7535_v35 = vld [vmem:[#allocation5 + $0x608] sm:$0xf]  ;;  %v7680_v39 = vor.u32 %v10380_v14, %v7679_v11 }
 0x1da   :  { %5477 = vmatpush.bf16.msrb.mxu0 %v7328_v41  ;;  %v10344_v41 = vld [vmem:[#allocation5 + $0x614] sm:$0xf0]  ;;  %v7903_v46 = vld [vmem:[#allocation5 + $0x8e8] sm:$0xf]  ;;  %v7280_v49 = vor.u32 %v10280_v28, %v7279_v21 }
 0x1db   :  { %5490 = vmatpush.bf16.msrb.mxu1 %v7456_v4  ;;  %v7663_v4 = vld [vmem:[#allocation5 + $0x708] sm:$0xf]  ;;  %v5263_v48 = vpop.f32.mrf.mxu3  ;;  %v10468_v50 = vld [vmem:[#allocation5 + $0x9f4] sm:$0xf0]  ;;  %v7536_v55 = vor.u32 %v10344_v41, %v7535_v35  ;;  %v7904_v43 = vor.u32 %v10436_v47, %v7903_v46 }
 0x1dc   :  { %5503 = vmatpush.bf16.msrb.mxu2 %v7584_v44  ;;  %v10376_v44 = vld [vmem:[#allocation5 + $0x714] sm:$0xf0]  ;;  %v8159_v51 = vld [vmem:[#allocation5 + $0xae8] sm:$0xf] }
 0x1dd   :  { %5516 = vmatpush.bf16.msrb.mxu3 %v7712_v12  ;;  %v8031_v12 = vld [vmem:[#allocation5 + $0x9e8] sm:$0xf]  ;;  %v10500_v52 = vld [vmem:[#allocation5 + $0xaf4] sm:$0xf0] }
 0x1de   :  { %5478 = vmatpush.bf16.msrb.mxu0 %v7312_v57  ;;  %v8287_v56 = vld [vmem:[#allocation5 + $0xbe8] sm:$0xf]  ;;  %v10532_v17 = vld [vmem:[#allocation5 + $0xbf4] sm:$0xf0]  ;;  %v7664_v57 = vor.u32 %v10376_v44, %v7663_v4 }
 0x1df   :  { %5491 = vmatpush.bf16.msrb.mxu1 %v7440_v59  ;;  %v8032_v59 = vor.u32 %v10468_v50, %v8031_v12  ;;  %v7887_v62 = vld [vmem:[#allocation5 + $0x8c8] sm:$0xf]  ;;  %v10432_v63 = vld [vmem:[#allocation5 + $0x8d4] sm:$0xf0] }
 0x1e0   :  { %5504 = vmatpush.bf16.msrb.mxu2 %v7568_v60  ;;  %v8160_v60 = vor.u32 %v10500_v52, %v8159_v51  ;;  %v8015_v3 = vld [vmem:[#allocation5 + $0x9c8] sm:$0xf]  ;;  %v10464_v6 = vld [vmem:[#allocation5 + $0x9d4] sm:$0xf0] }
 0x1e1   :  { %5517 = vmatpush.bf16.msrb.mxu3 %v7696_v53  ;;  %v8288_v53 = vor.u32 %v10532_v17, %v8287_v56  ;;  %v8143_v7 = vld [vmem:[#allocation5 + $0xac8] sm:$0xf]  ;;  %v10496_v10 = vld [vmem:[#allocation5 + $0xad4] sm:$0xf0]  ;;  %v8016_v21 = vor.u32 %v10464_v6, %v8015_v3 }
 0x1e2   :  { %5479 = vmatpush.bf16.msrb.mxu0 %v7296_v16  ;;  %v8271_v11 = vld [vmem:[#allocation5 + $0xbc8] sm:$0xf]  ;;  %v10528_v14 = vld [vmem:[#allocation5 + $0xbd4] sm:$0xf0]  ;;  %v7888_v16 = vor.u32 %v10432_v63, %v7887_v62  ;;  %v8144_v28 = vor.u32 %v10496_v10, %v8143_v7 }
 0x1e3   :  { %5492 = vmatpush.bf16.msrb.mxu1 %v7424_v29  ;;  %v7871_v29 = vld [vmem:[#allocation5 + $0x8a8] sm:$0xf]  ;;  %v8272_v33 = vor.u32 %v10528_v14, %v8271_v11  ;;  %v10460_v35 = vld [vmem:[#allocation5 + $0x9b4] sm:$0xf0] }
 0x1e4   :  { %5505 = vmatpush.bf16.msrb.mxu2 %v7552_v0  ;;  %v10428_v0 = vld [vmem:[#allocation5 + $0x8b4] sm:$0xf0]  ;;  %v7999_v30 = vld [vmem:[#allocation5 + $0x9a8] sm:$0xf] }
 0x1e5   :  { %5518 = vmatpush.bf16.msrb.mxu3 %v7680_v39  ;;  %v8127_v39 = vld [vmem:[#allocation5 + $0xaa8] sm:$0xf]  ;;  %v10492_v41 = vld [vmem:[#allocation5 + $0xab4] sm:$0xf0]  ;;  %v7872_v45 = vor.u32 %v10428_v0, %v7871_v29  ;;  %v8000_v46 = vor.u32 %v10460_v35, %v7999_v30 }
 0x1e6   :  { %5480 = vmatpush.bf16.msrb.mxu0 %v7280_v49  ;;  %v8255_v4 = vld [vmem:[#allocation5 + $0xba8] sm:$0xf]  ;;  %v10524_v44 = vld [vmem:[#allocation5 + $0xbb4] sm:$0xf0]  ;;  %v8128_v47 = vor.u32 %v10492_v41, %v8127_v39 }
 0x1e7   :  { %5493 = vmatpush.bf16.msrb.mxu1 %v7408_v54  ;;  %v7855_v12 = vld [vmem:[#allocation5 + $0x888] sm:$0xf]  ;;  %v10424_v48 = vld [vmem:[#allocation5 + $0x894] sm:$0xf0]  ;;  %v8256_v50 = vor.u32 %v10524_v44, %v8255_v4 }
 0x1e8   :  { %5506 = vmatpush.bf16.msrb.mxu2 %v7536_v55  ;;  %v7983_v49 = vld [vmem:[#allocation5 + $0x988] sm:$0xf]  ;;  %v10456_v51 = vld [vmem:[#allocation5 + $0x994] sm:$0xf0]  ;;  %v5274_v55 = vpop.f32.mrf.mxu0 }
 0x1e9   :  { %5519 = vmatpush.bf16.msrb.mxu3 %v7664_v57  ;;  %5481 = vmatmul.bf16.vlgmr.msrb.gmra.mxu0 %v11343_v37  ;;  %v8111_v52 = vld [vmem:[#allocation5 + $0xa88] sm:$0xf]  ;;  %v10488_v54 = vld [vmem:[#allocation5 + $0xa94] sm:$0xf0]  ;;  %v5275_v57 = vadd.f32 %v5274_v55, %v11452_v58 }
 0x1ea   :  { %5525 = vmatpush.bf16.msra.mxu0 %v7904_v43  ;;  %5494 = vmatmul.bf16.vlgmr.msrb.gmra.mxu1 %v11347_v40  ;;  %v8239_v56 = vld [vmem:[#allocation5 + $0xb88] sm:$0xf]  ;;  %v10520_v17 = vld [vmem:[#allocation5 + $0xb94] sm:$0xf0]  ;;  %v7856_v43 = vor.u32 %v10424_v48, %v7855_v12  ;;  %v8112_v62 = vor.u32 %v10488_v54, %v8111_v52 }
 0x1eb   :  { %5538 = vmatpush.bf16.msra.mxu1 %v8032_v59  ;;  %5507 = vmatmul.bf16.vlgmr.msrb.gmra.mxu2 %v11341_v34  ;;  %v5287_v59 = vpop.f32.mrf.mxu1  ;;  %v7839_v63 = vld [vmem:[#allocation5 + $0x868] sm:$0xf]  ;;  %v10420_v3 = vld [vmem:[#allocation5 + $0x874] sm:$0xf0]  ;;  %v8240_v6 = vor.u32 %v10520_v17, %v8239_v56 }
 0x1ec   :  { %5551 = vmatpush.bf16.msra.mxu2 %v8160_v60  ;;  %5520 = vmatmul.bf16.vlgmr.msrb.gmra.mxu3 %v11345_v38  ;;  %v7984_v60 = vor.u32 %v10456_v51, %v7983_v49  ;;  %v5288_v7 = vadd.f32 %v5287_v59, %v5275_v57  ;;  %v10452_v10 = vld [vmem:[#allocation5 + $0x974] sm:$0xf0]  ;;  %v8095_v11 = vld [vmem:[#allocation5 + $0xa68] sm:$0xf] }
 0x1ed   :  { %5564 = vmatpush.bf16.msra.mxu3 %v8288_v53  ;;  %v7967_v53 = vld [vmem:[#allocation5 + $0x968] sm:$0xf]  ;;  %v10484_v14 = vld [vmem:[#allocation5 + $0xa74] sm:$0xf0] }
 0x1ee   :  { %5526 = vmatpush.bf16.msra.mxu0 %v7888_v16  ;;  %v8223_v16 = vld [vmem:[#allocation5 + $0xb68] sm:$0xf]  ;;  %v7968_v58 = vor.u32 %v10452_v10, %v7967_v53  ;;  %v8096_v29 = vor.u32 %v10484_v14, %v8095_v11  ;;  %v10416_v30 = vld [vmem:[#allocation5 + $0x854] sm:$0xf0]  ;;  %v5300_v39 = vpop.f32.mrf.mxu2 }
 0x1ef   :  { %5539 = vmatpush.bf16.msra.mxu1 %v8016_v21  ;;  %v10516_v21 = vld [vmem:[#allocation5 + $0xb74] sm:$0xf0]  ;;  %v7823_v0 = vld [vmem:[#allocation5 + $0x848] sm:$0xf] }
 0x1f0   :  { %5552 = vmatpush.bf16.msra.mxu2 %v8144_v28  ;;  %v7840_v28 = vor.u32 %v10420_v3, %v7839_v63  ;;  %v8224_v35 = vor.u32 %v10516_v21, %v8223_v16  ;;  %v10448_v41 = vld [vmem:[#allocation5 + $0x954] sm:$0xf0]  ;;  %v8079_v4 = vld [vmem:[#allocation5 + $0xa48] sm:$0xf]  ;;  %v5276_v48 = vpop.f32.mrf.mxu0  ;;  %v7824_v49 = vor.u32 %v10416_v30, %v7823_v0 }
 0x1f1   :  { %5565 = vmatpush.bf16.msra.mxu3 %v8272_v33  ;;  %v7951_v33 = vld [vmem:[#allocation5 + $0x948] sm:$0xf]  ;;  %v10480_v44 = vld [vmem:[#allocation5 + $0xa54] sm:$0xf0] }
 0x1f2   :  { %5527 = vmatpush.bf16.msra.mxu0 %v7872_v45  ;;  %v5301_v45 = vadd.f32 %v5300_v39, %v5288_v7  ;;  %v10512_v12 = vld [vmem:[#allocation5 + $0xb54] sm:$0xf0]  ;;  %v7952_v52 = vor.u32 %v10448_v41, %v7951_v33  ;;  %v8080_v54 = vor.u32 %v10480_v44, %v8079_v4  ;;  %v7807_v55 = vld [vmem:[#allocation5 + $0x828] sm:$0xf] }
 0x1f3   :  { %5540 = vmatpush.bf16.msra.mxu1 %v8000_v46  ;;  %v5313_v46 = vpop.f32.mrf.mxu3  ;;  %v10412_v56 = vld [vmem:[#allocation5 + $0x834] sm:$0xf0]  ;;  %v7935_v17 = vld [vmem:[#allocation5 + $0x928] sm:$0xf] }
 0x1f4   :  { %5553 = vmatpush.bf16.msra.mxu2 %v8128_v47  ;;  %v8207_v47 = vld [vmem:[#allocation5 + $0xb48] sm:$0xf]  ;;  %v11459_v51 = vadd.f32 %v5313_v46, %v5301_v45  ;;  %v10508_v63 = vld [vmem:[#allocation5 + $0xb34] sm:$0xf0]  ;;  %v7808_v3 = vor.u32 %v10412_v56, %v7807_v55 }
 0x1f5   :  { %5566 = vmatpush.bf16.msra.mxu3 %v8256_v50  ;;  %v5289_v50 = vpop.f32.mrf.mxu1  ;;  %v8208_v57 = vor.u32 %v10512_v12, %v8207_v47  ;;  %v8063_v59 = vld [vmem:[#allocation5 + $0xa28] sm:$0xf]  ;;  %v10440_v14 = vld [vmem:[#allocation5 + $0x914] sm:$0xf0] }
 0x1f6   :  { %5528 = vmatpush.bf16.msra.mxu0 %v7856_v43  ;;  %v10444_v43 = vld [vmem:[#allocation5 + $0x934] sm:$0xf0]  ;;  %v7791_v53 = vld [vmem:[#allocation5 + $0x808] sm:$0xf]  ;;  %v5302_v0 = vpop.f32.mrf.mxu2 }
 0x1f7   :  { %5541 = vmatpush.bf16.msra.mxu1 %v7984_v60  ;;  %v10476_v60 = vld [vmem:[#allocation5 + $0xa34] sm:$0xf0]  ;;  %v7936_v7 = vor.u32 %v10444_v43, %v7935_v17  ;;  %v7919_v11 = vld [vmem:[#allocation5 + $0x908] sm:$0xf] }
 0x1f8   :  { %5554 = vmatpush.bf16.msra.mxu2 %v8112_v62  ;;  %v8191_v62 = vld [vmem:[#allocation5 + $0xb28] sm:$0xf]  ;;  %v8064_v10 = vor.u32 %v10476_v60, %v8063_v59  ;;  %v10564_v33 = vld [vmem:[#allocation5 + $0xcf4] sm:$0xf0]  ;;  %v7920_v46 = vor.u32 %v10440_v14, %v7919_v11 }
 0x1f9   :  { %5567 = vmatpush.bf16.msra.mxu3 %v8240_v6  ;;  %v10408_v6 = vld [vmem:[#allocation5 + $0x814] sm:$0xf0]  ;;  %v8047_v16 = vld [vmem:[#allocation5 + $0xa08] sm:$0xf]  ;;  %v8192_v21 = vor.u32 %v10508_v63, %v8191_v62 }
 0x1fa   :  { %5529 = vmatpush.bf16.msra.mxu0 %v7840_v28  ;;  %v10472_v28 = vld [vmem:[#allocation5 + $0xa14] sm:$0xf0]  ;;  %v8415_v30 = vld [vmem:[#allocation5 + $0xce8] sm:$0xf]  ;;  %v7792_v41 = vor.u32 %v10408_v6, %v7791_v53 }
 0x1fb   :  { %5542 = vmatpush.bf16.msra.mxu1 %v7968_v58  ;;  %v8175_v58 = vld [vmem:[#allocation5 + $0xb08] sm:$0xf]  ;;  %v5315_v39 = vpop.f32.mrf.mxu3  ;;  %v10596_v4 = vld [vmem:[#allocation5 + $0xdf4] sm:$0xf0]  ;;  %v8048_v47 = vor.u32 %v10472_v28, %v8047_v16  ;;  %v8416_v50 = vor.u32 %v10564_v33, %v8415_v30 }
 0x1fc   :  { %5555 = vmatpush.bf16.msra.mxu2 %v8096_v29  ;;  %v10504_v29 = vld [vmem:[#allocation5 + $0xb14] sm:$0xf0]  ;;  %v8671_v44 = vld [vmem:[#allocation5 + $0xee8] sm:$0xf] }
 0x1fd   :  { %5568 = vmatpush.bf16.msra.mxu3 %v8224_v35  ;;  %v8543_v35 = vld [vmem:[#allocation5 + $0xde8] sm:$0xf]  ;;  %v10628_v45 = vld [vmem:[#allocation5 + $0xef4] sm:$0xf0] }
 0x1fe   :  { %5530 = vmatpush.bf16.msra.mxu0 %v7824_v49  ;;  %v8799_v12 = vld [vmem:[#allocation5 + $0xfe8] sm:$0xf]  ;;  %v10660_v48 = vld [vmem:[#allocation5 + $0xff4] sm:$0xf0]  ;;  %v8176_v49 = vor.u32 %v10504_v29, %v8175_v58 }
 0x1ff   :  { %5543 = vmatpush.bf16.msra.mxu1 %v7952_v52  ;;  %v8544_v52 = vor.u32 %v10596_v4, %v8543_v35  ;;  %v8399_v55 = vld [vmem:[#allocation5 + $0xcc8] sm:$0xf]  ;;  %v10560_v56 = vld [vmem:[#allocation5 + $0xcd4] sm:$0xf0] }
 0x200   :  { %5556 = vmatpush.bf16.msra.mxu2 %v8080_v54  ;;  %v8672_v54 = vor.u32 %v10628_v45, %v8671_v44  ;;  %v8527_v17 = vld [vmem:[#allocation5 + $0xdc8] sm:$0xf]  ;;  %v10592_v43 = vld [vmem:[#allocation5 + $0xdd4] sm:$0xf0] }
 0x201   :  { %5569 = vmatpush.bf16.msra.mxu3 %v8208_v57  ;;  %v8800_v57 = vor.u32 %v10660_v48, %v8799_v12  ;;  %v8655_v59 = vld [vmem:[#allocation5 + $0xec8] sm:$0xf]  ;;  %v10624_v60 = vld [vmem:[#allocation5 + $0xed4] sm:$0xf0]  ;;  %v8528_v53 = vor.u32 %v10592_v43, %v8527_v17 }
 0x202   :  { %5531 = vmatpush.bf16.msra.mxu0 %v7808_v3  ;;  %v8783_v62 = vld [vmem:[#allocation5 + $0xfc8] sm:$0xf]  ;;  %v10656_v63 = vld [vmem:[#allocation5 + $0xfd4] sm:$0xf0]  ;;  %v8400_v3 = vor.u32 %v10560_v56, %v8399_v55  ;;  %v8656_v6 = vor.u32 %v10624_v60, %v8655_v59 }
 0x203   :  { %5544 = vmatpush.bf16.msra.mxu1 %v7936_v7  ;;  %v8383_v7 = vld [vmem:[#allocation5 + $0xca8] sm:$0xf]  ;;  %v8784_v14 = vor.u32 %v10656_v63, %v8783_v62  ;;  %v10588_v16 = vld [vmem:[#allocation5 + $0xdb4] sm:$0xf0] }
 0x204   :  { %5557 = vmatpush.bf16.msra.mxu2 %v8064_v10  ;;  %v10556_v10 = vld [vmem:[#allocation5 + $0xcb4] sm:$0xf0]  ;;  %v8511_v11 = vld [vmem:[#allocation5 + $0xda8] sm:$0xf] }
 0x205   :  { %5570 = vmatpush.bf16.msra.mxu3 %v8192_v21  ;;  %v8639_v21 = vld [vmem:[#allocation5 + $0xea8] sm:$0xf]  ;;  %v10620_v28 = vld [vmem:[#allocation5 + $0xeb4] sm:$0xf0]  ;;  %v8384_v0 = vor.u32 %v10556_v10, %v8383_v7  ;;  %v8512_v30 = vor.u32 %v10588_v16, %v8511_v11 }
 0x206   :  { %5532 = vmatpush.bf16.msra.mxu0 %v7792_v41  ;;  %v8767_v58 = vld [vmem:[#allocation5 + $0xfa8] sm:$0xf]  ;;  %v10652_v29 = vld [vmem:[#allocation5 + $0xfb4] sm:$0xf0]  ;;  %v8640_v33 = vor.u32 %v10620_v28, %v8639_v21 }
 0x207   :  { %5545 = vmatpush.bf16.msra.mxu1 %v7920_v46  ;;  %v8367_v35 = vld [vmem:[#allocation5 + $0xc88] sm:$0xf]  ;;  %v10552_v39 = vld [vmem:[#allocation5 + $0xc94] sm:$0xf0]  ;;  %v8768_v4 = vor.u32 %v10652_v29, %v8767_v58 }
 0x208   :  { %5558 = vmatpush.bf16.msra.mxu2 %v8048_v47  ;;  %v8495_v41 = vld [vmem:[#allocation5 + $0xd88] sm:$0xf]  ;;  %v10584_v44 = vld [vmem:[#allocation5 + $0xd94] sm:$0xf0]  ;;  %v5326_v47 = vpop.f32.mrf.mxu0 }
 0x209   :  { %5571 = vmatpush.bf16.msra.mxu3 %v8176_v49  ;;  %5533 = vmatmul.bf16.vlgmr.msra.gmra.mxu0 %v11353_v18  ;;  %v8623_v45 = vld [vmem:[#allocation5 + $0xe88] sm:$0xf]  ;;  %v10616_v46 = vld [vmem:[#allocation5 + $0xe94] sm:$0xf0]  ;;  %v5327_v49 = vadd.f32 %v5326_v47, %v11459_v51 }
 0x20a   :  { %5577 = vmatpush.bf16.msrb.mxu0 %v8416_v50  ;;  %5546 = vmatmul.bf16.vlgmr.msra.gmra.mxu1 %v11357_v23  ;;  %v8751_v12 = vld [vmem:[#allocation5 + $0xf88] sm:$0xf]  ;;  %v10648_v48 = vld [vmem:[#allocation5 + $0xf94] sm:$0xf0]  ;;  %v8368_v50 = vor.u32 %v10552_v39, %v8367_v35  ;;  %v8624_v55 = vor.u32 %v10616_v46, %v8623_v45 }
 0x20b   :  { %5590 = vmatpush.bf16.msrb.mxu1 %v8544_v52  ;;  %5559 = vmatmul.bf16.vlgmr.msra.gmra.mxu2 %v11355_v22  ;;  %v5339_v52 = vpop.f32.mrf.mxu1  ;;  %v8351_v56 = vld [vmem:[#allocation5 + $0xc68] sm:$0xf]  ;;  %v10548_v17 = vld [vmem:[#allocation5 + $0xc74] sm:$0xf0]  ;;  %v8752_v43 = vor.u32 %v10648_v48, %v8751_v12 }
 0x20c   :  { %5603 = vmatpush.bf16.msrb.mxu2 %v8672_v54  ;;  %5572 = vmatmul.bf16.vlgmr.msra.gmra.mxu3 %v11359_v27  ;;  %v8496_v54 = vor.u32 %v10584_v44, %v8495_v41  ;;  %v5340_v59 = vadd.f32 %v5339_v52, %v5327_v49  ;;  %v10580_v60 = vld [vmem:[#allocation5 + $0xd74] sm:$0xf0]  ;;  %v8607_v62 = vld [vmem:[#allocation5 + $0xe68] sm:$0xf] }
 0x20d   :  { %5616 = vmatpush.bf16.msrb.mxu3 %v8800_v57  ;;  %v8479_v57 = vld [vmem:[#allocation5 + $0xd68] sm:$0xf]  ;;  %v10612_v63 = vld [vmem:[#allocation5 + $0xe74] sm:$0xf0] }
 0x20e   :  { %5578 = vmatpush.bf16.msrb.mxu0 %v8400_v3  ;;  %v8735_v3 = vld [vmem:[#allocation5 + $0xf68] sm:$0xf]  ;;  %v8480_v51 = vor.u32 %v10580_v60, %v8479_v57  ;;  %v8608_v7 = vor.u32 %v10612_v63, %v8607_v62  ;;  %v10544_v11 = vld [vmem:[#allocation5 + $0xc54] sm:$0xf0]  ;;  %v5352_v21 = vpop.f32.mrf.mxu2 }
 0x20f   :  { %5591 = vmatpush.bf16.msrb.mxu1 %v8528_v53  ;;  %v10644_v53 = vld [vmem:[#allocation5 + $0xf74] sm:$0xf0]  ;;  %v8335_v10 = vld [vmem:[#allocation5 + $0xc48] sm:$0xf] }
 0x210   :  { %5604 = vmatpush.bf16.msrb.mxu2 %v8656_v6  ;;  %v8352_v6 = vor.u32 %v10548_v17, %v8351_v56  ;;  %v8736_v16 = vor.u32 %v10644_v53, %v8735_v3  ;;  %v10576_v28 = vld [vmem:[#allocation5 + $0xd54] sm:$0xf0]  ;;  %v8591_v58 = vld [vmem:[#allocation5 + $0xe48] sm:$0xf]  ;;  %v5328_v39 = vpop.f32.mrf.mxu0  ;;  %v8336_v41 = vor.u32 %v10544_v11, %v8335_v10 }
 0x211   :  { %5617 = vmatpush.bf16.msrb.mxu3 %v8784_v14  ;;  %v8463_v14 = vld [vmem:[#allocation5 + $0xd48] sm:$0xf]  ;;  %v10608_v29 = vld [vmem:[#allocation5 + $0xe54] sm:$0xf0] }
 0x212   :  { %5579 = vmatpush.bf16.msrb.mxu0 %v8384_v0  ;;  %v5353_v0 = vadd.f32 %v5352_v21, %v5340_v59  ;;  %v10640_v35 = vld [vmem:[#allocation5 + $0xf54] sm:$0xf0]  ;;  %v8464_v45 = vor.u32 %v10576_v28, %v8463_v14  ;;  %v8592_v46 = vor.u32 %v10608_v29, %v8591_v58  ;;  %v8319_v47 = vld [vmem:[#allocation5 + $0xc28] sm:$0xf] }
 0x213   :  { %5592 = vmatpush.bf16.msrb.mxu1 %v8512_v30  ;;  %v5365_v30 = vpop.f32.mrf.mxu3  ;;  %v10540_v12 = vld [vmem:[#allocation5 + $0xc34] sm:$0xf0]  ;;  %v8447_v48 = vld [vmem:[#allocation5 + $0xd28] sm:$0xf] }
 0x214   :  { %5605 = vmatpush.bf16.msrb.mxu2 %v8640_v33  ;;  %v8719_v33 = vld [vmem:[#allocation5 + $0xf48] sm:$0xf]  ;;  %v11466_v44 = vadd.f32 %v5365_v30, %v5353_v0  ;;  %v10636_v56 = vld [vmem:[#allocation5 + $0xf34] sm:$0xf0]  ;;  %v8320_v17 = vor.u32 %v10540_v12, %v8319_v47 }
 0x215   :  { %5618 = vmatpush.bf16.msrb.mxu3 %v8768_v4  ;;  %v5341_v4 = vpop.f32.mrf.mxu1  ;;  %v8720_v49 = vor.u32 %v10640_v35, %v8719_v33  ;;  %v8575_v52 = vld [vmem:[#allocation5 + $0xe28] sm:$0xf]  ;;  %v10568_v63 = vld [vmem:[#allocation5 + $0xd14] sm:$0xf0] }
 0x216   :  { %5580 = vmatpush.bf16.msrb.mxu0 %v8368_v50  ;;  %v10572_v50 = vld [vmem:[#allocation5 + $0xd34] sm:$0xf0]  ;;  %v8303_v57 = vld [vmem:[#allocation5 + $0xc08] sm:$0xf]  ;;  %v5354_v10 = vpop.f32.mrf.mxu2 }
 0x217   :  { %5593 = vmatpush.bf16.msrb.mxu1 %v8496_v54  ;;  %v10604_v54 = vld [vmem:[#allocation5 + $0xe34] sm:$0xf0]  ;;  %v8448_v59 = vor.u32 %v10572_v50, %v8447_v48  ;;  %v8431_v62 = vld [vmem:[#allocation5 + $0xd08] sm:$0xf] }
 0x218   :  { %5606 = vmatpush.bf16.msrb.mxu2 %v8624_v55  ;;  %v8703_v55 = vld [vmem:[#allocation5 + $0xf28] sm:$0xf]  ;;  %v8576_v60 = vor.u32 %v10604_v54, %v8575_v52  ;;  %v10692_v14 = vld [vmem:[#allocation5 + $0x10f4] sm:$0xf0]  ;;  %v8432_v30 = vor.u32 %v10568_v63, %v8431_v62 }
 0x219   :  { %5619 = vmatpush.bf16.msrb.mxu3 %v8752_v43  ;;  %v10536_v43 = vld [vmem:[#allocation5 + $0xc14] sm:$0xf0]  ;;  %v8559_v3 = vld [vmem:[#allocation5 + $0xe08] sm:$0xf]  ;;  %v8704_v53 = vor.u32 %v10636_v56, %v8703_v55 }
 0x21a   :  { %5581 = vmatpush.bf16.msrb.mxu0 %v8352_v6  ;;  %v10600_v6 = vld [vmem:[#allocation5 + $0xe14] sm:$0xf0]  ;;  %v8927_v11 = vld [vmem:[#allocation5 + $0x10e8] sm:$0xf]  ;;  %v8304_v28 = vor.u32 %v10536_v43, %v8303_v57 }
 0x21b   :  { %5594 = vmatpush.bf16.msrb.mxu1 %v8480_v51  ;;  %v8687_v51 = vld [vmem:[#allocation5 + $0xf08] sm:$0xf]  ;;  %v5367_v21 = vpop.f32.mrf.mxu3  ;;  %v10724_v58 = vld [vmem:[#allocation5 + $0x11f4] sm:$0xf0]  ;;  %v8560_v33 = vor.u32 %v10600_v6, %v8559_v3  ;;  %v8928_v4 = vor.u32 %v10692_v14, %v8927_v11 }
 0x21c   :  { %5607 = vmatpush.bf16.msrb.mxu2 %v8608_v7  ;;  %v10632_v7 = vld [vmem:[#allocation5 + $0xf14] sm:$0xf0]  ;;  %v9183_v29 = vld [vmem:[#allocation5 + $0x12e8] sm:$0xf] }
 0x21d   :  { %5620 = vmatpush.bf16.msrb.mxu3 %v8736_v16  ;;  %v9055_v16 = vld [vmem:[#allocation5 + $0x11e8] sm:$0xf]  ;;  %v10756_v0 = vld [vmem:[#allocation5 + $0x12f4] sm:$0xf0] }
 0x21e   :  { %5582 = vmatpush.bf16.msrb.mxu0 %v8336_v41  ;;  %v9311_v35 = vld [vmem:[#allocation5 + $0x13e8] sm:$0xf]  ;;  %v10788_v39 = vld [vmem:[#allocation5 + $0x13f4] sm:$0xf0]  ;;  %v8688_v41 = vor.u32 %v10632_v7, %v8687_v51 }
 0x21f   :  { %5595 = vmatpush.bf16.msrb.mxu1 %v8464_v45  ;;  %v9056_v45 = vor.u32 %v10724_v58, %v9055_v16  ;;  %v8911_v47 = vld [vmem:[#allocation5 + $0x10c8] sm:$0xf]  ;;  %v10688_v12 = vld [vmem:[#allocation5 + $0x10d4] sm:$0xf0] }
 0x220   :  { %5608 = vmatpush.bf16.msrb.mxu2 %v8592_v46  ;;  %v9184_v46 = vor.u32 %v10756_v0, %v9183_v29  ;;  %v9039_v48 = vld [vmem:[#allocation5 + $0x11c8] sm:$0xf]  ;;  %v10720_v50 = vld [vmem:[#allocation5 + $0x11d4] sm:$0xf0] }
 0x221   :  { %5621 = vmatpush.bf16.msrb.mxu3 %v8720_v49  ;;  %v9312_v49 = vor.u32 %v10788_v39, %v9311_v35  ;;  %v9167_v52 = vld [vmem:[#allocation5 + $0x12c8] sm:$0xf]  ;;  %v10752_v54 = vld [vmem:[#allocation5 + $0x12d4] sm:$0xf0]  ;;  %v9040_v57 = vor.u32 %v10720_v50, %v9039_v48 }
 0x222   :  { %5583 = vmatpush.bf16.msrb.mxu0 %v8320_v17  ;;  %v9295_v55 = vld [vmem:[#allocation5 + $0x13c8] sm:$0xf]  ;;  %v10784_v56 = vld [vmem:[#allocation5 + $0x13d4] sm:$0xf0]  ;;  %v8912_v17 = vor.u32 %v10688_v12, %v8911_v47  ;;  %v9168_v43 = vor.u32 %v10752_v54, %v9167_v52 }
 0x223   :  { %5596 = vmatpush.bf16.msrb.mxu1 %v8448_v59  ;;  %v8895_v59 = vld [vmem:[#allocation5 + $0x10a8] sm:$0xf]  ;;  %v9296_v63 = vor.u32 %v10784_v56, %v9295_v55  ;;  %v10716_v3 = vld [vmem:[#allocation5 + $0x11b4] sm:$0xf0] }
 0x224   :  { %5609 = vmatpush.bf16.msrb.mxu2 %v8576_v60  ;;  %v10684_v60 = vld [vmem:[#allocation5 + $0x10b4] sm:$0xf0]  ;;  %v9023_v62 = vld [vmem:[#allocation5 + $0x11a8] sm:$0xf] }
 0x225   :  { %5622 = vmatpush.bf16.msrb.mxu3 %v8704_v53  ;;  %v9151_v53 = vld [vmem:[#allocation5 + $0x12a8] sm:$0xf]  ;;  %v10748_v6 = vld [vmem:[#allocation5 + $0x12b4] sm:$0xf0]  ;;  %v8896_v10 = vor.u32 %v10684_v60, %v8895_v59  ;;  %v9024_v11 = vor.u32 %v10716_v3, %v9023_v62 }
 0x226   :  { %5584 = vmatpush.bf16.msrb.mxu0 %v8304_v28  ;;  %v9279_v51 = vld [vmem:[#allocation5 + $0x13a8] sm:$0xf]  ;;  %v10780_v7 = vld [vmem:[#allocation5 + $0x13b4] sm:$0xf0]  ;;  %v9152_v14 = vor.u32 %v10748_v6, %v9151_v53 }
 0x227   :  { %5597 = vmatpush.bf16.msrb.mxu1 %v8432_v30  ;;  %v8879_v16 = vld [vmem:[#allocation5 + $0x1088] sm:$0xf]  ;;  %v10680_v21 = vld [vmem:[#allocation5 + $0x1094] sm:$0xf0]  ;;  %v9280_v58 = vor.u32 %v10780_v7, %v9279_v51 }
 0x228   :  { %5610 = vmatpush.bf16.msrb.mxu2 %v8560_v33  ;;  %v9007_v28 = vld [vmem:[#allocation5 + $0x1188] sm:$0xf]  ;;  %v10712_v29 = vld [vmem:[#allocation5 + $0x1194] sm:$0xf0]  ;;  %v5378_v33 = vpop.f32.mrf.mxu0 }
 0x229   :  { %5623 = vmatpush.bf16.msrb.mxu3 %v8688_v41  ;;  %5585 = vmatmul.bf16.vlgmr.msrb.gmra.mxu0 %v11365_v13  ;;  %v9135_v0 = vld [vmem:[#allocation5 + $0x1288] sm:$0xf]  ;;  %v10744_v30 = vld [vmem:[#allocation5 + $0x1294] sm:$0xf0]  ;;  %v5379_v41 = vadd.f32 %v5378_v33, %v11466_v44 }
 0x22a   :  { %5629 = vmatpush.bf16.msra.mxu0 %v8928_v4  ;;  %5598 = vmatmul.bf16.vlgmr.msrb.gmra.mxu1 %v11369_v20  ;;  %v9263_v35 = vld [vmem:[#allocation5 + $0x1388] sm:$0xf]  ;;  %v10776_v39 = vld [vmem:[#allocation5 + $0x1394] sm:$0xf0]  ;;  %v8880_v4 = vor.u32 %v10680_v21, %v8879_v16  ;;  %v9136_v47 = vor.u32 %v10744_v30, %v9135_v0 }
 0x22b   :  { %5642 = vmatpush.bf16.msra.mxu1 %v9056_v45  ;;  %5611 = vmatmul.bf16.vlgmr.msrb.gmra.mxu2 %v11367_v19  ;;  %v5391_v45 = vpop.f32.mrf.mxu1  ;;  %v8863_v12 = vld [vmem:[#allocation5 + $0x1068] sm:$0xf]  ;;  %v10676_v48 = vld [vmem:[#allocation5 + $0x1074] sm:$0xf0]  ;;  %v9264_v50 = vor.u32 %v10776_v39, %v9263_v35 }
 0x22c   :  { %5655 = vmatpush.bf16.msra.mxu2 %v9184_v46  ;;  %5624 = vmatmul.bf16.vlgmr.msrb.gmra.mxu3 %v11371_v26  ;;  %v9008_v46 = vor.u32 %v10712_v29, %v9007_v28  ;;  %v5392_v52 = vadd.f32 %v5391_v45, %v5379_v41  ;;  %v10708_v54 = vld [vmem:[#allocation5 + $0x1174] sm:$0xf0]  ;;  %v9119_v55 = vld [vmem:[#allocation5 + $0x1268] sm:$0xf] }
 0x22d   :  { %5668 = vmatpush.bf16.msra.mxu3 %v9312_v49  ;;  %v8991_v49 = vld [vmem:[#allocation5 + $0x1168] sm:$0xf]  ;;  %v10740_v56 = vld [vmem:[#allocation5 + $0x1274] sm:$0xf0] }
 0x22e   :  { %5630 = vmatpush.bf16.msra.mxu0 %v8912_v17  ;;  %v9247_v17 = vld [vmem:[#allocation5 + $0x1368] sm:$0xf]  ;;  %v8992_v44 = vor.u32 %v10708_v54, %v8991_v49  ;;  %v9120_v59 = vor.u32 %v10740_v56, %v9119_v55  ;;  %v10672_v62 = vld [vmem:[#allocation5 + $0x1054] sm:$0xf0]  ;;  %v5404_v53 = vpop.f32.mrf.mxu2 }
 0x22f   :  { %5643 = vmatpush.bf16.msra.mxu1 %v9040_v57  ;;  %v10772_v57 = vld [vmem:[#allocation5 + $0x1374] sm:$0xf0]  ;;  %v8847_v60 = vld [vmem:[#allocation5 + $0x1048] sm:$0xf] }
 0x230   :  { %5656 = vmatpush.bf16.msra.mxu2 %v9168_v43  ;;  %v8864_v43 = vor.u32 %v10676_v48, %v8863_v12  ;;  %v9248_v3 = vor.u32 %v10772_v57, %v9247_v17  ;;  %v10704_v6 = vld [vmem:[#allocation5 + $0x1154] sm:$0xf0]  ;;  %v9103_v51 = vld [vmem:[#allocation5 + $0x1248] sm:$0xf]  ;;  %v5380_v21 = vpop.f32.mrf.mxu0  ;;  %v8848_v28 = vor.u32 %v10672_v62, %v8847_v60 }
 0x231   :  { %5669 = vmatpush.bf16.msra.mxu3 %v9296_v63  ;;  %v8975_v63 = vld [vmem:[#allocation5 + $0x1148] sm:$0xf]  ;;  %v10736_v7 = vld [vmem:[#allocation5 + $0x1254] sm:$0xf0] }
 0x232   :  { %5631 = vmatpush.bf16.msra.mxu0 %v8896_v10  ;;  %v5405_v10 = vadd.f32 %v5404_v53, %v5392_v52  ;;  %v10768_v16 = vld [vmem:[#allocation5 + $0x1354] sm:$0xf0]  ;;  %v8976_v0 = vor.u32 %v10704_v6, %v8975_v63  ;;  %v9104_v30 = vor.u32 %v10736_v7, %v9103_v51  ;;  %v8831_v33 = vld [vmem:[#allocation5 + $0x1028] sm:$0xf] }
 0x233   :  { %5644 = vmatpush.bf16.msra.mxu1 %v9024_v11  ;;  %v5417_v11 = vpop.f32.mrf.mxu3  ;;  %v10668_v35 = vld [vmem:[#allocation5 + $0x1034] sm:$0xf0]  ;;  %v8959_v39 = vld [vmem:[#allocation5 + $0x1128] sm:$0xf] }
 0x234   :  { %5657 = vmatpush.bf16.msra.mxu2 %v9152_v14  ;;  %v9231_v14 = vld [vmem:[#allocation5 + $0x1348] sm:$0xf]  ;;  %v11473_v29 = vadd.f32 %v5417_v11, %v5405_v10  ;;  %v10764_v12 = vld [vmem:[#allocation5 + $0x1334] sm:$0xf0]  ;;  %v8832_v48 = vor.u32 %v10668_v35, %v8831_v33 }
 0x235   :  { %5670 = vmatpush.bf16.msra.mxu3 %v9280_v58  ;;  %v5393_v58 = vpop.f32.mrf.mxu1  ;;  %v9232_v41 = vor.u32 %v10768_v16, %v9231_v14  ;;  %v9087_v45 = vld [vmem:[#allocation5 + $0x1228] sm:$0xf]  ;;  %v10696_v56 = vld [vmem:[#allocation5 + $0x1114] sm:$0xf0] }
 0x236   :  { %5632 = vmatpush.bf16.msra.mxu0 %v8880_v4  ;;  %v10700_v4 = vld [vmem:[#allocation5 + $0x1134] sm:$0xf0]  ;;  %v8815_v49 = vld [vmem:[#allocation5 + $0x1008] sm:$0xf]  ;;  %v5406_v60 = vpop.f32.mrf.mxu2 }
 0x237   :  { %5645 = vmatpush.bf16.msra.mxu1 %v9008_v46  ;;  %v10732_v46 = vld [vmem:[#allocation5 + $0x1234] sm:$0xf0]  ;;  %v8960_v52 = vor.u32 %v10700_v4, %v8959_v39  ;;  %v8943_v55 = vld [vmem:[#allocation5 + $0x1108] sm:$0xf] }
 0x238   :  { %5658 = vmatpush.bf16.msra.mxu2 %v9136_v47  ;;  %v9215_v47 = vld [vmem:[#allocation5 + $0x1328] sm:$0xf]  ;;  %v9088_v54 = vor.u32 %v10732_v46, %v9087_v45  ;;  %v10820_v63 = vld [vmem:[#allocation5 + $0x14f4] sm:$0xf0]  ;;  %v8944_v11 = vor.u32 %v10696_v56, %v8943_v55 }
 0x239   :  { %5671 = vmatpush.bf16.msra.mxu3 %v9264_v50  ;;  %v10664_v50 = vld [vmem:[#allocation5 + $0x1014] sm:$0xf0]  ;;  %v9071_v17 = vld [vmem:[#allocation5 + $0x1208] sm:$0xf]  ;;  %v9216_v57 = vor.u32 %v10764_v12, %v9215_v47 }
 0x23a   :  { %5633 = vmatpush.bf16.msra.mxu0 %v8864_v43  ;;  %v10728_v43 = vld [vmem:[#allocation5 + $0x1214] sm:$0xf0]  ;;  %v9439_v62 = vld [vmem:[#allocation5 + $0x14e8] sm:$0xf]  ;;  %v8816_v6 = vor.u32 %v10664_v50, %v8815_v49 }
 0x23b   :  { %5646 = vmatpush.bf16.msra.mxu1 %v8992_v44  ;;  %v9199_v44 = vld [vmem:[#allocation5 + $0x1308] sm:$0xf]  ;;  %v5419_v53 = vpop.f32.mrf.mxu3  ;;  %v10852_v51 = vld [vmem:[#allocation5 + $0x15f4] sm:$0xf0]  ;;  %v9072_v14 = vor.u32 %v10728_v43, %v9071_v17  ;;  %v9440_v58 = vor.u32 %v10820_v63, %v9439_v62 }
 0x23c   :  { %5659 = vmatpush.bf16.msra.mxu2 %v9120_v59  ;;  %v10760_v59 = vld [vmem:[#allocation5 + $0x1314] sm:$0xf0]  ;;  %v9695_v7 = vld [vmem:[#allocation5 + $0x16e8] sm:$0xf] }
 0x23d   :  { %5672 = vmatpush.bf16.msra.mxu3 %v9248_v3  ;;  %v9567_v3 = vld [vmem:[#allocation5 + $0x15e8] sm:$0xf]  ;;  %v10884_v10 = vld [vmem:[#allocation5 + $0x16f4] sm:$0xf0] }
 0x23e   :  { %5634 = vmatpush.bf16.msra.mxu0 %v8848_v28  ;;  %v9823_v16 = vld [vmem:[#allocation5 + $0x17e8] sm:$0xf]  ;;  %v10916_v21 = vld [vmem:[#allocation5 + $0x17f4] sm:$0xf0]  ;;  %v9200_v28 = vor.u32 %v10760_v59, %v9199_v44 }
 0x23f   :  { %5647 = vmatpush.bf16.msra.mxu1 %v8976_v0  ;;  %v9568_v0 = vor.u32 %v10852_v51, %v9567_v3  ;;  %v9423_v33 = vld [vmem:[#allocation5 + $0x14c8] sm:$0xf]  ;;  %v10816_v35 = vld [vmem:[#allocation5 + $0x14d4] sm:$0xf0]  ;;  %v11018_v51 = vld [vmem:[#allocation7] sm:$0xf] }
 0x240   :  { %5660 = vmatpush.bf16.msra.mxu2 %v9104_v30  ;;  %v9696_v30 = vor.u32 %v10884_v10, %v9695_v7  ;;  %v9551_v39 = vld [vmem:[#allocation5 + $0x15c8] sm:$0xf]  ;;  %v10848_v4 = vld [vmem:[#allocation5 + $0x15d4] sm:$0xf0]  ;;  %v951_v7 = vperm.slane %v11018_v51, 2 }
 0x241   :  { %5673 = vmatpush.bf16.msra.mxu3 %v9232_v41  ;;  %v9824_v41 = vor.u32 %v10916_v21, %v9823_v16  ;;  %v9679_v45 = vld [vmem:[#allocation5 + $0x16c8] sm:$0xf]  ;;  %v10880_v46 = vld [vmem:[#allocation5 + $0x16d4] sm:$0xf0]  ;;  %v9552_v49 = vor.u32 %v10848_v4, %v9551_v39 }
 0x242   :  { %5635 = vmatpush.bf16.msra.mxu0 %v8832_v48  ;;  %v9807_v47 = vld [vmem:[#allocation5 + $0x17c8] sm:$0xf]  ;;  %v10912_v12 = vld [vmem:[#allocation5 + $0x17d4] sm:$0xf0]  ;;  %v9424_v48 = vor.u32 %v10816_v35, %v9423_v33  ;;  %v9680_v50 = vor.u32 %v10880_v46, %v9679_v45 }
 0x243   :  { %5648 = vmatpush.bf16.msra.mxu1 %v8960_v52  ;;  %v9407_v52 = vld [vmem:[#allocation5 + $0x14a8] sm:$0xf]  ;;  %v9808_v56 = vor.u32 %v10912_v12, %v9807_v47  ;;  %v10844_v17 = vld [vmem:[#allocation5 + $0x15b4] sm:$0xf0] }
 0x244   :  { %5661 = vmatpush.bf16.msra.mxu2 %v9088_v54  ;;  %v10812_v54 = vld [vmem:[#allocation5 + $0x14b4] sm:$0xf0]  ;;  %v9535_v55 = vld [vmem:[#allocation5 + $0x15a8] sm:$0xf] }
 0x245   :  { %5674 = vmatpush.bf16.msra.mxu3 %v9216_v57  ;;  %v9663_v57 = vld [vmem:[#allocation5 + $0x16a8] sm:$0xf]  ;;  %v10876_v43 = vld [vmem:[#allocation5 + $0x16b4] sm:$0xf0]  ;;  %v9408_v60 = vor.u32 %v10812_v54, %v9407_v52  ;;  %v9536_v63 = vor.u32 %v10844_v17, %v9535_v55 }
 0x246   :  { %5636 = vmatpush.bf16.msra.mxu0 %v8816_v6  ;;  %v9791_v44 = vld [vmem:[#allocation5 + $0x17a8] sm:$0xf]  ;;  %v10908_v59 = vld [vmem:[#allocation5 + $0x17b4] sm:$0xf0]  ;;  %v9664_v3 = vor.u32 %v10876_v43, %v9663_v57 }
 0x247   :  { %5649 = vmatpush.bf16.msra.mxu1 %v8944_v11  ;;  %v9391_v62 = vld [vmem:[#allocation5 + $0x1488] sm:$0xf]  ;;  %v10808_v53 = vld [vmem:[#allocation5 + $0x1494] sm:$0xf0]  ;;  %v9792_v10 = vor.u32 %v10908_v59, %v9791_v44  ;;  %v5443_v45 = vpop.f32.mrf.mxu1 }
 0x248   :  { %5662 = vmatpush.bf16.msra.mxu2 %v9072_v14  ;;  %v9519_v6 = vld [vmem:[#allocation5 + $0x1588] sm:$0xf]  ;;  %v10840_v11 = vld [vmem:[#allocation5 + $0x1594] sm:$0xf0] }
 0x249   :  { %5675 = vmatpush.bf16.msra.mxu3 %v9200_v28  ;;  %5637 = vmatmul.bf16.vlgmr.msra.gmra.mxu0 %v11377_v24  ;;  %v9647_v14 = vld [vmem:[#allocation5 + $0x1688] sm:$0xf]  ;;  %v10872_v16 = vld [vmem:[#allocation5 + $0x1694] sm:$0xf0] }
 0x24a   :  { %5681 = vmatpush.bf16.msrb.mxu0 %v9440_v58  ;;  %5650 = vmatmul.bf16.vlgmr.msra.gmra.mxu1 %v11381_v32  ;;  %v9775_v21 = vld [vmem:[#allocation5 + $0x1788] sm:$0xf]  ;;  %v10904_v28 = vld [vmem:[#allocation5 + $0x1794] sm:$0xf0]  ;;  %v9392_v58 = vor.u32 %v10808_v53, %v9391_v62  ;;  %v9648_v33 = vor.u32 %v10872_v16, %v9647_v14 }
 0x24b   :  { %5694 = vmatpush.bf16.msrb.mxu1 %v9568_v0  ;;  %5663 = vmatmul.bf16.vlgmr.msra.gmra.mxu2 %v11379_v31  ;;  %v5430_v0 = vpop.f32.mrf.mxu0  ;;  %v9375_v35 = vld [vmem:[#allocation5 + $0x1468] sm:$0xf]  ;;  %v10804_v39 = vld [vmem:[#allocation5 + $0x1474] sm:$0xf0]  ;;  %v9776_v46 = vor.u32 %v10904_v28, %v9775_v21 }
 0x24c   :  { %5707 = vmatpush.bf16.msrb.mxu2 %v9696_v30  ;;  %5676 = vmatmul.bf16.vlgmr.msra.gmra.mxu3 %v11383_v36  ;;  %v9520_v30 = vor.u32 %v10840_v11, %v9519_v6  ;;  %v5431_v4 = vadd.f32 %v5430_v0, %v951_v7  ;;  %v10836_v47 = vld [vmem:[#allocation5 + $0x1574] sm:$0xf0]  ;;  %v9631_v12 = vld [vmem:[#allocation5 + $0x1668] sm:$0xf]  ;;  %v9376_v54 = vor.u32 %v10804_v39, %v9375_v35 }
 0x24d   :  { %5720 = vmatpush.bf16.msrb.mxu3 %v9824_v41  ;;  %v9503_v41 = vld [vmem:[#allocation5 + $0x1568] sm:$0xf]  ;;  %v10800_v57 = vld [vmem:[#allocation5 + $0x1454] sm:$0xf0] }
 0x24e   :  { %5682 = vmatpush.bf16.msrb.mxu0 %v9424_v48  ;;  %v10868_v48 = vld [vmem:[#allocation5 + $0x1674] sm:$0xf0]  ;;  %v5444_v52 = vadd.f32 %v5443_v45, %v5431_v4  ;;  %v9504_v55 = vor.u32 %v10836_v47, %v9503_v41  ;;  %v9359_v17 = vld [vmem:[#allocation5 + $0x1448] sm:$0xf]  ;;  %v5456_v44 = vpop.f32.mrf.mxu2 }
 0x24f   :  { %5695 = vmatpush.bf16.msrb.mxu1 %v9552_v49  ;;  %v9759_v49 = vld [vmem:[#allocation5 + $0x1768] sm:$0xf]  ;;  %v5469_v53 = vpop.f32.mrf.mxu3  ;;  %v10896_v51 = vld [vmem:[#allocation5 + $0x1754] sm:$0xf0]  ;;  %v9360_v7 = vor.u32 %v10800_v57, %v9359_v17  ;;  %v5445_v0 = vpop.f32.mrf.mxu1 }
 0x250   :  { %5708 = vmatpush.bf16.msrb.mxu2 %v9680_v50  ;;  %v10900_v50 = vld [vmem:[#allocation5 + $0x1774] sm:$0xf0]  ;;  %v9487_v43 = vld [vmem:[#allocation5 + $0x1548] sm:$0xf]  ;;  %v6865_v0 = vld [vmem:[#allocation5 + $0xd8] sm:$0xf0] }
 0x251   :  { %5721 = vmatpush.bf16.msrb.mxu3 %v9808_v56  ;;  %v9632_v56 = vor.u32 %v10868_v48, %v9631_v12  ;;  %v9760_v59 = vor.u32 %v10900_v50, %v9759_v49  ;;  %v9615_v62 = vld [vmem:[#allocation5 + $0x1648] sm:$0xf]  ;;  %v10796_v28 = vld [vmem:[#allocation5 + $0x1434] sm:$0xf0] }
 0x252   :  { %5683 = vmatpush.bf16.msrb.mxu0 %v9408_v60  ;;  %v10832_v60 = vld [vmem:[#allocation5 + $0x1554] sm:$0xf0]  ;;  %v9743_v6 = vld [vmem:[#allocation5 + $0x1748] sm:$0xf] }
 0x253   :  { %5696 = vmatpush.bf16.msrb.mxu1 %v9536_v63  ;;  %v10864_v63 = vld [vmem:[#allocation5 + $0x1654] sm:$0xf0]  ;;  %v5432_v11 = vpop.f32.mrf.mxu0  ;;  %v9488_v14 = vor.u32 %v10832_v60, %v9487_v43  ;;  %v9343_v21 = vld [vmem:[#allocation5 + $0x1428] sm:$0xf]  ;;  %v10210_v60 = vld [vmem:[#allocation5 + $0x1ec] sm:$0xf] }
 0x254   :  { %5709 = vmatpush.bf16.msrb.mxu2 %v9664_v3  ;;  %v5457_v3 = vadd.f32 %v5456_v44, %v5444_v52  ;;  %v9616_v16 = vor.u32 %v10864_v63, %v9615_v62  ;;  %v9599_v35 = vld [vmem:[#allocation5 + $0x1628] sm:$0xf]  ;;  %v10860_v39 = vld [vmem:[#allocation5 + $0x1634] sm:$0xf0]  ;;  %v9344_v45 = vor.u32 %v10796_v28, %v9343_v21  ;;  %v10178_v44 = vld [vmem:[#allocation5 + $0xec] sm:$0xf] }
 0x255   :  { %5722 = vmatpush.bf16.msrb.mxu3 %v9792_v10  ;;  %v9727_v41 = vld [vmem:[#allocation5 + $0x1728] sm:$0xf]  ;;  %v10892_v4 = vld [vmem:[#allocation5 + $0x1734] sm:$0xf0]  ;;  %v9600_v48 = vor.u32 %v10860_v39, %v9599_v35  ;;  %v7009_v63 = vld [vmem:[#allocation5 + $0x1f8] sm:$0xf0] }
 0x256   :  { %5684 = vmatpush.bf16.msrb.mxu0 %v9392_v58  ;;  %v11479_v10 = vadd.f32 %v5469_v53, %v5457_v3  ;;  %v9471_v58 = vld [vmem:[#allocation5 + $0x1528] sm:$0xf]  ;;  %v10792_v47 = vld [vmem:[#allocation5 + $0x1414] sm:$0xf0]  ;;  %v10242_v3 = vld [vmem:[#allocation5 + $0x2ec] sm:$0xf]  ;;  %v7012_v21 = vor.u32 %v10210_v60, %v7009_v63 }
 0x257   :  { %5697 = vmatpush.bf16.msrb.mxu1 %v9520_v30  ;;  %v9744_v30 = vor.u32 %v10896_v51, %v9743_v6  ;;  %v9455_v49 = vld [vmem:[#allocation5 + $0x1508] sm:$0xf]  ;;  %v10824_v50 = vld [vmem:[#allocation5 + $0x1514] sm:$0xf0]  ;;  %v5471_v43 = vpop.f32.mrf.mxu3  ;;  %v7137_v53 = vld [vmem:[#allocation5 + $0x2f8] sm:$0xf0] }
 0x258   :  { %5710 = vmatpush.bf16.msrb.mxu2 %v9648_v33  ;;  %v10828_v33 = vld [vmem:[#allocation5 + $0x1534] sm:$0xf0]  ;;  %v9583_v52 = vld [vmem:[#allocation5 + $0x1608] sm:$0xf]  ;;  %v9456_v6 = vor.u32 %v10824_v50, %v9455_v49  ;;  %v7265_v11 = vld [vmem:[#allocation5 + $0x3f8] sm:$0xf0]  ;;  %v7140_v28 = vor.u32 %v10242_v3, %v7137_v53 }
 0x259   :  { %5723 = vmatpush.bf16.msrb.mxu3 %v9776_v46  ;;  %v9327_v46 = vld [vmem:[#allocation5 + $0x1408] sm:$0xf]  ;;  %v9472_v12 = vor.u32 %v10828_v33, %v9471_v58  ;;  %v10888_v57 = vld [vmem:[#allocation5 + $0x1714] sm:$0xf0]  ;;  %v10174_v58 = vld [vmem:[#allocation5 + $0xcc] sm:$0xf] }
 0x25a   :  { %5685 = vmatpush.bf16.msrb.mxu0 %v9376_v54  ;;  %v5458_v54 = vpop.f32.mrf.mxu2  ;;  %v9711_v17 = vld [vmem:[#allocation5 + $0x1708] sm:$0xf]  ;;  %v9328_v62 = vor.u32 %v10792_v47, %v9327_v46  ;;  %v6993_v35 = vld [vmem:[#allocation5 + $0x1d8] sm:$0xf0]  ;;  %v10238_v39 = vld [vmem:[#allocation5 + $0x2cc] sm:$0xf]  ;;  %v6868_v46 = vor.u32 %v10174_v58, %v6865_v0 }
 0x25b   :  { %5698 = vmatpush.bf16.msrb.mxu1 %v9504_v55  ;;  %v9728_v55 = vor.u32 %v10892_v4, %v9727_v41  ;;  %v7121_v41 = vld [vmem:[#allocation5 + $0x2d8] sm:$0xf0]  ;;  %v10270_v4 = vld [vmem:[#allocation5 + $0x3cc] sm:$0xf] }
 0x25c   :  { %5711 = vmatpush.bf16.msrb.mxu2 %v9632_v56  ;;  %v10856_v56 = vld [vmem:[#allocation5 + $0x1614] sm:$0xf0]  ;;  %v6849_v49 = vld [vmem:[#allocation5 + $0xb8] sm:$0xf0]  ;;  %v10202_v50 = vld [vmem:[#allocation5 + $0x1ac] sm:$0xf] }
 0x25d   :  { %5724 = vmatpush.bf16.msrb.mxu3 %v9760_v59  ;;  %v6881_v59 = vld [vmem:[#allocation5 + $0xf8] sm:$0xf0]  ;;  %v9584_v51 = vor.u32 %v10856_v56, %v9583_v52  ;;  %v10166_v60 = vld [vmem:[#allocation5 + $0x8c] sm:$0xf] }
 0x25e   :  { %5686 = vmatpush.bf16.msrb.mxu0 %v9360_v7  ;;  %v10274_v7 = vld [vmem:[#allocation5 + $0x3ec] sm:$0xf]  ;;  %v6977_v54 = vld [vmem:[#allocation5 + $0x1b8] sm:$0xf0] }
 0x25f   :  { %5699 = vmatpush.bf16.msrb.mxu1 %v9488_v14  ;;  %v9712_v14 = vor.u32 %v10888_v57, %v9711_v17  ;;  %v7268_v33 = vor.u32 %v10274_v7, %v7265_v11  ;;  %v7105_v56 = vld [vmem:[#allocation5 + $0x2b8] sm:$0xf0]  ;;  %v10266_v17 = vld [vmem:[#allocation5 + $0x3ac] sm:$0xf] }
 0x260   :  { %5712 = vmatpush.bf16.msrb.mxu2 %v9616_v16  ;;  %v6884_v16 = vor.u32 %v10178_v44, %v6881_v59  ;;  %v7233_v57 = vld [vmem:[#allocation5 + $0x3b8] sm:$0xf0]  ;;  %v6980_v44 = vor.u32 %v10202_v50, %v6977_v54  ;;  %v10198_v63 = vld [vmem:[#allocation5 + $0x18c] sm:$0xf] }
 0x261   :  { %5725 = vmatpush.bf16.msrb.mxu3 %v9744_v30  ;;  %v10206_v30 = vld [vmem:[#allocation5 + $0x1cc] sm:$0xf]  ;;  %v7236_v3 = vor.u32 %v10266_v17, %v7233_v57  ;;  %v6961_v53 = vld [vmem:[#allocation5 + $0x198] sm:$0xf0] }
 0x262   :  { %5687 = vmatpush.bf16.msrb.mxu0 %v9344_v45  ;;  %v7249_v45 = vld [vmem:[#allocation5 + $0x3d8] sm:$0xf0]  ;;  %v6996_v47 = vor.u32 %v10206_v30, %v6993_v35  ;;  %v10262_v7 = vld [vmem:[#allocation5 + $0x38c] sm:$0xf] }
 0x263   :  { %5700 = vmatpush.bf16.msrb.mxu1 %v9472_v12  ;;  %v7124_v12 = vor.u32 %v10238_v39, %v7121_v41  ;;  %v7252_v52 = vor.u32 %v10270_v4, %v7249_v45  ;;  %v7217_v11 = vld [vmem:[#allocation5 + $0x398] sm:$0xf0]  ;;  %v10162_v58 = vld [vmem:[#allocation5 + $0x6c] sm:$0xf] }
 0x264   :  { %5713 = vmatpush.bf16.msrb.mxu2 %v9600_v48  ;;  %v10170_v48 = vld [vmem:[#allocation5 + $0xac] sm:$0xf]  ;;  %v6817_v0 = vld [vmem:[#allocation5 + $0x78] sm:$0xf0]  ;;  %v7220_v39 = vor.u32 %v10262_v7, %v7217_v11 }
 0x265   :  { %5726 = vmatpush.bf16.msrb.mxu3 %v9728_v55  ;;  %v10234_v55 = vld [vmem:[#allocation5 + $0x2ac] sm:$0xf]  ;;  %v6852_v43 = vor.u32 %v10170_v48, %v6849_v49  ;;  %v6945_v41 = vld [vmem:[#allocation5 + $0x178] sm:$0xf0]  ;;  %v6820_v48 = vor.u32 %v10162_v58, %v6817_v0 }
 0x266   :  { %5688 = vmatpush.bf16.msrb.mxu0 %v9328_v62  ;;  %v7108_v59 = vor.u32 %v10234_v55, %v7105_v56  ;;  %v6833_v62 = vld [vmem:[#allocation5 + $0x98] sm:$0xf0]  ;;  %v10194_v30 = vld [vmem:[#allocation5 + $0x16c] sm:$0xf] }
 0x267   :  { %5701 = vmatpush.bf16.msrb.mxu1 %v9456_v6  ;;  %v10230_v6 = vld [vmem:[#allocation5 + $0x28c] sm:$0xf]  ;;  %v5495_v35 = vpop.f32.mrf.mxu1  ;;  %v7073_v45 = vld [vmem:[#allocation5 + $0x278] sm:$0xf0]  ;;  %v6948_v49 = vor.u32 %v10194_v30, %v6945_v41 }
 0x268   :  { %5714 = vmatpush.bf16.msrb.mxu2 %v9584_v51  ;;  %v7089_v51 = vld [vmem:[#allocation5 + $0x298] sm:$0xf0]  ;;  %v10226_v4 = vld [vmem:[#allocation5 + $0x26c] sm:$0xf] }
 0x269   :  { %5727 = vmatpush.bf16.msrb.mxu3 %v9712_v14  ;;  %5689 = vmatmul.bf16.vlgmr.msrb.gmra.mxu0 %v11391_v61  ;;  %v6836_v14 = vor.u32 %v10166_v60, %v6833_v62  ;;  %v7076_v50 = vor.u32 %v10226_v4, %v7073_v45  ;;  %v6801_v54 = vld [vmem:[#allocation5 + $0x58] sm:$0xf0]  ;;  %v10190_v55 = vld [vmem:[#allocation5 + $0x14c] sm:$0xf] }
 0x26a   :  { %5733 = vmatpush.bf16.msra.mxu0 %v6884_v16  ;;  %5702 = vmatmul.bf16.vlgmr.msrb.gmra.mxu1 %v11395_v2  ;;  %v5482_v16 = vpop.f32.mrf.mxu0  ;;  %v6929_v17 = vld [vmem:[#allocation5 + $0x158] sm:$0xf0]  ;;  %v10222_v57 = vld [vmem:[#allocation5 + $0x24c] sm:$0xf] }
 0x26b   :  { %5746 = vmatpush.bf16.msra.mxu1 %v7012_v21  ;;  %5715 = vmatmul.bf16.vlgmr.msrb.gmra.mxu2 %v11393_v1  ;;  %v6964_v21 = vor.u32 %v10198_v63, %v6961_v53  ;;  %v10254_v60 = vld [vmem:[#allocation5 + $0x34c] sm:$0xf]  ;;  %v7185_v62 = vld [vmem:[#allocation5 + $0x358] sm:$0xf0] }
 0x26c   :  { %5759 = vmatpush.bf16.msra.mxu2 %v7140_v28  ;;  %5728 = vmatmul.bf16.vlgmr.msrb.gmra.mxu3 %v11397_v5  ;;  %v7092_v28 = vor.u32 %v10230_v6, %v7089_v51  ;;  %v6932_v6 = vor.u32 %v10190_v55, %v6929_v17  ;;  %v10154_v7 = vld [vmem:[#allocation5 + $0x2c] sm:$0xf]  ;;  %v6785_v11 = vld [vmem:[#allocation5 + $0x38] sm:$0xf0] }
 0x26d   :  { %5772 = vmatpush.bf16.msra.mxu3 %v7268_v33  ;;  %v5483_v33 = vadd.f32 %v5482_v16, %v11479_v10  ;;  %v10218_v58 = vld [vmem:[#allocation5 + $0x22c] sm:$0xf]  ;;  %v7041_v0 = vld [vmem:[#allocation5 + $0x238] sm:$0xf0] }
 0x26e   :  { %5734 = vmatpush.bf16.msra.mxu0 %v6868_v46  ;;  %v10258_v46 = vld [vmem:[#allocation5 + $0x36c] sm:$0xf]  ;;  %v5508_v56 = vpop.f32.mrf.mxu2  ;;  %v6769_v41 = vld [vmem:[#allocation5 + $0x18] sm:$0xf0]  ;;  %v7044_v45 = vor.u32 %v10218_v58, %v7041_v0 }
 0x26f   :  { %5747 = vmatpush.bf16.msra.mxu1 %v6996_v47  ;;  %v7201_v47 = vld [vmem:[#allocation5 + $0x378] sm:$0xf0]  ;;  %v5497_v16 = vpop.f32.mrf.mxu1  ;;  %v10250_v30 = vld [vmem:[#allocation5 + $0x32c] sm:$0xf] }
 0x270   :  { %5760 = vmatpush.bf16.msra.mxu2 %v7124_v12  ;;  %v5496_v12 = vadd.f32 %v5495_v35, %v5483_v33  ;;  %v7204_v10 = vor.u32 %v10258_v46, %v7201_v47  ;;  %v7169_v33 = vld [vmem:[#allocation5 + $0x338] sm:$0xf0]  ;;  %v6788_v35 = vor.u32 %v10154_v7, %v6785_v11  ;;  %v10182_v46 = vld [vmem:[#allocation5 + $0x10c] sm:$0xf] }
 0x271   :  { %5773 = vmatpush.bf16.msra.mxu3 %v7252_v52  ;;  %v10158_v52 = vld [vmem:[#allocation5 + $0x4c] sm:$0xf]  ;;  %v6897_v47 = vld [vmem:[#allocation5 + $0x118] sm:$0xf0] }
 0x272   :  { %5735 = vmatpush.bf16.msra.mxu0 %v6852_v43  ;;  %v7057_v43 = vld [vmem:[#allocation5 + $0x258] sm:$0xf0]  ;;  %v6804_v63 = vor.u32 %v10158_v52, %v6801_v54  ;;  %v5484_v53 = vpop.f32.mrf.mxu0  ;;  %v10246_v52 = vld [vmem:[#allocation5 + $0x30c] sm:$0xf] }
 0x273   :  { %5748 = vmatpush.bf16.msra.mxu1 %v6980_v44  ;;  %v5509_v44 = vadd.f32 %v5508_v56, %v5496_v12  ;;  %v7060_v51 = vor.u32 %v10222_v57, %v7057_v43  ;;  %v10214_v12 = vld [vmem:[#allocation5 + $0x20c] sm:$0xf]  ;;  %v7153_v54 = vld [vmem:[#allocation5 + $0x318] sm:$0xf0] }
 0x274   :  { %5761 = vmatpush.bf16.msra.mxu2 %v7108_v59  ;;  %v5521_v59 = vpop.f32.mrf.mxu3  ;;  %v10306_v56 = vld [vmem:[#allocation5 + $0x4ec] sm:$0xf]  ;;  %v7521_v43 = vld [vmem:[#allocation5 + $0x5f8] sm:$0xf0] }
 0x275   :  { %5774 = vmatpush.bf16.msra.mxu3 %v7236_v3  ;;  %v11486_v3 = vadd.f32 %v5521_v59, %v5509_v44  ;;  %v10338_v17 = vld [vmem:[#allocation5 + $0x5ec] sm:$0xf]  ;;  %v7649_v59 = vld [vmem:[#allocation5 + $0x6f8] sm:$0xf0] }
 0x276   :  { %5736 = vmatpush.bf16.msra.mxu0 %v6836_v14  ;;  %v10186_v14 = vld [vmem:[#allocation5 + $0x12c] sm:$0xf]  ;;  %v7777_v53 = vld [vmem:[#allocation5 + $0x7f8] sm:$0xf0]  ;;  %v7524_v7 = vor.u32 %v10338_v17, %v7521_v43 }
 0x277   :  { %5749 = vmatpush.bf16.msra.mxu1 %v6964_v21  ;;  %v7188_v21 = vor.u32 %v10254_v60, %v7185_v62  ;;  %v10370_v44 = vld [vmem:[#allocation5 + $0x6ec] sm:$0xf]  ;;  %v6900_v60 = vor.u32 %v10182_v46, %v6897_v47  ;;  %v7377_v16 = vld [vmem:[#allocation5 + $0x4d8] sm:$0xf0] }
 0x278   :  { %5762 = vmatpush.bf16.msra.mxu2 %v7092_v28  ;;  %v6913_v28 = vld [vmem:[#allocation5 + $0x138] sm:$0xf0]  ;;  %v7652_v11 = vor.u32 %v10370_v44, %v7649_v59  ;;  %v10366_v0 = vld [vmem:[#allocation5 + $0x6cc] sm:$0xf] }
 0x279   :  { %5775 = vmatpush.bf16.msra.mxu3 %v7220_v39  ;;  %v10150_v39 = vld [vmem:[#allocation5 + $0xc] sm:$0xf]  ;;  %v6916_v4 = vor.u32 %v10186_v14, %v6913_v28  ;;  %v7505_v58 = vld [vmem:[#allocation5 + $0x5d8] sm:$0xf0] }
 0x27a   :  { %5737 = vmatpush.bf16.msra.mxu0 %v6820_v48  ;;  %v5510_v48 = vpop.f32.mrf.mxu2  ;;  %v6772_v57 = vor.u32 %v10150_v39, %v6769_v41  ;;  %v10302_v14 = vld [vmem:[#allocation5 + $0x4cc] sm:$0xf]  ;;  %v7361_v46 = vld [vmem:[#allocation5 + $0x4b8] sm:$0xf0] }
 0x27b   :  { %5750 = vmatpush.bf16.msra.mxu1 %v6948_v49  ;;  %v7172_v49 = vor.u32 %v10250_v30, %v7169_v33  ;;  %v7633_v30 = vld [vmem:[#allocation5 + $0x6d8] sm:$0xf0]  ;;  %v10398_v33 = vld [vmem:[#allocation5 + $0x7cc] sm:$0xf]  ;;  %v7380_v39 = vor.u32 %v10302_v14, %v7377_v16 }
 0x27c   :  { %5763 = vmatpush.bf16.msra.mxu2 %v7076_v50  ;;  %v7025_v50 = vld [vmem:[#allocation5 + $0x218] sm:$0xf0]  ;;  %v5523_v55 = vpop.f32.mrf.mxu3  ;;  %v10330_v47 = vld [vmem:[#allocation5 + $0x5ac] sm:$0xf] }
 0x27d   :  { %5776 = vmatpush.bf16.msra.mxu3 %v7204_v10  ;;  %v7393_v10 = vld [vmem:[#allocation5 + $0x4f8] sm:$0xf0]  ;;  %v7028_v62 = vor.u32 %v10214_v12, %v7025_v50  ;;  %v10294_v17 = vld [vmem:[#allocation5 + $0x48c] sm:$0xf] }
 0x27e   :  { %5738 = vmatpush.bf16.msra.mxu0 %v6804_v63  ;;  %v10402_v63 = vld [vmem:[#allocation5 + $0x7ec] sm:$0xf]  ;;  %v7489_v48 = vld [vmem:[#allocation5 + $0x5b8] sm:$0xf0] }
 0x27f   :  { %5751 = vmatpush.bf16.msra.mxu1 %v6932_v6  ;;  %v7156_v6 = vor.u32 %v10246_v52, %v7153_v54  ;;  %v7780_v28 = vor.u32 %v10402_v63, %v7777_v53  ;;  %v7617_v50 = vld [vmem:[#allocation5 + $0x6b8] sm:$0xf0]  ;;  %v10394_v52 = vld [vmem:[#allocation5 + $0x7ac] sm:$0xf] }
 0x280   :  { %5764 = vmatpush.bf16.msra.mxu2 %v7060_v51  ;;  %v7396_v51 = vor.u32 %v10306_v56, %v7393_v10  ;;  %v7745_v54 = vld [vmem:[#allocation5 + $0x7b8] sm:$0xf0]  ;;  %v7492_v56 = vor.u32 %v10330_v47, %v7489_v48  ;;  %v10326_v43 = vld [vmem:[#allocation5 + $0x58c] sm:$0xf] }
 0x281   :  { %5777 = vmatpush.bf16.msra.mxu3 %v7188_v21  ;;  %v10334_v21 = vld [vmem:[#allocation5 + $0x5cc] sm:$0xf]  ;;  %v7748_v44 = vor.u32 %v10394_v52, %v7745_v54  ;;  %v7729_v63 = vld [vmem:[#allocation5 + $0x798] sm:$0xf0] }
 0x282   :  { %5739 = vmatpush.bf16.msra.mxu0 %v6788_v35  ;;  %v7761_v35 = vld [vmem:[#allocation5 + $0x7d8] sm:$0xf0]  ;;  %v7508_v41 = vor.u32 %v10334_v21, %v7505_v58  ;;  %v10358_v59 = vld [vmem:[#allocation5 + $0x68c] sm:$0xf] }
 0x283   :  { %5752 = vmatpush.bf16.msra.mxu1 %v6916_v4  ;;  %v7636_v4 = vor.u32 %v10366_v0, %v7633_v30  ;;  %v7764_v12 = vor.u32 %v10398_v33, %v7761_v35  ;;  %v10322_v14 = vld [vmem:[#allocation5 + $0x56c] sm:$0xf]  ;;  %v7585_v0 = vld [vmem:[#allocation5 + $0x678] sm:$0xf0] }
 0x284   :  { %5765 = vmatpush.bf16.msra.mxu2 %v7044_v45  ;;  %v10298_v45 = vld [vmem:[#allocation5 + $0x4ac] sm:$0xf]  ;;  %v7713_v33 = vld [vmem:[#allocation5 + $0x778] sm:$0xf0] }
 0x285   :  { %5778 = vmatpush.bf16.msra.mxu3 %v7172_v49  ;;  %v10362_v49 = vld [vmem:[#allocation5 + $0x6ac] sm:$0xf]  ;;  %v7364_v55 = vor.u32 %v10298_v45, %v7361_v46 }
 0x286   :  { %5740 = vmatpush.bf16.msra.mxu0 %v6772_v57  ;;  %v7620_v10 = vor.u32 %v10362_v49, %v7617_v50  ;;  %v7345_v57 = vld [vmem:[#allocation5 + $0x498] sm:$0xf0]  ;;  %v10354_v58 = vld [vmem:[#allocation5 + $0x66c] sm:$0xf] }
 0x287   :  { %5753 = vmatpush.bf16.msra.mxu1 %v6900_v60  ;;  %v7601_v60 = vld [vmem:[#allocation5 + $0x698] sm:$0xf0]  ;;  %v7348_v53 = vor.u32 %v10294_v17, %v7345_v57  ;;  %v10386_v30 = vld [vmem:[#allocation5 + $0x76c] sm:$0xf] }
 0x288   :  { %5766 = vmatpush.bf16.msra.mxu2 %v7028_v62  ;;  %v5534_v62 = vpop.f32.mrf.mxu0  ;;  %v10318_v45 = vld [vmem:[#allocation5 + $0x54c] sm:$0xf]  ;;  %v7716_v46 = vor.u32 %v10386_v30, %v7713_v33  ;;  %v7569_v49 = vld [vmem:[#allocation5 + $0x658] sm:$0xf0] }
 0x289   :  { %5779 = vmatpush.bf16.msra.mxu3 %v7156_v6  ;;  %5741 = vmatmul.bf16.vlgmr.msra.gmra.mxu0 %v11331_v9  ;;  %v10390_v9 = vld [vmem:[#allocation5 + $0x78c] sm:$0xf]  ;;  %v7665_v33 = vld [vmem:[#allocation5 + $0x718] sm:$0xf0] }
 0x28a   :  { %5785 = vmatpush.bf16.msrb.mxu0 %v7396_v51  ;;  %5754 = vmatmul.bf16.vlgmr.msra.gmra.mxu1 %v11338_v25  ;;  %v5547_v25 = vpop.f32.mrf.mxu1  ;;  %v7604_v51 = vor.u32 %v10358_v59, %v7601_v60  ;;  %v7732_v16 = vor.u32 %v10390_v9, %v7729_v63  ;;  %v10350_v48 = vld [vmem:[#allocation5 + $0x64c] sm:$0xf]  ;;  %v7297_v59 = vld [vmem:[#allocation5 + $0x438] sm:$0xf0] }
 0x28b   :  { %5798 = vmatpush.bf16.msrb.mxu1 %v7524_v7  ;;  %5767 = vmatmul.bf16.vlgmr.msra.gmra.mxu2 %v11329_v8  ;;  %v7473_v8 = vld [vmem:[#allocation5 + $0x598] sm:$0xf0]  ;;  %v10290_v7 = vld [vmem:[#allocation5 + $0x46c] sm:$0xf] }
 0x28c   :  { %5811 = vmatpush.bf16.msrb.mxu2 %v7652_v11  ;;  %5780 = vmatmul.bf16.vlgmr.msra.gmra.mxu3 %v11333_v15  ;;  %v5535_v15 = vadd.f32 %v5534_v62, %v11486_v3  ;;  %v7476_v6 = vor.u32 %v10326_v43, %v7473_v8  ;;  %v7329_v11 = vld [vmem:[#allocation5 + $0x478] sm:$0xf0]  ;;  %v10382_v54 = vld [vmem:[#allocation5 + $0x74c] sm:$0xf] }
 0x28d   :  { %5824 = vmatpush.bf16.msrb.mxu3 %v7780_v28  ;;  %v7457_v28 = vld [vmem:[#allocation5 + $0x578] sm:$0xf0]  ;;  %v7332_v35 = vor.u32 %v10290_v7, %v7329_v11  ;;  %v10282_v8 = vld [vmem:[#allocation5 + $0x42c] sm:$0xf] }
 0x28e   :  { %5786 = vmatpush.bf16.msrb.mxu0 %v7380_v39  ;;  %v5548_v21 = vadd.f32 %v5547_v25, %v5535_v15  ;;  %v7460_v3 = vor.u32 %v10322_v14, %v7457_v28  ;;  %v7588_v39 = vor.u32 %v10354_v58, %v7585_v0  ;;  %v5560_v47 = vpop.f32.mrf.mxu2  ;;  %v10314_v60 = vld [vmem:[#allocation5 + $0x52c] sm:$0xf]  ;;  %v7425_v9 = vld [vmem:[#allocation5 + $0x538] sm:$0xf0] }
 0x28f   :  { %5799 = vmatpush.bf16.msrb.mxu1 %v7508_v41  ;;  %v10286_v41 = vld [vmem:[#allocation5 + $0x44c] sm:$0xf]  ;;  %v5573_v52 = vpop.f32.mrf.mxu3  ;;  %v7553_v15 = vld [vmem:[#allocation5 + $0x638] sm:$0xf0]  ;;  %v7428_v11 = vor.u32 %v10314_v60, %v7425_v9 }
 0x290   :  { %5812 = vmatpush.bf16.msrb.mxu2 %v7636_v4  ;;  %v7313_v4 = vld [vmem:[#allocation5 + $0x458] sm:$0xf0]  ;;  %v5561_v50 = vadd.f32 %v5560_v47, %v5548_v21  ;;  %v10346_v63 = vld [vmem:[#allocation5 + $0x62c] sm:$0xf] }
 0x291   :  { %5825 = vmatpush.bf16.msrb.mxu3 %v7764_v12  ;;  %v7441_v12 = vld [vmem:[#allocation5 + $0x558] sm:$0xf0]  ;;  %v7556_v14 = vor.u32 %v10346_v63, %v7553_v15  ;;  %v10342_v28 = vld [vmem:[#allocation5 + $0x60c] sm:$0xf] }
 0x292   :  { %5787 = vmatpush.bf16.msrb.mxu0 %v7364_v55  ;;  %v7697_v55 = vld [vmem:[#allocation5 + $0x758] sm:$0xf0]  ;;  %v5549_v17 = vpop.f32.mrf.mxu1  ;;  %v11493_v57 = vadd.f32 %v5573_v52, %v5561_v50  ;;  %v7444_v43 = vor.u32 %v10318_v45, %v7441_v12  ;;  %v10374_v30 = vld [vmem:[#allocation5 + $0x70c] sm:$0xf] }
 0x293   :  { %5800 = vmatpush.bf16.msrb.mxu1 %v7492_v56  ;;  %v5536_v56 = vpop.f32.mrf.mxu0  ;;  %v7700_v62 = vor.u32 %v10382_v54, %v7697_v55  ;;  %v7681_v25 = vld [vmem:[#allocation5 + $0x738] sm:$0xf0]  ;;  %v10498_v47 = vld [vmem:[#allocation5 + $0xaec] sm:$0xf]  ;;  %v7668_v54 = vor.u32 %v10374_v30, %v7665_v33 }
 0x294   :  { %5813 = vmatpush.bf16.msrb.mxu2 %v7620_v10  ;;  %v7316_v10 = vor.u32 %v10286_v41, %v7313_v4  ;;  %v7281_v7 = vld [vmem:[#allocation5 + $0x418] sm:$0xf0]  ;;  %v10466_v41 = vld [vmem:[#allocation5 + $0x9ec] sm:$0xf] }
 0x295   :  { %5826 = vmatpush.bf16.msrb.mxu3 %v7748_v44  ;;  %v7572_v44 = vor.u32 %v10350_v48, %v7569_v49  ;;  %v7409_v21 = vld [vmem:[#allocation5 + $0x518] sm:$0xf0]  ;;  %v10530_v50 = vld [vmem:[#allocation5 + $0xbec] sm:$0xf] }
 0x296   :  { %5788 = vmatpush.bf16.msrb.mxu0 %v7348_v53  ;;  %v10378_v53 = vld [vmem:[#allocation5 + $0x72c] sm:$0xf]  ;;  %v7537_v0 = vld [vmem:[#allocation5 + $0x618] sm:$0xf0] }
 0x297   :  { %5801 = vmatpush.bf16.msrb.mxu1 %v7476_v6  ;;  %v7300_v6 = vor.u32 %v10282_v8, %v7297_v59  ;;  %v7684_v58 = vor.u32 %v10378_v53, %v7681_v25  ;;  %v5575_v4 = vpop.f32.mrf.mxu3  ;;  %v8161_v12 = vld [vmem:[#allocation5 + $0xaf8] sm:$0xf0]  ;;  %v7540_v49 = vor.u32 %v10342_v28, %v7537_v0  ;;  %v10430_v17 = vld [vmem:[#allocation5 + $0x8cc] sm:$0xf] }
 0x298   :  { %5814 = vmatpush.bf16.msrb.mxu2 %v7604_v51  ;;  %v10278_v51 = vld [vmem:[#allocation5 + $0x40c] sm:$0xf]  ;;  %v8289_v52 = vld [vmem:[#allocation5 + $0xbf8] sm:$0xf0] }
 0x299   :  { %5827 = vmatpush.bf16.msrb.mxu3 %v7732_v16  ;;  %v10310_v16 = vld [vmem:[#allocation5 + $0x50c] sm:$0xf]  ;;  %v7284_v45 = vor.u32 %v10278_v51, %v7281_v7  ;;  %v8292_v8 = vor.u32 %v10530_v50, %v8289_v52  ;;  %v8017_v59 = vld [vmem:[#allocation5 + $0x9d8] sm:$0xf0] }
 0x29a   :  { %5789 = vmatpush.bf16.msrb.mxu0 %v7332_v35  ;;  %v5562_v35 = vpop.f32.mrf.mxu2  ;;  %v7412_v48 = vor.u32 %v10310_v16, %v7409_v21  ;;  %v10494_v60 = vld [vmem:[#allocation5 + $0xacc] sm:$0xf]  ;;  %v8273_v63 = vld [vmem:[#allocation5 + $0xbd8] sm:$0xf0] }
 0x29b   :  { %5802 = vmatpush.bf16.msrb.mxu1 %v7460_v3  ;;  %v10434_v3 = vld [vmem:[#allocation5 + $0x8ec] sm:$0xf]  ;;  %v7873_v51 = vld [vmem:[#allocation5 + $0x8b8] sm:$0xf0] }
 0x29c   :  { %5815 = vmatpush.bf16.msrb.mxu2 %v7588_v39  ;;  %v7905_v39 = vld [vmem:[#allocation5 + $0x8f8] sm:$0xf0]  ;;  %v10526_v9 = vld [vmem:[#allocation5 + $0xbcc] sm:$0xf] }
 0x29d   :  { %5828 = vmatpush.bf16.msrb.mxu3 %v7716_v46  ;;  %v8033_v46 = vld [vmem:[#allocation5 + $0x9f8] sm:$0xf0]  ;;  %v7908_v55 = vor.u32 %v10434_v3, %v7905_v39  ;;  %v10458_v7 = vld [vmem:[#allocation5 + $0x9ac] sm:$0xf] }
 0x29e   :  { %5790 = vmatpush.bf16.msrb.mxu0 %v7316_v10  ;;  %v8036_v56 = vor.u32 %v10466_v41, %v8033_v46  ;;  %v8164_v10 = vor.u32 %v10498_v47, %v8161_v12  ;;  %v10490_v16 = vld [vmem:[#allocation5 + $0xaac] sm:$0xf]  ;;  %v8129_v21 = vld [vmem:[#allocation5 + $0xab8] sm:$0xf0] }
 0x29f   :  { %5803 = vmatpush.bf16.msrb.mxu1 %v7444_v43  ;;  %v7889_v43 = vld [vmem:[#allocation5 + $0x8d8] sm:$0xf0]  ;;  %v10522_v28 = vld [vmem:[#allocation5 + $0xbac] sm:$0xf]  ;;  %v8132_v33 = vor.u32 %v10490_v16, %v8129_v21 }
 0x2a0   :  { %5816 = vmatpush.bf16.msrb.mxu2 %v7572_v44  ;;  %v10462_v44 = vld [vmem:[#allocation5 + $0x9cc] sm:$0xf]  ;;  %v7892_v15 = vor.u32 %v10430_v17, %v7889_v43  ;;  %v7857_v3 = vld [vmem:[#allocation5 + $0x898] sm:$0xf0] }
 0x2a1   :  { %5829 = vmatpush.bf16.msrb.mxu3 %v7700_v62  ;;  %v8145_v62 = vld [vmem:[#allocation5 + $0xad8] sm:$0xf0]  ;;  %v8020_v53 = vor.u32 %v10462_v44, %v8017_v59  ;;  %v10422_v35 = vld [vmem:[#allocation5 + $0x88c] sm:$0xf] }
 0x2a2   :  { %5791 = vmatpush.bf16.msrb.mxu0 %v7300_v6  ;;  %v8148_v25 = vor.u32 %v10494_v60, %v8145_v62  ;;  %v10426_v6 = vld [vmem:[#allocation5 + $0x8ac] sm:$0xf]  ;;  %v7985_v41 = vld [vmem:[#allocation5 + $0x998] sm:$0xf0]  ;;  %v7860_v12 = vor.u32 %v10422_v35, %v7857_v3 }
 0x2a3   :  { %5804 = vmatpush.bf16.msrb.mxu1 %v7428_v11  ;;  %v8276_v11 = vor.u32 %v10526_v9, %v8273_v63  ;;  %v7876_v0 = vor.u32 %v10426_v6, %v7873_v51  ;;  %v10486_v4 = vld [vmem:[#allocation5 + $0xa8c] sm:$0xf]  ;;  %v8241_v47 = vld [vmem:[#allocation5 + $0xb98] sm:$0xf0] }
 0x2a4   :  { %5817 = vmatpush.bf16.msrb.mxu2 %v7556_v14  ;;  %v8001_v14 = vld [vmem:[#allocation5 + $0x9b8] sm:$0xf0]  ;;  %v10418_v50 = vld [vmem:[#allocation5 + $0x86c] sm:$0xf] }
 0x2a5   :  { %5830 = vmatpush.bf16.msrb.mxu3 %v7684_v58  ;;  %v8257_v58 = vld [vmem:[#allocation5 + $0xbb8] sm:$0xf0]  ;;  %v8004_v30 = vor.u32 %v10458_v7, %v8001_v14  ;;  %v10482_v17 = vld [vmem:[#allocation5 + $0xa6c] sm:$0xf] }
 0x2a6   :  { %5792 = vmatpush.bf16.msrb.mxu0 %v7284_v45  ;;  %v8260_v39 = vor.u32 %v10522_v28, %v8257_v58  ;;  %v8113_v45 = vld [vmem:[#allocation5 + $0xa98] sm:$0xf0]  ;;  %v5586_v46 = vpop.f32.mrf.mxu0  ;;  %v10514_v44 = vld [vmem:[#allocation5 + $0xb6c] sm:$0xf] }
 0x2a7   :  { %5805 = vmatpush.bf16.msrb.mxu1 %v7412_v48  ;;  %v7841_v52 = vld [vmem:[#allocation5 + $0x878] sm:$0xf0]  ;;  %v10414_v62 = vld [vmem:[#allocation5 + $0x84c] sm:$0xf] }
 0x2a8   :  { %5818 = vmatpush.bf16.msrb.mxu2 %v7540_v49  ;;  %v8116_v49 = vor.u32 %v10486_v4, %v8113_v45  ;;  %v8097_v43 = vld [vmem:[#allocation5 + $0xa78] sm:$0xf0]  ;;  %v7844_v59 = vor.u32 %v10418_v50, %v7841_v52  ;;  %v10446_v63 = vld [vmem:[#allocation5 + $0x94c] sm:$0xf] }
 0x2a9   :  { %5831 = vmatpush.bf16.msrb.mxu3 %v7668_v54  ;;  %5793 = vmatmul.bf16.vlgmr.msrb.gmra.mxu0 %v11343_v37  ;;  %v10518_v37 = vld [vmem:[#allocation5 + $0xb8c] sm:$0xf]  ;;  %v8100_v60 = vor.u32 %v10482_v17, %v8097_v43  ;;  %v7825_v9 = vld [vmem:[#allocation5 + $0x858] sm:$0xf0] }
 0x2aa   :  { %5837 = vmatpush.bf16.msra.mxu0 %v7908_v55  ;;  %5806 = vmatmul.bf16.vlgmr.msrb.gmra.mxu1 %v11347_v40  ;;  %v5599_v40 = vpop.f32.mrf.mxu1  ;;  %v10450_v54 = vld [vmem:[#allocation5 + $0x96c] sm:$0xf]  ;;  %v8244_v55 = vor.u32 %v10518_v37, %v8241_v47  ;;  %v8081_v51 = vld [vmem:[#allocation5 + $0xa58] sm:$0xf0]  ;;  %v7828_v28 = vor.u32 %v10414_v62, %v7825_v9 }
 0x2ab   :  { %5850 = vmatpush.bf16.msra.mxu1 %v8036_v56  ;;  %5819 = vmatmul.bf16.vlgmr.msrb.gmra.mxu2 %v11341_v34  ;;  %v10454_v34 = vld [vmem:[#allocation5 + $0x98c] sm:$0xf]  ;;  %v8209_v16 = vld [vmem:[#allocation5 + $0xb58] sm:$0xf0] }
 0x2ac   :  { %5863 = vmatpush.bf16.msra.mxu2 %v8164_v10  ;;  %5832 = vmatmul.bf16.vlgmr.msrb.gmra.mxu3 %v11345_v38  ;;  %v5587_v38 = vadd.f32 %v5586_v46, %v11493_v57  ;;  %v7988_v48 = vor.u32 %v10454_v34, %v7985_v41  ;;  %v7969_v10 = vld [vmem:[#allocation5 + $0x978] sm:$0xf0]  ;;  %v10478_v6 = vld [vmem:[#allocation5 + $0xa4c] sm:$0xf] }
 0x2ad   :  { %5876 = vmatpush.bf16.msra.mxu3 %v8292_v8  ;;  %v8225_v8 = vld [vmem:[#allocation5 + $0xb78] sm:$0xf0]  ;;  %v7972_v57 = vor.u32 %v10450_v54, %v7969_v10  ;;  %v10510_v14 = vld [vmem:[#allocation5 + $0xb4c] sm:$0xf] }
 0x2ae   :  { %5838 = vmatpush.bf16.msra.mxu0 %v7892_v15  ;;  %v5600_v56 = vadd.f32 %v5599_v40, %v5587_v38  ;;  %v8228_v15 = vor.u32 %v10514_v44, %v8225_v8  ;;  %v5588_v21 = vpop.f32.mrf.mxu0  ;;  %v10410_v35 = vld [vmem:[#allocation5 + $0x82c] sm:$0xf]  ;;  %v7809_v3 = vld [vmem:[#allocation5 + $0x838] sm:$0xf0] }
 0x2af   :  { %5851 = vmatpush.bf16.msra.mxu1 %v8020_v53  ;;  %v5612_v53 = vpop.f32.mrf.mxu2  ;;  %v10442_v34 = vld [vmem:[#allocation5 + $0x92c] sm:$0xf]  ;;  %v7937_v41 = vld [vmem:[#allocation5 + $0x938] sm:$0xf0]  ;;  %v7812_v47 = vor.u32 %v10410_v35, %v7809_v3 }
 0x2b0   :  { %5864 = vmatpush.bf16.msra.mxu2 %v8148_v25  ;;  %v7953_v25 = vld [vmem:[#allocation5 + $0x958] sm:$0xf0]  ;;  %v5613_v7 = vadd.f32 %v5612_v53, %v5600_v56  ;;  %v10474_v4 = vld [vmem:[#allocation5 + $0xa2c] sm:$0xf]  ;;  %v7940_v40 = vor.u32 %v10442_v34, %v7937_v41 }
 0x2b1   :  { %5877 = vmatpush.bf16.msra.mxu3 %v8276_v11  ;;  %v5625_v11 = vpop.f32.mrf.mxu3  ;;  %v8065_v45 = vld [vmem:[#allocation5 + $0xa38] sm:$0xf0]  ;;  %v10506_v46 = vld [vmem:[#allocation5 + $0xb2c] sm:$0xf] }
 0x2b2   :  { %5839 = vmatpush.bf16.msra.mxu0 %v7876_v0  ;;  %v5601_v58 = vpop.f32.mrf.mxu1  ;;  %v11500_v0 = vadd.f32 %v5625_v11, %v5613_v7  ;;  %v8193_v37 = vld [vmem:[#allocation5 + $0xb38] sm:$0xf0]  ;;  %v10406_v38 = vld [vmem:[#allocation5 + $0x80c] sm:$0xf] }
 0x2b3   :  { %5852 = vmatpush.bf16.msra.mxu1 %v8004_v30  ;;  %v7956_v30 = vor.u32 %v10446_v63, %v7953_v25  ;;  %v7921_v50 = vld [vmem:[#allocation5 + $0x918] sm:$0xf0]  ;;  %v10470_v52 = vld [vmem:[#allocation5 + $0xa0c] sm:$0xf]  ;;  %v8196_v54 = vor.u32 %v10506_v46, %v8193_v37 }
 0x2b4   :  { %5865 = vmatpush.bf16.msra.mxu2 %v8132_v33  ;;  %v8084_v33 = vor.u32 %v10478_v6, %v8081_v51  ;;  %v10502_v56 = vld [vmem:[#allocation5 + $0xb0c] sm:$0xf]  ;;  %v8177_v10 = vld [vmem:[#allocation5 + $0xb18] sm:$0xf0] }
 0x2b5   :  { %5878 = vmatpush.bf16.msra.mxu3 %v8260_v39  ;;  %v8212_v39 = vor.u32 %v10510_v14, %v8209_v16  ;;  %v10562_v43 = vld [vmem:[#allocation5 + $0xcec] sm:$0xf]  ;;  %v8417_v44 = vld [vmem:[#allocation5 + $0xcf8] sm:$0xf0]  ;;  %v8180_v6 = vor.u32 %v10502_v56, %v8177_v10 }
 0x2b6   :  { %5840 = vmatpush.bf16.msra.mxu0 %v7860_v12  ;;  %v7793_v12 = vld [vmem:[#allocation5 + $0x818] sm:$0xf0]  ;;  %v10594_v8 = vld [vmem:[#allocation5 + $0xdec] sm:$0xf]  ;;  %v8420_v51 = vor.u32 %v10562_v43, %v8417_v44 }
 0x2b7   :  { %5853 = vmatpush.bf16.msra.mxu1 %v7988_v48  ;;  %v8068_v48 = vor.u32 %v10474_v4, %v8065_v45  ;;  %v5614_v17 = vpop.f32.mrf.mxu2  ;;  %v10626_v62 = vld [vmem:[#allocation5 + $0xeec] sm:$0xf]  ;;  %v8673_v9 = vld [vmem:[#allocation5 + $0xef8] sm:$0xf0] }
 0x2b8   :  { %5866 = vmatpush.bf16.msra.mxu2 %v8116_v49  ;;  %v10438_v49 = vld [vmem:[#allocation5 + $0x90c] sm:$0xf]  ;;  %v8801_v25 = vld [vmem:[#allocation5 + $0xff8] sm:$0xf0]  ;;  %v8676_v11 = vor.u32 %v10626_v62, %v8673_v9 }
 0x2b9   :  { %5879 = vmatpush.bf16.msra.mxu3 %v8244_v55  ;;  %v8049_v55 = vld [vmem:[#allocation5 + $0xa18] sm:$0xf0]  ;;  %v7924_v63 = vor.u32 %v10438_v49, %v7921_v50  ;;  %v10658_v53 = vld [vmem:[#allocation5 + $0xfec] sm:$0xf] }
 0x2ba   :  { %5841 = vmatpush.bf16.msra.mxu0 %v7844_v59  ;;  %v5627_v59 = vpop.f32.mrf.mxu3  ;;  %v10558_v14 = vld [vmem:[#allocation5 + $0xccc] sm:$0xf]  ;;  %v8401_v16 = vld [vmem:[#allocation5 + $0xcd8] sm:$0xf0] }
 0x2bb   :  { %5854 = vmatpush.bf16.msra.mxu1 %v7972_v57  ;;  %v7796_v57 = vor.u32 %v10406_v38, %v7793_v12  ;;  %v10590_v21 = vld [vmem:[#allocation5 + $0xdcc] sm:$0xf]  ;;  %v8529_v58 = vld [vmem:[#allocation5 + $0xdd8] sm:$0xf0]  ;;  %v8404_v34 = vor.u32 %v10558_v14, %v8401_v16 }
 0x2bc   :  { %5867 = vmatpush.bf16.msra.mxu2 %v8100_v60  ;;  %v8545_v60 = vld [vmem:[#allocation5 + $0xdf8] sm:$0xf0]  ;;  %v10654_v35 = vld [vmem:[#allocation5 + $0xfcc] sm:$0xf] }
 0x2bd   :  { %5880 = vmatpush.bf16.msra.mxu3 %v8228_v15  ;;  %v8052_v15 = vor.u32 %v10470_v52, %v8049_v55  ;;  %v8548_v7 = vor.u32 %v10594_v8, %v8545_v60  ;;  %v8785_v3 = vld [vmem:[#allocation5 + $0xfd8] sm:$0xf0]  ;;  %v10554_v4 = vld [vmem:[#allocation5 + $0xcac] sm:$0xf] }
 0x2be   :  { %5842 = vmatpush.bf16.msra.mxu0 %v7828_v28  ;;  %v8804_v28 = vor.u32 %v10658_v53, %v8801_v25  ;;  %v8385_v45 = vld [vmem:[#allocation5 + $0xcb8] sm:$0xf0]  ;;  %v10586_v46 = vld [vmem:[#allocation5 + $0xdac] sm:$0xf]  ;;  %v8788_v37 = vor.u32 %v10654_v35, %v8785_v3 }
 0x2bf   :  { %5855 = vmatpush.bf16.msra.mxu1 %v7956_v30  ;;  %v10622_v30 = vld [vmem:[#allocation5 + $0xecc] sm:$0xf]  ;;  %v8641_v12 = vld [vmem:[#allocation5 + $0xeb8] sm:$0xf0]  ;;  %v8388_v49 = vor.u32 %v10554_v4, %v8385_v45 }
 0x2c0   :  { %5868 = vmatpush.bf16.msra.mxu2 %v8084_v33  ;;  %v8657_v33 = vld [vmem:[#allocation5 + $0xed8] sm:$0xf0]  ;;  %v10618_v38 = vld [vmem:[#allocation5 + $0xeac] sm:$0xf] }
 0x2c1   :  { %5881 = vmatpush.bf16.msra.mxu3 %v8212_v39  ;;  %v8532_v39 = vor.u32 %v10590_v21, %v8529_v58  ;;  %v8660_v41 = vor.u32 %v10622_v30, %v8657_v33  ;;  %v8644_v52 = vor.u32 %v10618_v38, %v8641_v12  ;;  %v10582_v55 = vld [vmem:[#allocation5 + $0xd8c] sm:$0xf]  ;;  %v8497_v10 = vld [vmem:[#allocation5 + $0xd98] sm:$0xf0] }
 0x2c2   :  { %5843 = vmatpush.bf16.msra.mxu0 %v7812_v47  ;;  %v8513_v47 = vld [vmem:[#allocation5 + $0xdb8] sm:$0xf0]  ;;  %v10614_v17 = vld [vmem:[#allocation5 + $0xe8c] sm:$0xf] }
 0x2c3   :  { %5856 = vmatpush.bf16.msra.mxu1 %v7940_v40  ;;  %v10650_v40 = vld [vmem:[#allocation5 + $0xfac] sm:$0xf]  ;;  %v8516_v50 = vor.u32 %v10586_v46, %v8513_v47  ;;  %v8753_v44 = vld [vmem:[#allocation5 + $0xf98] sm:$0xf0] }
 0x2c4   :  { %5869 = vmatpush.bf16.msra.mxu2 %v8068_v48  ;;  %v8769_v48 = vld [vmem:[#allocation5 + $0xfb8] sm:$0xf0]  ;;  %v10546_v62 = vld [vmem:[#allocation5 + $0xc6c] sm:$0xf] }
 0x2c5   :  { %5882 = vmatpush.bf16.msra.mxu3 %v8196_v54  ;;  %v10550_v54 = vld [vmem:[#allocation5 + $0xc8c] sm:$0xf]  ;;  %v8772_v56 = vor.u32 %v10650_v40, %v8769_v48  ;;  %v8353_v9 = vld [vmem:[#allocation5 + $0xc78] sm:$0xf0] }
 0x2c6   :  { %5844 = vmatpush.bf16.msra.mxu0 %v7796_v57  ;;  %v5638_v43 = vpop.f32.mrf.mxu0  ;;  %v8500_v57 = vor.u32 %v10582_v55, %v8497_v10  ;;  %v8481_v25 = vld [vmem:[#allocation5 + $0xd78] sm:$0xf0]  ;;  %v8356_v14 = vor.u32 %v10546_v62, %v8353_v9  ;;  %v10542_v21 = vld [vmem:[#allocation5 + $0xc4c] sm:$0xf] }
 0x2c7   :  { %5857 = vmatpush.bf16.msra.mxu1 %v7924_v63  ;;  %v5651_v59 = vpop.f32.mrf.mxu1  ;;  %v10578_v63 = vld [vmem:[#allocation5 + $0xd6c] sm:$0xf]  ;;  %v8465_v35 = vld [vmem:[#allocation5 + $0xd58] sm:$0xf0] }
 0x2c8   :  { %5870 = vmatpush.bf16.msra.mxu2 %v8052_v15  ;;  %v10574_v58 = vld [vmem:[#allocation5 + $0xd4c] sm:$0xf]  ;;  %v8721_v45 = vld [vmem:[#allocation5 + $0xf58] sm:$0xf0] }
 0x2c9   :  { %5883 = vmatpush.bf16.msra.mxu3 %v8180_v6  ;;  %5845 = vmatmul.bf16.vlgmr.msra.gmra.mxu0 %v11353_v18  ;;  %v8369_v18 = vld [vmem:[#allocation5 + $0xc98] sm:$0xf0]  ;;  %v10610_v6 = vld [vmem:[#allocation5 + $0xe6c] sm:$0xf]  ;;  %v8468_v12 = vor.u32 %v10574_v58, %v8465_v35 }
 0x2ca   :  { %5889 = vmatpush.bf16.msrb.mxu0 %v8420_v51  ;;  %5858 = vmatmul.bf16.vlgmr.msra.gmra.mxu1 %v11357_v23  ;;  %v10646_v23 = vld [vmem:[#allocation5 + $0xf8c] sm:$0xf]  ;;  %v8372_v8 = vor.u32 %v10550_v54, %v8369_v18  ;;  %v8609_v51 = vld [vmem:[#allocation5 + $0xe78] sm:$0xf0] }
 0x2cb   :  { %5902 = vmatpush.bf16.msrb.mxu1 %v8548_v7  ;;  %5871 = vmatmul.bf16.vlgmr.msra.gmra.mxu2 %v11355_v22  ;;  %v8625_v22 = vld [vmem:[#allocation5 + $0xe98] sm:$0xf0]  ;;  %v8756_v15 = vor.u32 %v10646_v23, %v8753_v44  ;;  %v10642_v7 = vld [vmem:[#allocation5 + $0xf6c] sm:$0xf]  ;;  %v8612_v16 = vor.u32 %v10610_v6, %v8609_v51 }
 0x2cc   :  { %5915 = vmatpush.bf16.msrb.mxu2 %v8676_v11  ;;  %5884 = vmatmul.bf16.vlgmr.msra.gmra.mxu3 %v11359_v27  ;;  %v5639_v27 = vadd.f32 %v5638_v43, %v11500_v0  ;;  %v8628_v60 = vor.u32 %v10614_v17, %v8625_v22  ;;  %v8737_v11 = vld [vmem:[#allocation5 + $0xf78] sm:$0xf0]  ;;  %v8484_v0 = vor.u32 %v10578_v63, %v8481_v25  ;;  %v10606_v3 = vld [vmem:[#allocation5 + $0xe4c] sm:$0xf] }
 0x2cd   :  { %5928 = vmatpush.bf16.msrb.mxu3 %v8804_v28  ;;  %v8337_v28 = vld [vmem:[#allocation5 + $0xc58] sm:$0xf0]  ;;  %v8740_v30 = vor.u32 %v10642_v7, %v8737_v11  ;;  %v10638_v4 = vld [vmem:[#allocation5 + $0xf4c] sm:$0xf] }
 0x2ce   :  { %5890 = vmatpush.bf16.msrb.mxu0 %v8404_v34  ;;  %v5652_v53 = vadd.f32 %v5651_v59, %v5639_v27  ;;  %v5664_v33 = vpop.f32.mrf.mxu2  ;;  %v8593_v34 = vld [vmem:[#allocation5 + $0xe58] sm:$0xf0]  ;;  %v5640_v46 = vpop.f32.mrf.mxu0  ;;  %v10538_v48 = vld [vmem:[#allocation5 + $0xc2c] sm:$0xf] }
 0x2cf   :  { %5903 = vmatpush.bf16.msrb.mxu1 %v8532_v39  ;;  %v5653_v47 = vpop.f32.mrf.mxu1  ;;  %v8596_v40 = vor.u32 %v10606_v3, %v8593_v34  ;;  %v8449_v54 = vld [vmem:[#allocation5 + $0xd38] sm:$0xf0]  ;;  %v10602_v18 = vld [vmem:[#allocation5 + $0xe2c] sm:$0xf] }
 0x2d0   :  { %5916 = vmatpush.bf16.msrb.mxu2 %v8660_v41  ;;  %v5665_v39 = vadd.f32 %v5664_v33, %v5652_v53  ;;  %v5677_v41 = vpop.f32.mrf.mxu3  ;;  %v8577_v55 = vld [vmem:[#allocation5 + $0xe38] sm:$0xf0]  ;;  %v10534_v22 = vld [vmem:[#allocation5 + $0xc0c] sm:$0xf] }
 0x2d1   :  { %5929 = vmatpush.bf16.msrb.mxu3 %v8788_v37  ;;  %v8340_v37 = vor.u32 %v10542_v21, %v8337_v28  ;;  %v8705_v10 = vld [vmem:[#allocation5 + $0xf38] sm:$0xf0]  ;;  %v8580_v44 = vor.u32 %v10602_v18, %v8577_v55  ;;  %v10566_v27 = vld [vmem:[#allocation5 + $0xd0c] sm:$0xf] }
 0x2d2   :  { %5891 = vmatpush.bf16.msrb.mxu0 %v8388_v49  ;;  %v11507_v38 = vadd.f32 %v5677_v41, %v5665_v39  ;;  %v8321_v49 = vld [vmem:[#allocation5 + $0xc38] sm:$0xf0]  ;;  %v10598_v59 = vld [vmem:[#allocation5 + $0xe0c] sm:$0xf] }
 0x2d3   :  { %5904 = vmatpush.bf16.msrb.mxu1 %v8516_v50  ;;  %v10570_v50 = vld [vmem:[#allocation5 + $0xd2c] sm:$0xf]  ;;  %v8324_v17 = vor.u32 %v10538_v48, %v8321_v49  ;;  %v8305_v43 = vld [vmem:[#allocation5 + $0xc18] sm:$0xf0] }
 0x2d4   :  { %5917 = vmatpush.bf16.msrb.mxu2 %v8644_v52  ;;  %v8724_v52 = vor.u32 %v10638_v4, %v8721_v45  ;;  %v8452_v23 = vor.u32 %v10570_v50, %v8449_v54  ;;  %v10630_v62 = vld [vmem:[#allocation5 + $0xf0c] sm:$0xf]  ;;  %v8689_v9 = vld [vmem:[#allocation5 + $0xf18] sm:$0xf0]  ;;  %v8308_v51 = vor.u32 %v10534_v22, %v8305_v43 }
 0x2d5   :  { %5930 = vmatpush.bf16.msrb.mxu3 %v8772_v56  ;;  %v10634_v56 = vld [vmem:[#allocation5 + $0xf2c] sm:$0xf]  ;;  %v8929_v53 = vld [vmem:[#allocation5 + $0x10f8] sm:$0xf0]  ;;  %v8692_v58 = vor.u32 %v10630_v62, %v8689_v9 }
 0x2d6   :  { %5892 = vmatpush.bf16.msrb.mxu0 %v8372_v8  ;;  %v8433_v8 = vld [vmem:[#allocation5 + $0xd18] sm:$0xf0]  ;;  %v5666_v63 = vpop.f32.mrf.mxu2  ;;  %v10722_v25 = vld [vmem:[#allocation5 + $0x11ec] sm:$0xf] }
 0x2d7   :  { %5905 = vmatpush.bf16.msrb.mxu1 %v8500_v57  ;;  %v8708_v57 = vor.u32 %v10634_v56, %v8705_v10  ;;  %v9057_v7 = vld [vmem:[#allocation5 + $0x11f8] sm:$0xf0]  ;;  %v10754_v11 = vld [vmem:[#allocation5 + $0x12ec] sm:$0xf] }
 0x2d8   :  { %5918 = vmatpush.bf16.msrb.mxu2 %v8628_v60  ;;  %v8561_v60 = vld [vmem:[#allocation5 + $0xe18] sm:$0xf0]  ;;  %v5679_v6 = vpop.f32.mrf.mxu3  ;;  %v10786_v21 = vld [vmem:[#allocation5 + $0x13ec] sm:$0xf]  ;;  %v9060_v33 = vor.u32 %v10722_v25, %v9057_v7 }
 0x2d9   :  { %5931 = vmatpush.bf16.msrb.mxu3 %v8756_v15  ;;  %v10690_v15 = vld [vmem:[#allocation5 + $0x10ec] sm:$0xf]  ;;  %v9313_v28 = vld [vmem:[#allocation5 + $0x13f8] sm:$0xf0] }
 0x2da   :  { %5893 = vmatpush.bf16.msrb.mxu0 %v8356_v14  ;;  %v9185_v14 = vld [vmem:[#allocation5 + $0x12f8] sm:$0xf0]  ;;  %v10686_v3 = vld [vmem:[#allocation5 + $0x10cc] sm:$0xf]  ;;  %v9316_v41 = vor.u32 %v10786_v21, %v9313_v28 }
 0x2db   :  { %5906 = vmatpush.bf16.msrb.mxu1 %v8484_v0  ;;  %v8436_v0 = vor.u32 %v10566_v27, %v8433_v8  ;;  %v9188_v35 = vor.u32 %v10754_v11, %v9185_v14  ;;  %v8913_v34 = vld [vmem:[#allocation5 + $0x10d8] sm:$0xf0]  ;;  %v10718_v39 = vld [vmem:[#allocation5 + $0x11cc] sm:$0xf] }
 0x2dc   :  { %5919 = vmatpush.bf16.msrb.mxu2 %v8612_v16  ;;  %v8564_v16 = vor.u32 %v10598_v59, %v8561_v60  ;;  %v9041_v4 = vld [vmem:[#allocation5 + $0x11d8] sm:$0xf0]  ;;  %v10750_v45 = vld [vmem:[#allocation5 + $0x12cc] sm:$0xf] }
 0x2dd   :  { %5932 = vmatpush.bf16.msrb.mxu3 %v8740_v30  ;;  %v8932_v30 = vor.u32 %v10690_v15, %v8929_v53  ;;  %v9169_v46 = vld [vmem:[#allocation5 + $0x12d8] sm:$0xf0]  ;;  %v10682_v49 = vld [vmem:[#allocation5 + $0x10ac] sm:$0xf] }
 0x2de   :  { %5894 = vmatpush.bf16.msrb.mxu0 %v8340_v37  ;;  %v10782_v37 = vld [vmem:[#allocation5 + $0x13cc] sm:$0xf]  ;;  %v9297_v47 = vld [vmem:[#allocation5 + $0x13d8] sm:$0xf0]  ;;  %v9172_v48 = vor.u32 %v10750_v45, %v9169_v46 }
 0x2df   :  { %5907 = vmatpush.bf16.msrb.mxu1 %v8468_v12  ;;  %v8916_v12 = vor.u32 %v10686_v3, %v8913_v34  ;;  %v8897_v50 = vld [vmem:[#allocation5 + $0x10b8] sm:$0xf0]  ;;  %v9300_v54 = vor.u32 %v10782_v37, %v9297_v47  ;;  %v10746_v55 = vld [vmem:[#allocation5 + $0x12ac] sm:$0xf] }
 0x2e0   :  { %5920 = vmatpush.bf16.msrb.mxu2 %v8596_v40  ;;  %v9044_v40 = vor.u32 %v10718_v39, %v9041_v4  ;;  %v9025_v18 = vld [vmem:[#allocation5 + $0x11b8] sm:$0xf0]  ;;  %v10778_v10 = vld [vmem:[#allocation5 + $0x13ac] sm:$0xf]  ;;  %v8900_v22 = vor.u32 %v10682_v49, %v8897_v50 }
 0x2e1   :  { %5933 = vmatpush.bf16.msrb.mxu3 %v8724_v52  ;;  %v10714_v52 = vld [vmem:[#allocation5 + $0x11ac] sm:$0xf]  ;;  %v9153_v56 = vld [vmem:[#allocation5 + $0x12b8] sm:$0xf0] }
 0x2e2   :  { %5895 = vmatpush.bf16.msrb.mxu0 %v8324_v17  ;;  %v9281_v17 = vld [vmem:[#allocation5 + $0x13b8] sm:$0xf0]  ;;  %v9028_v43 = vor.u32 %v10714_v52, %v9025_v18  ;;  %v10710_v27 = vld [vmem:[#allocation5 + $0x118c] sm:$0xf] }
 0x2e3   :  { %5908 = vmatpush.bf16.msrb.mxu1 %v8452_v23  ;;  %v9156_v23 = vor.u32 %v10746_v55, %v9153_v56  ;;  %v9284_v8 = vor.u32 %v10778_v10, %v9281_v17  ;;  %v9009_v59 = vld [vmem:[#allocation5 + $0x1198] sm:$0xf0]  ;;  %v10674_v25 = vld [vmem:[#allocation5 + $0x106c] sm:$0xf] }
 0x2e4   :  { %5921 = vmatpush.bf16.msrb.mxu2 %v8580_v44  ;;  %v10678_v44 = vld [vmem:[#allocation5 + $0x108c] sm:$0xf]  ;;  %v9265_v62 = vld [vmem:[#allocation5 + $0x1398] sm:$0xf0]  ;;  %v9012_v15 = vor.u32 %v10710_v27, %v9009_v59 }
 0x2e5   :  { %5934 = vmatpush.bf16.msrb.mxu3 %v8708_v57  ;;  %v10742_v57 = vld [vmem:[#allocation5 + $0x128c] sm:$0xf]  ;;  %v8865_v6 = vld [vmem:[#allocation5 + $0x1078] sm:$0xf0] }
 0x2e6   :  { %5896 = vmatpush.bf16.msrb.mxu0 %v8308_v51  ;;  %v5690_v60 = vpop.f32.mrf.mxu0  ;;  %v10706_v51 = vld [vmem:[#allocation5 + $0x116c] sm:$0xf]  ;;  %v8993_v14 = vld [vmem:[#allocation5 + $0x1178] sm:$0xf0] }
 0x2e7   :  { %5909 = vmatpush.bf16.msrb.mxu1 %v8436_v0  ;;  %v5703_v63 = vpop.f32.mrf.mxu1  ;;  %v10738_v0 = vld [vmem:[#allocation5 + $0x126c] sm:$0xf]  ;;  %v9249_v28 = vld [vmem:[#allocation5 + $0x1378] sm:$0xf0] }
 0x2e8   :  { %5922 = vmatpush.bf16.msrb.mxu2 %v8564_v16  ;;  %v9121_v16 = vld [vmem:[#allocation5 + $0x1278] sm:$0xf0]  ;;  %v10770_v21 = vld [vmem:[#allocation5 + $0x136c] sm:$0xf] }
 0x2e9   :  { %5935 = vmatpush.bf16.msrb.mxu3 %v8692_v58  ;;  %5897 = vmatmul.bf16.vlgmr.msrb.gmra.mxu0 %v11365_v13  ;;  %v8881_v13 = vld [vmem:[#allocation5 + $0x1098] sm:$0xf0]  ;;  %v8868_v58 = vor.u32 %v10674_v25, %v8865_v6  ;;  %v10702_v3 = vld [vmem:[#allocation5 + $0x114c] sm:$0xf]  ;;  %v9252_v34 = vor.u32 %v10770_v21, %v9249_v28 }
 0x2ea   :  { %5941 = vmatpush.bf16.msra.mxu0 %v8932_v30  ;;  %5910 = vmatmul.bf16.vlgmr.msrb.gmra.mxu1 %v11369_v20  ;;  %v10774_v20 = vld [vmem:[#allocation5 + $0x138c] sm:$0xf]  ;;  %v8884_v9 = vor.u32 %v10678_v44, %v8881_v13  ;;  %v9124_v30 = vor.u32 %v10738_v0, %v9121_v16  ;;  %v9105_v45 = vld [vmem:[#allocation5 + $0x1258] sm:$0xf0] }
 0x2eb   :  { %5954 = vmatpush.bf16.msra.mxu1 %v9060_v33  ;;  %5923 = vmatmul.bf16.vlgmr.msrb.gmra.mxu2 %v11367_v19  ;;  %v9137_v19 = vld [vmem:[#allocation5 + $0x1298] sm:$0xf0]  ;;  %v9268_v7 = vor.u32 %v10774_v20, %v9265_v62  ;;  %v10670_v33 = vld [vmem:[#allocation5 + $0x104c] sm:$0xf] }
 0x2ec   :  { %5967 = vmatpush.bf16.msra.mxu2 %v9188_v35  ;;  %5936 = vmatmul.bf16.vlgmr.msrb.gmra.mxu3 %v11371_v26  ;;  %v5691_v26 = vadd.f32 %v5690_v60, %v11507_v38  ;;  %v9140_v53 = vor.u32 %v10742_v57, %v9137_v19  ;;  %v8996_v38 = vor.u32 %v10706_v51, %v8993_v14  ;;  %v8849_v35 = vld [vmem:[#allocation5 + $0x1058] sm:$0xf0]  ;;  %v10734_v4 = vld [vmem:[#allocation5 + $0x124c] sm:$0xf] }
 0x2ed   :  { %5980 = vmatpush.bf16.msra.mxu3 %v9316_v41  ;;  %v8977_v41 = vld [vmem:[#allocation5 + $0x1158] sm:$0xf0]  ;;  %v10766_v47 = vld [vmem:[#allocation5 + $0x134c] sm:$0xf] }
 0x2ee   :  { %5942 = vmatpush.bf16.msra.mxu0 %v8916_v12  ;;  %v5704_v11 = vadd.f32 %v5703_v63, %v5691_v26  ;;  %v5716_v39 = vpop.f32.mrf.mxu2  ;;  %v9233_v12 = vld [vmem:[#allocation5 + $0x1358] sm:$0xf0]  ;;  %v8980_v52 = vor.u32 %v10702_v3, %v8977_v41  ;;  %v10666_v18 = vld [vmem:[#allocation5 + $0x102c] sm:$0xf] }
 0x2ef   :  { %5955 = vmatpush.bf16.msra.mxu1 %v9044_v40  ;;  %v5729_v37 = vpop.f32.mrf.mxu3  ;;  %v5692_v40 = vpop.f32.mrf.mxu0  ;;  %v8833_v55 = vld [vmem:[#allocation5 + $0x1038] sm:$0xf0]  ;;  %v10698_v56 = vld [vmem:[#allocation5 + $0x112c] sm:$0xf]  ;;  %v9236_v10 = vor.u32 %v10766_v47, %v9233_v12 }
 0x2f0   :  { %5968 = vmatpush.bf16.msra.mxu2 %v9172_v48  ;;  %v5717_v46 = vadd.f32 %v5716_v39, %v5704_v11  ;;  %v8852_v48 = vor.u32 %v10670_v33, %v8849_v35  ;;  %v5705_v49 = vpop.f32.mrf.mxu1  ;;  %v8961_v17 = vld [vmem:[#allocation5 + $0x1138] sm:$0xf0]  ;;  %v8836_v13 = vor.u32 %v10666_v18, %v8833_v55  ;;  %v10662_v27 = vld [vmem:[#allocation5 + $0x100c] sm:$0xf] }
 0x2f1   :  { %5981 = vmatpush.bf16.msra.mxu3 %v9300_v54  ;;  %v9108_v54 = vor.u32 %v10734_v4, %v9105_v45  ;;  %v9217_v44 = vld [vmem:[#allocation5 + $0x1338] sm:$0xf0]  ;;  %v8964_v59 = vor.u32 %v10698_v56, %v8961_v17  ;;  %v10694_v19 = vld [vmem:[#allocation5 + $0x110c] sm:$0xf] }
 0x2f2   :  { %5943 = vmatpush.bf16.msra.mxu0 %v8900_v22  ;;  %v11514_v50 = vadd.f32 %v5729_v37, %v5717_v46  ;;  %v10730_v22 = vld [vmem:[#allocation5 + $0x122c] sm:$0xf]  ;;  %v8945_v60 = vld [vmem:[#allocation5 + $0x1118] sm:$0xf0] }
 0x2f3   :  { %5956 = vmatpush.bf16.msra.mxu1 %v9028_v43  ;;  %v9089_v43 = vld [vmem:[#allocation5 + $0x1238] sm:$0xf0]  ;;  %v10726_v20 = vld [vmem:[#allocation5 + $0x120c] sm:$0xf]  ;;  %v8948_v16 = vor.u32 %v10694_v19, %v8945_v60 }
 0x2f4   :  { %5969 = vmatpush.bf16.msra.mxu2 %v9156_v23  ;;  %v10762_v23 = vld [vmem:[#allocation5 + $0x132c] sm:$0xf]  ;;  %v9092_v57 = vor.u32 %v10730_v22, %v9089_v43  ;;  %v9073_v26 = vld [vmem:[#allocation5 + $0x1218] sm:$0xf0] }
 0x2f5   :  { %5982 = vmatpush.bf16.msra.mxu3 %v9284_v8  ;;  %v8817_v8 = vld [vmem:[#allocation5 + $0x1018] sm:$0xf0]  ;;  %v9220_v62 = vor.u32 %v10762_v23, %v9217_v44  ;;  %v10850_v6 = vld [vmem:[#allocation5 + $0x15ec] sm:$0xf]  ;;  %v9076_v21 = vor.u32 %v10726_v20, %v9073_v26 }
 0x2f6   :  { %5944 = vmatpush.bf16.msra.mxu0 %v8884_v9  ;;  %v10758_v9 = vld [vmem:[#allocation5 + $0x130c] sm:$0xf]  ;;  %v9201_v63 = vld [vmem:[#allocation5 + $0x1318] sm:$0xf0] }
 0x2f7   :  { %5957 = vmatpush.bf16.msra.mxu1 %v9012_v15  ;;  %v5718_v15 = vpop.f32.mrf.mxu2  ;;  %v9441_v25 = vld [vmem:[#allocation5 + $0x14f8] sm:$0xf0]  ;;  %v5731_v51 = vpop.f32.mrf.mxu3  ;;  %v10882_v14 = vld [vmem:[#allocation5 + $0x16ec] sm:$0xf] }
 0x2f8   :  { %5970 = vmatpush.bf16.msra.mxu2 %v9140_v53  ;;  %v10818_v53 = vld [vmem:[#allocation5 + $0x14ec] sm:$0xf]  ;;  %v9569_v11 = vld [vmem:[#allocation5 + $0x15f8] sm:$0xf0] }
 0x2f9   :  { %5983 = vmatpush.bf16.msra.mxu3 %v9268_v7  ;;  %v8820_v7 = vor.u32 %v10662_v27, %v8817_v8  ;;  %v9697_v0 = vld [vmem:[#allocation5 + $0x16f8] sm:$0xf0]  ;;  %v10914_v28 = vld [vmem:[#allocation5 + $0x17ec] sm:$0xf]  ;;  %v9572_v33 = vor.u32 %v10850_v6, %v9569_v11  ;;  %v11019_v8 = vld [vmem:[#allocation7] sm:$0xf] }
 0x2fa   :  { %5945 = vmatpush.bf16.msra.mxu0 %v8868_v58  ;;  %v9825_v58 = vld [vmem:[#allocation5 + $0x17f8] sm:$0xf0]  ;;  %v9700_v35 = vor.u32 %v10882_v14, %v9697_v0  ;;  %v10814_v3 = vld [vmem:[#allocation5 + $0x14cc] sm:$0xf] }
 0x2fb   :  { %5958 = vmatpush.bf16.msra.mxu1 %v8996_v38  ;;  %v9204_v38 = vor.u32 %v10758_v9, %v9201_v63  ;;  %v10846_v39 = vld [vmem:[#allocation5 + $0x15cc] sm:$0xf]  ;;  %v9828_v41 = vor.u32 %v10914_v28, %v9825_v58  ;;  %v9553_v4 = vld [vmem:[#allocation5 + $0x15d8] sm:$0xf0] }
 0x2fc   :  { %5971 = vmatpush.bf16.msra.mxu2 %v9124_v30  ;;  %v9444_v30 = vor.u32 %v10818_v53, %v9441_v25  ;;  %v10878_v45 = vld [vmem:[#allocation5 + $0x16cc] sm:$0xf]  ;;  %v9681_v46 = vld [vmem:[#allocation5 + $0x16d8] sm:$0xf0]  ;;  %v9556_v40 = vor.u32 %v10846_v39, %v9553_v4 }
 0x2fd   :  { %5984 = vmatpush.bf16.msra.mxu3 %v9252_v34  ;;  %v9425_v34 = vld [vmem:[#allocation5 + $0x14d8] sm:$0xf0]  ;;  %v10910_v37 = vld [vmem:[#allocation5 + $0x17cc] sm:$0xf] }
 0x2fe   :  { %5946 = vmatpush.bf16.msra.mxu0 %v8852_v48  ;;  %v9809_v47 = vld [vmem:[#allocation5 + $0x17d8] sm:$0xf0]  ;;  %v9428_v12 = vor.u32 %v10814_v3, %v9425_v34  ;;  %v9684_v48 = vor.u32 %v10878_v45, %v9681_v46  ;;  %v10810_v49 = vld [vmem:[#allocation5 + $0x14ac] sm:$0xf] }
 0x2ff   :  { %5959 = vmatpush.bf16.msra.mxu1 %v8980_v52  ;;  %v9409_v52 = vld [vmem:[#allocation5 + $0x14b8] sm:$0xf0]  ;;  %v9812_v18 = vor.u32 %v10910_v37, %v9809_v47  ;;  %v10874_v56 = vld [vmem:[#allocation5 + $0x16ac] sm:$0xf] }
 0x300   :  { %5972 = vmatpush.bf16.msra.mxu2 %v9108_v54  ;;  %v10842_v54 = vld [vmem:[#allocation5 + $0x15ac] sm:$0xf]  ;;  %v9537_v55 = vld [vmem:[#allocation5 + $0x15b8] sm:$0xf0]  ;;  %v9412_v43 = vor.u32 %v10810_v49, %v9409_v52 }
 0x301   :  { %5985 = vmatpush.bf16.msra.mxu3 %v9236_v10  ;;  %v9665_v10 = vld [vmem:[#allocation5 + $0x16b8] sm:$0xf0]  ;;  %v10906_v17 = vld [vmem:[#allocation5 + $0x17ac] sm:$0xf]  ;;  %v9540_v44 = vor.u32 %v10842_v54, %v9537_v55 }
 0x302   :  { %5947 = vmatpush.bf16.msra.mxu0 %v8836_v13  ;;  %v9793_v22 = vld [vmem:[#allocation5 + $0x17b8] sm:$0xf0]  ;;  %v10806_v23 = vld [vmem:[#allocation5 + $0x148c] sm:$0xf]  ;;  %v9668_v13 = vor.u32 %v10874_v56, %v9665_v10 }
 0x303   :  { %5960 = vmatpush.bf16.msra.mxu1 %v8964_v59  ;;  %v10838_v27 = vld [vmem:[#allocation5 + $0x158c] sm:$0xf]  ;;  %v952_v59 = vperm.slane %v11019_v8, 3  ;;  %v9777_v20 = vld [vmem:[#allocation5 + $0x1798] sm:$0xf0] }
 0x304   :  { %5973 = vmatpush.bf16.msra.mxu2 %v9092_v57  ;;  %v9796_v57 = vor.u32 %v10906_v17, %v9793_v22  ;;  %v10870_v19 = vld [vmem:[#allocation5 + $0x168c] sm:$0xf]  ;;  %v9377_v15 = vld [vmem:[#allocation5 + $0x1478] sm:$0xf0] }
 0x305   :  { %5986 = vmatpush.bf16.msra.mxu3 %v9220_v62  ;;  %v10902_v60 = vld [vmem:[#allocation5 + $0x178c] sm:$0xf]  ;;  %v9633_v14 = vld [vmem:[#allocation5 + $0x1678] sm:$0xf0] }
 0x306   :  { %5948 = vmatpush.bf16.msra.mxu0 %v8820_v7  ;;  %v5742_v62 = vpop.f32.mrf.mxu0  ;;  %v10802_v63 = vld [vmem:[#allocation5 + $0x146c] sm:$0xf]  ;;  %v9780_v51 = vor.u32 %v10902_v60, %v9777_v20  ;;  %v9505_v7 = vld [vmem:[#allocation5 + $0x1578] sm:$0xf0] }
 0x307   :  { %5961 = vmatpush.bf16.msra.mxu1 %v8948_v16  ;;  %v10834_v53 = vld [vmem:[#allocation5 + $0x156c] sm:$0xf]  ;;  %v5743_v25 = vadd.f32 %v5742_v62, %v952_v59  ;;  %v5755_v6 = vpop.f32.mrf.mxu1  ;;  %v9761_v16 = vld [vmem:[#allocation5 + $0x1778] sm:$0xf0]  ;;  %v9380_v28 = vor.u32 %v10802_v63, %v9377_v15  ;;  %v9951_v15 = vld [vmem:[#allocation8 + $0xf0] sm:$0xf] }
 0x308   :  { %5974 = vmatpush.bf16.msra.mxu2 %v9076_v21  ;;  %v10866_v11 = vld [vmem:[#allocation5 + $0x166c] sm:$0xf]  ;;  %v9508_v58 = vor.u32 %v10834_v53, %v9505_v7  ;;  %v9489_v39 = vld [vmem:[#allocation5 + $0x1558] sm:$0xf0] }
 0x309   :  { %5987 = vmatpush.bf16.msra.mxu3 %v9204_v38  ;;  %5949 = vmatmul.bf16.vlgmr.msra.gmra.mxu0 %v11377_v24  ;;  %v9393_v24 = vld [vmem:[#allocation5 + $0x1498] sm:$0xf0]  ;;  %v10898_v0 = vld [vmem:[#allocation5 + $0x176c] sm:$0xf]  ;;  %v5756_v21 = vadd.f32 %v5755_v6, %v5743_v25  ;;  %v9636_v38 = vor.u32 %v10866_v11, %v9633_v14  ;;  %v10015_v6 = vld [vmem:[#allocation8 + $0x170] sm:$0xf] }
 0x30a   :  { %5993 = vmatpush.bf16.msrb.mxu0 %v9444_v30  ;;  %5962 = vmatmul.bf16.vlgmr.msra.gmra.mxu1 %v11381_v32  ;;  %v9649_v32 = vld [vmem:[#allocation5 + $0x1698] sm:$0xf0]  ;;  %v10798_v30 = vld [vmem:[#allocation5 + $0x144c] sm:$0xf]  ;;  %v9764_v34 = vor.u32 %v10898_v0, %v9761_v16 }
 0x30b   :  { %6006 = vmatpush.bf16.msrb.mxu1 %v9572_v33  ;;  %5975 = vmatmul.bf16.vlgmr.msra.gmra.mxu2 %v11379_v31  ;;  %v9521_v31 = vld [vmem:[#allocation5 + $0x1598] sm:$0xf0]  ;;  %v9652_v9 = vor.u32 %v10870_v19, %v9649_v32  ;;  %v10894_v37 = vld [vmem:[#allocation5 + $0x174c] sm:$0xf] }
 0x30c   :  { %6019 = vmatpush.bf16.msrb.mxu2 %v9700_v35  ;;  %5988 = vmatmul.bf16.vlgmr.msra.gmra.mxu3 %v11383_v36  ;;  %v9396_v36 = vor.u32 %v10806_v23, %v9393_v24  ;;  %v9524_v26 = vor.u32 %v10838_v27, %v9521_v31  ;;  %v9361_v33 = vld [vmem:[#allocation5 + $0x1458] sm:$0xf0]  ;;  %v10830_v35 = vld [vmem:[#allocation5 + $0x154c] sm:$0xf] }
 0x30d   :  { %6032 = vmatpush.bf16.msrb.mxu3 %v9828_v41  ;;  %v10862_v41 = vld [vmem:[#allocation5 + $0x164c] sm:$0xf]  ;;  %v9617_v4 = vld [vmem:[#allocation5 + $0x1658] sm:$0xf0]  ;;  %v9492_v49 = vor.u32 %v10830_v35, %v9489_v39 }
 0x30e   :  { %5994 = vmatpush.bf16.msrb.mxu0 %v9428_v12  ;;  %v5768_v3 = vpop.f32.mrf.mxu2  ;;  %v9745_v47 = vld [vmem:[#allocation5 + $0x1758] sm:$0xf0]  ;;  %v9364_v12 = vor.u32 %v10798_v30, %v9361_v33  ;;  %v9620_v52 = vor.u32 %v10862_v41, %v9617_v4  ;;  %v10794_v54 = vld [vmem:[#allocation5 + $0x142c] sm:$0xf]  ;;  %v10007_v33 = vld [vmem:[#allocation8 + $0x160] sm:$0xf] }
 0x30f   :  { %6007 = vmatpush.bf16.msrb.mxu1 %v9556_v40  ;;  %v5769_v45 = vadd.f32 %v5768_v3, %v5756_v21  ;;  %v5781_v46 = vpop.f32.mrf.mxu3  ;;  %v10826_v55 = vld [vmem:[#allocation5 + $0x152c] sm:$0xf]  ;;  %v5757_v56 = vpop.f32.mrf.mxu1  ;;  %v9748_v10 = vor.u32 %v10894_v37, %v9745_v47  ;;  %v9473_v17 = vld [vmem:[#allocation5 + $0x1538] sm:$0xf0]  ;;  %v9871_v41 = vld [vmem:[#allocation8 + $0x50] sm:$0xf] }
 0x310   :  { %6020 = vmatpush.bf16.msrb.mxu2 %v9684_v48  ;;  %v5744_v48 = vpop.f32.mrf.mxu0  ;;  %v10858_v22 = vld [vmem:[#allocation5 + $0x162c] sm:$0xf]  ;;  %v9329_v27 = vld [vmem:[#allocation5 + $0x1418] sm:$0xf0]  ;;  %v9476_v8 = vor.u32 %v10826_v55, %v9473_v17  ;;  %v9999_v37 = vld [vmem:[#allocation8 + $0x150] sm:$0xf] }
 0x311   :  { %6033 = vmatpush.bf16.msrb.mxu3 %v9812_v18  ;;  %v11520_v40 = vadd.f32 %v5781_v46, %v5769_v45  ;;  %v9345_v18 = vld [vmem:[#allocation5 + $0x1438] sm:$0xf0]  ;;  %v10890_v23 = vld [vmem:[#allocation5 + $0x172c] sm:$0xf]  ;;  %v9935_v45 = vld [vmem:[#allocation8 + $0xd0] sm:$0xf] }
 0x312   :  { %5995 = vmatpush.bf16.msrb.mxu0 %v9412_v43  ;;  %v9601_v43 = vld [vmem:[#allocation5 + $0x1638] sm:$0xf0]  ;;  %v10790_v24 = vld [vmem:[#allocation5 + $0x140c] sm:$0xf] }
 0x313   :  { %6008 = vmatpush.bf16.msrb.mxu1 %v9540_v44  ;;  %v9729_v44 = vld [vmem:[#allocation5 + $0x1738] sm:$0xf0]  ;;  %v9604_v59 = vor.u32 %v10858_v22, %v9601_v43  ;;  %v10854_v19 = vld [vmem:[#allocation5 + $0x160c] sm:$0xf]  ;;  %v9332_v53 = vor.u32 %v10790_v24, %v9329_v27  ;;  %v9919_v43 = vld [vmem:[#allocation8 + $0xb0] sm:$0xf] }
 0x314   :  { %6021 = vmatpush.bf16.msrb.mxu2 %v9668_v13  ;;  %v9348_v13 = vor.u32 %v10794_v54, %v9345_v18  ;;  %v9457_v31 = vld [vmem:[#allocation5 + $0x1518] sm:$0xf0]  ;;  %v9732_v60 = vor.u32 %v10890_v23, %v9729_v44  ;;  %v10946_v30 = vld [vmem:[#allocation8 + $0xe4] sm:$0xf0]  ;;  %v9927_v18 = vld [vmem:[#allocation8 + $0xc0] sm:$0xf] }
 0x315   :  { %6034 = vmatpush.bf16.msrb.mxu3 %v9796_v57  ;;  %v10822_v57 = vld [vmem:[#allocation5 + $0x150c] sm:$0xf]  ;;  %v9585_v20 = vld [vmem:[#allocation5 + $0x1618] sm:$0xf0]  ;;  %v9983_v24 = vld [vmem:[#allocation8 + $0x130] sm:$0xf] }
 0x316   :  { %5996 = vmatpush.bf16.msrb.mxu0 %v9396_v36  ;;  %v5770_v32 = vpop.f32.mrf.mxu2  ;;  %v10886_v36 = vld [vmem:[#allocation5 + $0x170c] sm:$0xf]  ;;  %v9713_v62 = vld [vmem:[#allocation5 + $0x1718] sm:$0xf0]  ;;  %v9460_v7 = vor.u32 %v10822_v57, %v9457_v31  ;;  %v9588_v11 = vor.u32 %v10854_v19, %v9585_v20  ;;  %v9847_v19 = vld [vmem:[#allocation8 + $0x20] sm:$0xf] }
 0x317   :  { %6009 = vmatpush.bf16.msrb.mxu1 %v9524_v26  ;;  %v5783_v26 = vpop.f32.mrf.mxu3  ;;  %v10932_v63 = vld [vmem:[#allocation8 + $0x74] sm:$0xf0]  ;;  %v9716_v14 = vor.u32 %v10886_v36, %v9713_v62  ;;  %v10962_v35 = vld [vmem:[#allocation8 + $0x164] sm:$0xf0]  ;;  %v9975_v62 = vld [vmem:[#allocation8 + $0x120] sm:$0xf] }
 0x318   :  { %6022 = vmatpush.bf16.msrb.mxu2 %v9652_v9  ;;  %v9887_v9 = vld [vmem:[#allocation8 + $0x70] sm:$0xf]  ;;  %v10948_v25 = vld [vmem:[#allocation8 + $0xf4] sm:$0xf0]  ;;  %v10008_v39 = vor.u32 %v10962_v35, %v10007_v33  ;;  %v10926_v54 = vld [vmem:[#allocation8 + $0x44] sm:$0xf0] }
 0x319   :  { %6035 = vmatpush.bf16.msrb.mxu3 %v9780_v51  ;;  %v10964_v51 = vld [vmem:[#allocation8 + $0x174] sm:$0xf0]  ;;  %v9888_v0 = vor.u32 %v10932_v63, %v9887_v9  ;;  %v9952_v16 = vor.u32 %v10948_v25, %v9951_v15  ;;  %v10942_v55 = vld [vmem:[#allocation8 + $0xc4] sm:$0xf0]  ;;  %v9895_v35 = vld [vmem:[#allocation8 + $0x80] sm:$0xf] }
 0x31a   :  { %5997 = vmatpush.bf16.msrb.mxu0 %v9380_v28  ;;  %v10016_v21 = vor.u32 %v10964_v51, %v10015_v6  ;;  %v9879_v28 = vld [vmem:[#allocation8 + $0x60] sm:$0xf]  ;;  %v10928_v4 = vld [vmem:[#allocation8 + $0x54] sm:$0xf0]  ;;  %v10958_v56 = vld [vmem:[#allocation8 + $0x144] sm:$0xf0] }
 0x31b   :  { %6010 = vmatpush.bf16.msrb.mxu1 %v9508_v58  ;;  %v10930_v58 = vld [vmem:[#allocation8 + $0x64] sm:$0xf0]  ;;  %v10944_v46 = vld [vmem:[#allocation8 + $0xd4] sm:$0xf0]  ;;  %v9839_v51 = vld [vmem:[#allocation8 + $0x10] sm:$0xf] }
 0x31c   :  { %6023 = vmatpush.bf16.msrb.mxu2 %v9636_v38  ;;  %v9943_v38 = vld [vmem:[#allocation8 + $0xe0] sm:$0xf]  ;;  %v9880_v3 = vor.u32 %v10930_v58, %v9879_v28  ;;  %v10960_v47 = vld [vmem:[#allocation8 + $0x154] sm:$0xf0]  ;;  %v9936_v48 = vor.u32 %v10944_v46, %v9935_v45  ;;  %v10922_v32 = vld [vmem:[#allocation8 + $0x24] sm:$0xf0] }
 0x31d   :  { %6036 = vmatpush.bf16.msrb.mxu3 %v9764_v34  ;;  %v9944_v34 = vor.u32 %v10946_v30, %v9943_v38  ;;  %v10924_v22 = vld [vmem:[#allocation8 + $0x34] sm:$0xf0]  ;;  %v10938_v36 = vld [vmem:[#allocation8 + $0xa4] sm:$0xf0]  ;;  %v9848_v63 = vor.u32 %v10922_v32, %v9847_v19  ;;  %v9831_v58 = vld [vmem:[#allocation8] sm:$0xf] }
 0x31e   :  { %5998 = vmatpush.bf16.msrb.mxu0 %v9364_v12  ;;  %v9872_v12 = vor.u32 %v10928_v4, %v9871_v41  ;;  %v10956_v27 = vld [vmem:[#allocation8 + $0x134] sm:$0xf0]  ;;  %v10954_v26 = vld [vmem:[#allocation8 + $0x124] sm:$0xf0]  ;;  %v10931_v4 = vld [vmem:[#allocation8 + $0x74] sm:$0xf] }
 0x31f   :  { %6011 = vmatpush.bf16.msrb.mxu1 %v9492_v49  ;;  %v10000_v49 = vor.u32 %v10960_v47, %v9999_v37  ;;  %v9984_v31 = vor.u32 %v10956_v27, %v9983_v24  ;;  %v9976_v6 = vor.u32 %v10954_v26, %v9975_v62  ;;  %v10918_v33 = vld [vmem:[#allocation8 + $0x4] sm:$0xf0]  ;;  %v9889_v46 = vld [vmem:[#allocation8 + $0x78] sm:$0xf0]  ;;  %v10947_v37 = vld [vmem:[#allocation8 + $0xf4] sm:$0xf] }
 0x320   :  { %6024 = vmatpush.bf16.msrb.mxu2 %v9620_v52  ;;  %v9863_v52 = vld [vmem:[#allocation8 + $0x40] sm:$0xf]  ;;  %v10950_v41 = vld [vmem:[#allocation8 + $0x104] sm:$0xf0]  ;;  %v9953_v47 = vld [vmem:[#allocation8 + $0xf8] sm:$0xf0] }
 0x321   :  { %6037 = vmatpush.bf16.msrb.mxu3 %v9748_v10  ;;  %v10927_v24 = vld [vmem:[#allocation8 + $0x54] sm:$0xf]  ;;  %v10001_v19 = vld [vmem:[#allocation8 + $0x158] sm:$0xf0]  ;;  %v9865_v62 = vld [vmem:[#allocation8 + $0x48] sm:$0xf0] }
 0x322   :  { %5999 = vmatpush.bf16.msrb.mxu0 %v9348_v13  ;;  %v10940_v13 = vld [vmem:[#allocation8 + $0xb4] sm:$0xf0]  ;;  %v10941_v26 = vld [vmem:[#allocation8 + $0xc4] sm:$0xf] }
 0x323   :  { %6012 = vmatpush.bf16.msrb.mxu1 %v9476_v8  ;;  %v9920_v57 = vor.u32 %v10940_v13, %v9919_v43  ;;  %v10961_v43 = vld [vmem:[#allocation8 + $0x164] sm:$0xf] }
 0x324   :  { %6025 = vmatpush.bf16.msrb.mxu2 %v9604_v59 }
 0x325   :  { %6038 = vmatpush.bf16.msrb.mxu3 %v9732_v60  ;;  %v9911_v60 = vld [vmem:[#allocation8 + $0xa0] sm:$0xf] }
 0x326   :  { %6000 = vmatpush.bf16.msrb.mxu0 %v9332_v53  ;;  %v5794_v10 = vpop.f32.mrf.mxu0  ;;  %v9912_v25 = vor.u32 %v10938_v36, %v9911_v60 }
 0x327   :  { %6013 = vmatpush.bf16.msrb.mxu1 %v9460_v7  ;;  %v5795_v23 = vadd.f32 %v5794_v10, %v11520_v40  ;;  %v5807_v44 = vpop.f32.mrf.mxu1  ;;  %v10920_v7 = vld [vmem:[#allocation8 + $0x14] sm:$0xf0]  ;;  %v10929_v10 = vld [vmem:[#allocation8 + $0x64] sm:$0xf] }
 0x328   :  { %6026 = vmatpush.bf16.msrb.mxu2 %v9588_v11  ;;  %v9903_v11 = vld [vmem:[#allocation8 + $0x90] sm:$0xf]  ;;  %v9840_v28 = vor.u32 %v10920_v7, %v9839_v51 }
 0x329   :  { %6039 = vmatpush.bf16.msrb.mxu3 %v9716_v14  ;;  %6001 = vmatmul.bf16.vlgmr.msrb.gmra.mxu0 %v11391_v61  ;;  %v9991_v61 = vld [vmem:[#allocation8 + $0x140] sm:$0xf]  ;;  %v5808_v8 = vadd.f32 %v5807_v44, %v5795_v23  ;;  %v10009_v23 = vld [vmem:[#allocation8 + $0x168] sm:$0xf0] }
 0x32a   :  { %6443 = vmatpush.bf16.msra.mxu0 %v9888_v0  ;;  %6014 = vmatmul.bf16.vlgmr.msrb.gmra.mxu1 %v11395_v2  ;;  %v9864_v2 = vor.u32 %v10926_v54, %v9863_v52  ;;  %v9992_v17 = vor.u32 %v10958_v56, %v9991_v61  ;;  %v10936_v0 = vld [vmem:[#allocation8 + $0x94] sm:$0xf0]  ;;  %v6045_v52 = vmax.f32 %v11432_v42, 0.0  ;;  %v6046_v54 = vmax.f32 %v11473_v29, 0.0 }
 0x32b   :  { %6456 = vmatpush.bf16.msra.mxu1 %v9952_v16  ;;  %6027 = vmatmul.bf16.vlgmr.msrb.gmra.mxu2 %v11393_v1  ;;  %v9928_v1 = vor.u32 %v10942_v55, %v9927_v18  ;;  %v9967_v16 = vld [vmem:[#allocation8 + $0x110] sm:$0xf]  ;;  %v9904_v38 = vor.u32 %v10936_v0, %v9903_v11  ;;  %v6047_v61 = vmax.f32 %v11514_v50, 0.0  ;;  %v9892_v56 = vor.u32 %v10931_v4, %v9889_v46  ;;  %v10923_v11 = vld [vmem:[#allocation8 + $0x34] sm:$0xf] }
 0x32c   :  { %6469 = vmatpush.bf16.msra.mxu2 %v10016_v21  ;;  %6040 = vmatmul.bf16.vlgmr.msrb.gmra.mxu3 %v11397_v5  ;;  %v9855_v5 = vld [vmem:[#allocation8 + $0x30] sm:$0xf]  ;;  %v10952_v21 = vld [vmem:[#allocation8 + $0x114] sm:$0xf0]  ;;  %v11532_v44 = vpack.c.bf16 %v6045_v52, %v6045_v52  ;;  %v11534_v42 = vpack.c.bf16 %v6046_v54, %v6046_v54  ;;  %v10012_v27 = vor.u32 %v10961_v43, %v10009_v23  ;;  %v9857_v0 = vld [vmem:[#allocation8 + $0x38] sm:$0xf0] }
 0x32d   :  { %v9856_v59 = vor.u32 %v10924_v22, %v9855_v5  ;;  %v9968_v30 = vor.u32 %v10952_v21, %v9967_v16  ;;  %v10945_v5 = vld [vmem:[#allocation8 + $0xe4] sm:$0xf]  ;;  %v9945_v22 = vld [vmem:[#allocation8 + $0xe8] sm:$0xf0]  ;;  %v11536_v29 = vpack.c.bf16 %v6047_v61, %v6047_v61  ;;  %v10939_v16 = vld [vmem:[#allocation8 + $0xb4] sm:$0xf] }
 0x32e   :  { %6444 = vmatpush.bf16.msra.mxu0 %v9880_v3  ;;  %v5820_v20 = vpop.f32.mrf.mxu2  ;;  %v5796_v53 = vpop.f32.mrf.mxu0  ;;  %v10934_v3 = vld [vmem:[#allocation8 + $0x84] sm:$0xf0]  ;;  %v9948_v13 = vor.u32 %v10945_v5, %v9945_v22  ;;  %v9921_v21 = vld [vmem:[#allocation8 + $0xb8] sm:$0xf0]  ;;  %v10953_v4 = vld [vmem:[#allocation8 + $0x124] sm:$0xf] }
 0x32f   :  { %6457 = vmatpush.bf16.msra.mxu1 %v9944_v34  ;;  %v5821_v9 = vadd.f32 %v5820_v20, %v5808_v8  ;;  %v5833_v40 = vpop.f32.mrf.mxu3  ;;  %v5809_v14 = vpop.f32.mrf.mxu1  ;;  %v9896_v18 = vor.u32 %v10934_v3, %v9895_v35  ;;  %v9873_v8 = vld [vmem:[#allocation8 + $0x58] sm:$0xf0]  ;;  %v10925_v20 = vld [vmem:[#allocation8 + $0x44] sm:$0xf]  ;;  %v10935_v61 = vld [vmem:[#allocation8 + $0x94] sm:$0xf] }
 0x330   :  { %6470 = vmatpush.bf16.msra.mxu2 %v10008_v39  ;;  %v9959_v39 = vld [vmem:[#allocation8 + $0x100] sm:$0xf]  ;;  %v9876_v32 = vor.u32 %v10927_v24, %v9873_v8  ;;  %v10921_v35 = vld [vmem:[#allocation8 + $0x24] sm:$0xf]  ;;  %v9833_v43 = vld [vmem:[#allocation8 + $0x8] sm:$0xf0] }
 0x331   :  { %v11527_v15 = vadd.f32 %v5833_v40, %v5821_v9  ;;  %v9960_v55 = vor.u32 %v10950_v41, %v9959_v39  ;;  %v9929_v9 = vld [vmem:[#allocation8 + $0xc8] sm:$0xf0]  ;;  %v10957_v40 = vld [vmem:[#allocation8 + $0x144] sm:$0xf] }
 0x332   :  { %6445 = vmatpush.bf16.msra.mxu0 %v9872_v12  ;;  %v9832_v12 = vor.u32 %v10918_v33, %v9831_v58  ;;  %v9932_v51 = vor.u32 %v10941_v26, %v9929_v9  ;;  %v10955_v58 = vld [vmem:[#allocation8 + $0x134] sm:$0xf]  ;;  %v9924_v33 = vor.u32 %v10939_v16, %v9921_v21  ;;  %v9913_v39 = vld [vmem:[#allocation8 + $0xa8] sm:$0xf0]  ;;  %v10917_v5 = vld [vmem:[#allocation8 + $0x4] sm:$0xf] }
 0x333   :  { %6458 = vmatpush.bf16.msra.mxu1 %v9936_v48  ;;  %v10963_v48 = vld [vmem:[#allocation8 + $0x174] sm:$0xf]  ;;  %v10933_v23 = vld [vmem:[#allocation8 + $0x84] sm:$0xf]  ;;  %v9961_v24 = vld [vmem:[#allocation8 + $0x108] sm:$0xf0] }
 0x334   :  { %6471 = vmatpush.bf16.msra.mxu2 %v10000_v49  ;;  %v10017_v49 = vld [vmem:[#allocation8 + $0x178] sm:$0xf0]  ;;  %v10978_v26 = vld [vmem:[#allocation8 + $0x1e4] sm:$0xf0]  ;;  %v10039_v16 = vld [vmem:[#allocation8 + $0x1a0] sm:$0xf] }
 0x335   :  { %v10970_v21 = vld [vmem:[#allocation8 + $0x1a4] sm:$0xf0] }
 0x336   :  { %6446 = vmatpush.bf16.msra.mxu0 %v9864_v2  ;;  %v5822_v34 = vpop.f32.mrf.mxu2  ;;  %v9956_v2 = vor.u32 %v10947_v37, %v9953_v47 }
 0x337   :  { %6459 = vmatpush.bf16.msra.mxu1 %v9928_v1  ;;  %v5835_v45 = vpop.f32.mrf.mxu3  ;;  %v10020_v1 = vor.u32 %v10963_v48, %v10017_v49  ;;  %v10937_v34 = vld [vmem:[#allocation8 + $0xa4] sm:$0xf]  ;;  %v10919_v49 = vld [vmem:[#allocation8 + $0x14] sm:$0xf] }
 0x338   :  { %6472 = vmatpush.bf16.msra.mxu2 %v9992_v17  ;;  %v9881_v17 = vld [vmem:[#allocation8 + $0x68] sm:$0xf0]  ;;  %v9916_v48 = vor.u32 %v10937_v34, %v9913_v39  ;;  %v10979_v39 = vld [vmem:[#allocation8 + $0x1f4] sm:$0xf] }
 0x339   :  { %v9884_v50 = vor.u32 %v10929_v10, %v9881_v17  ;;  %v9977_v45 = vld [vmem:[#allocation8 + $0x128] sm:$0xf0]  ;;  %v9969_v10 = vld [vmem:[#allocation8 + $0x118] sm:$0xf0] }
 0x33a   :  { %6447 = vmatpush.bf16.msra.mxu0 %v9856_v59  ;;  %v10943_v59 = vld [vmem:[#allocation8 + $0xd4] sm:$0xf] }
 0x33b   :  { %6460 = vmatpush.bf16.msra.mxu1 %v9920_v57  ;;  %v9937_v57 = vld [vmem:[#allocation8 + $0xd8] sm:$0xf0] }
 0x33c   :  { %6473 = vmatpush.bf16.msra.mxu2 %v9984_v31  ;;  %v10959_v31 = vld [vmem:[#allocation8 + $0x154] sm:$0xf]  ;;  %v9940_v60 = vor.u32 %v10943_v59, %v9937_v57  ;;  %v9836_v59 = vor.u32 %v10917_v5, %v9833_v43  ;;  %v10049_v43 = vld [vmem:[#allocation8 + $0x1b8] sm:$0xf0] }
 0x33d   :  { %v10004_v36 = vor.u32 %v10959_v31, %v10001_v19  ;;  %v10079_v19 = vld [vmem:[#allocation8 + $0x1f0] sm:$0xf] }
 0x33e   :  { %6448 = vmatpush.bf16.msra.mxu0 %v9848_v63  ;;  %v9993_v63 = vld [vmem:[#allocation8 + $0x148] sm:$0xf0] }
 0x33f   :  { %6461 = vmatpush.bf16.msra.mxu1 %v9912_v25  ;;  %v9996_v14 = vor.u32 %v10957_v40, %v9993_v63  ;;  %v10063_v40 = vld [vmem:[#allocation8 + $0x1d0] sm:$0xf]  ;;  %v10976_v63 = vld [vmem:[#allocation8 + $0x1d4] sm:$0xf0] }
 0x340   :  { %6474 = vmatpush.bf16.msra.mxu2 %v9976_v6  ;;  %v9868_v6 = vor.u32 %v10925_v20, %v9865_v62  ;;  %v10071_v62 = vld [vmem:[#allocation8 + $0x1e0] sm:$0xf] }
 0x341   :  { %v10072_v9 = vor.u32 %v10978_v26, %v10071_v62 }
 0x342   :  { %6449 = vmatpush.bf16.msra.mxu0 %v9840_v28 }
 0x343   :  { %6462 = vmatpush.bf16.msra.mxu1 %v9904_v38  ;;  %v9985_v38 = vld [vmem:[#allocation8 + $0x138] sm:$0xf0] }
 0x344   :  { %6475 = vmatpush.bf16.msra.mxu2 %v9968_v30  ;;  %v9860_v30 = vor.u32 %v10923_v11, %v9857_v0  ;;  %v9988_v3 = vor.u32 %v10955_v58, %v9985_v38  ;;  %v10047_v11 = vld [vmem:[#allocation8 + $0x1b0] sm:$0xf]  ;;  %v10040_v38 = vor.u32 %v10970_v21, %v10039_v16  ;;  %v6117_v21 = vld [vmem:[#allocation10] sm:$0x3] }
 0x346   :  { %6450 = vmatpush.bf16.msra.mxu0 %v9832_v12  ;;  %v5846_v53 = vpop.f32.mrf.mxu0 }
 0x347   :  { %6463 = vmatpush.bf16.msra.mxu1 %v9896_v18  ;;  %v5847_v25 = vadd.f32 %v5846_v53, %v11527_v15  ;;  %v5859_v7 = vpop.f32.mrf.mxu1  ;;  %v9849_v15 = vld [vmem:[#allocation8 + $0x28] sm:$0xf0]  ;;  %v9980_v18 = vor.u32 %v10953_v4, %v9977_v45 }
 0x348   :  { %6476 = vmatpush.bf16.msra.mxu2 %v9960_v55  ;;  %v9852_v12 = vor.u32 %v10921_v35, %v9849_v15  ;;  %v9841_v55 = vld [vmem:[#allocation8 + $0x18] sm:$0xf0]  ;;  %v10966_v15 = vld [vmem:[#allocation8 + $0x184] sm:$0xf0] }
 0x349   :  { %6451 = vmatmul.bf16.vlgmr.msra.gmra.mxu0 %v11532_v44  ;;  %v5860_v28 = vadd.f32 %v5859_v7, %v5847_v25  ;;  %v10064_v25 = vor.u32 %v10976_v63, %v10063_v40 }
 0x34a   :  { %6495 = vmatpush.bf16.msrb.mxu0 %v9892_v56  ;;  %6464 = vmatmul.bf16.vlgmr.msra.gmra.mxu1 %v11534_v42  ;;  %v9905_v56 = vld [vmem:[#allocation8 + $0x98] sm:$0xf0] }
 0x34b   :  { %6508 = vmatpush.bf16.msrb.mxu1 %v9956_v2  ;;  %6477 = vmatmul.bf16.vlgmr.msra.gmra.mxu2 %v11536_v29  ;;  %v10951_v2 = vld [vmem:[#allocation8 + $0x114] sm:$0xf]  ;;  %v9908_v17 = vor.u32 %v10935_v61, %v9905_v56 }
 0x34c   :  { %6521 = vmatpush.bf16.msrb.mxu2 %v10020_v1  ;;  %v9844_v1 = vor.u32 %v10919_v49, %v9841_v55  ;;  %v9972_v22 = vor.u32 %v10951_v2, %v9969_v10  ;;  %v10065_v49 = vld [vmem:[#allocation8 + $0x1d8] sm:$0xf0]  ;;  %v10973_v10 = vld [vmem:[#allocation8 + $0x1c4] sm:$0xf] }
 0x34e   :  { %6496 = vmatpush.bf16.msrb.mxu0 %v9884_v50  ;;  %v5872_v41 = vpop.f32.mrf.mxu2  ;;  %v5848_v47 = vpop.f32.mrf.mxu0  ;;  %v9897_v50 = vld [vmem:[#allocation8 + $0x88] sm:$0xf0] }
 0x34f   :  { %6509 = vmatpush.bf16.msrb.mxu1 %v9948_v13  ;;  %v5873_v46 = vadd.f32 %v5872_v41, %v5860_v28  ;;  %v5885_v37 = vpop.f32.mrf.mxu3  ;;  %v5861_v52 = vpop.f32.mrf.mxu1  ;;  %v10949_v13 = vld [vmem:[#allocation8 + $0x104] sm:$0xf]  ;;  %v9900_v57 = vor.u32 %v10933_v23, %v9897_v50  ;;  %v10081_v41 = vld [vmem:[#allocation8 + $0x1f8] sm:$0xf0]  ;;  %v10073_v47 = vld [vmem:[#allocation8 + $0x1e8] sm:$0xf0] }
 0x350   :  { %6522 = vmatpush.bf16.msrb.mxu2 %v10012_v27  ;;  %v9964_v31 = vor.u32 %v10949_v13, %v9961_v24  ;;  %v10084_v4 = vor.u32 %v10979_v39, %v10081_v41  ;;  %v10969_v13 = vld [vmem:[#allocation8 + $0x1a4] sm:$0xf]  ;;  %v10041_v24 = vld [vmem:[#allocation8 + $0x1a8] sm:$0xf0]  ;;  %v10988_v39 = vld [vmem:[#allocation11 + $0x38] sm:$0xff] }
 0x351   :  { %v11542_v54 = vadd.f32 %v5885_v37, %v5873_v46  ;;  %v10977_v37 = vld [vmem:[#allocation8 + $0x1e4] sm:$0xf]  ;;  %v10996_v41 = vld [vmem:[#allocation11 + $0x78] sm:$0xff] }
 0x352   :  { %6497 = vmatpush.bf16.msrb.mxu0 %v9876_v32  ;;  %v10980_v32 = vld [vmem:[#allocation8 + $0x1f4] sm:$0xf0] }
 0x353   :  { %6510 = vmatpush.bf16.msrb.mxu1 %v9940_v60  ;;  %v10080_v60 = vor.u32 %v10980_v32, %v10079_v19 }
 0x354   :  { %6523 = vmatpush.bf16.msrb.mxu2 %v10004_v36 }
 0x355   :  { %6482 = vmatpush.bf16.msra.mxu3 %v10080_v60  ;;  %v10965_v60 = vld [vmem:[#allocation8 + $0x184] sm:$0xf] }
 0x356   :  { %6498 = vmatpush.bf16.msrb.mxu0 %v9868_v6  ;;  %v5874_v27 = vpop.f32.mrf.mxu2 }
 0x357   :  { %6511 = vmatpush.bf16.msrb.mxu1 %v9932_v51  ;;  %v5887_v8 = vpop.f32.mrf.mxu3  ;;  %v10055_v51 = vld [vmem:[#allocation8 + $0x1c0] sm:$0xf] }
 0x358   :  { %6524 = vmatpush.bf16.msrb.mxu2 %v9996_v14  ;;  %v10972_v14 = vld [vmem:[#allocation8 + $0x1b4] sm:$0xf0] }
 0x359   :  { %6483 = vmatpush.bf16.msra.mxu3 %v10072_v9  ;;  %v10048_v0 = vor.u32 %v10972_v14, %v10047_v11 }
 0x35a   :  { %6499 = vmatpush.bf16.msrb.mxu0 %v9860_v30  ;;  %v10031_v30 = vld [vmem:[#allocation8 + $0x190] sm:$0xf] }
 0x35b   :  { %6512 = vmatpush.bf16.msrb.mxu1 %v9924_v33  ;;  %v10968_v33 = vld [vmem:[#allocation8 + $0x194] sm:$0xf0] }
 0x35c   :  { %6525 = vmatpush.bf16.msrb.mxu2 %v9988_v3  ;;  %v10032_v35 = vor.u32 %v10968_v33, %v10031_v30  ;;  %v10023_v3 = vld [vmem:[#allocation8 + $0x180] sm:$0xf] }
 0x35d   :  { %6484 = vmatpush.bf16.msra.mxu3 %v10064_v25  ;;  %v10024_v34 = vor.u32 %v10966_v15, %v10023_v3 }
 0x35e   :  { %6500 = vmatpush.bf16.msrb.mxu0 %v9852_v12  ;;  %v10076_v12 = vor.u32 %v10977_v37, %v10073_v47  ;;  %v10986_v37 = vld [vmem:[#allocation11 + $0x28] sm:$0xff]  ;;  %v10985_v47 = vld [vmem:[#allocation11 + $0x20] sm:$0xff] }
 0x35f   :  { %6513 = vmatpush.bf16.msrb.mxu1 %v9916_v48  ;;  %v10975_v48 = vld [vmem:[#allocation8 + $0x1d4] sm:$0xf] }
 0x360   :  { %6526 = vmatpush.bf16.msrb.mxu2 %v9980_v18  ;;  %v10068_v52 = vor.u32 %v10975_v48, %v10065_v49  ;;  %v10984_v48 = vld [vmem:[#allocation11 + $0x18] sm:$0xff] }
 0x362   :  { %6501 = vmatpush.bf16.msrb.mxu0 %v9844_v1  ;;  %v10057_v1 = vld [vmem:[#allocation8 + $0x1c8] sm:$0xf0] }
 0x363   :  { %6514 = vmatpush.bf16.msrb.mxu1 %v9908_v17  ;;  %v10060_v17 = vor.u32 %v10973_v10, %v10057_v1 }
 0x364   :  { %6527 = vmatpush.bf16.msrb.mxu2 %v9972_v22  ;;  %v10971_v22 = vld [vmem:[#allocation8 + $0x1b4] sm:$0xf] }
 0x365   :  { %v10052_v50 = vor.u32 %v10971_v22, %v10049_v43  ;;  %v10994_v22 = vld [vmem:[#allocation11 + $0x68] sm:$0xff]  ;;  %v10981_v43 = vld [vmem:[#allocation11] sm:$0xff] }
 0x366   :  { %6502 = vmatpush.bf16.msrb.mxu0 %v9836_v59  ;;  %v5898_v20 = vpop.f32.mrf.mxu0  ;;  %v10044_v59 = vor.u32 %v10969_v13, %v10041_v24  ;;  %v10991_v13 = vld [vmem:[#allocation11 + $0x50] sm:$0xff]  ;;  %v10990_v24 = vld [vmem:[#allocation11 + $0x48] sm:$0xff] }
 0x367   :  { %6515 = vmatpush.bf16.msrb.mxu1 %v9900_v57  ;;  %v5911_v36 = vpop.f32.mrf.mxu1  ;;  %v5899_v55 = vadd.f32 %v5898_v20, %v11542_v54  ;;  %v10967_v54 = vld [vmem:[#allocation8 + $0x194] sm:$0xf]  ;;  %v10033_v57 = vld [vmem:[#allocation8 + $0x198] sm:$0xf0]  ;;  %v10025_v20 = vld [vmem:[#allocation8 + $0x188] sm:$0xf0] }
 0x368   :  { %6528 = vmatpush.bf16.msrb.mxu2 %v9964_v31  ;;  %v10036_v32 = vor.u32 %v10967_v54, %v10033_v57  ;;  %v10028_v62 = vor.u32 %v10965_v60, %v10025_v20 }
 0x369   :  { %6503 = vmatmul.bf16.vlgmr.msrb.gmra.mxu0 %v11532_v44  ;;  %v5912_v5 = vadd.f32 %v5911_v36, %v5899_v55  ;;  %v10983_v55 = vld [vmem:[#allocation11 + $0x10] sm:$0xff] }
 0x36a   :  { %6516 = vmatmul.bf16.vlgmr.msrb.gmra.mxu1 %v11534_v42  ;;  %v10974_v42 = vld [vmem:[#allocation8 + $0x1c4] sm:$0xf0]  ;;  %6683 = vmatpush.bf16.msra.mxu0 %v10988_v39 }
 0x36b   :  { %6529 = vmatmul.bf16.vlgmr.msrb.gmra.mxu2 %v11536_v29  ;;  %v10056_v29 = vor.u32 %v10974_v42, %v10055_v51  ;;  %6696 = vmatpush.bf16.msra.mxu1 %v10996_v41 }
 0x36d   :  { %6485 = vmatpush.bf16.msra.mxu3 %v10056_v29 }
 0x36e   :  { %v5924_v53 = vpop.f32.mrf.mxu2  ;;  %v5900_v44 = vpop.f32.mrf.mxu0 }
 0x36f   :  { %v5937_v6 = vpop.f32.mrf.mxu3  ;;  %v5913_v7 = vpop.f32.mrf.mxu1  ;;  %v5925_v23 = vadd.f32 %v5924_v53, %v5912_v5  ;;  %v10982_v5 = vld [vmem:[#allocation11 + $0x8] sm:$0xff] }
 0x371   :  { %6486 = vmatpush.bf16.msra.mxu3 %v10048_v0  ;;  %v5938_v31 = vadd.f32 %v5937_v6, %v5925_v23  ;;  %v10993_v23 = vld [vmem:[#allocation11 + $0x60] sm:$0xff] }
 0x375   :  { %6487 = vmatpush.bf16.msra.mxu3 %v10040_v38 }
 0x376   :  { %v5926_v28 = vpop.f32.mrf.mxu2 }
 0x377   :  { %v5939_v58 = vpop.f32.mrf.mxu3  ;;  %v6119_v28 = vperm.slane %v6117_v21, 0 }
 0x379   :  { %6488 = vmatpush.bf16.msra.mxu3 %v10032_v35 }
 0x37d   :  { %6489 = vmatpush.bf16.msra.mxu3 %v10024_v34 }
 0x381   :  { %6534 = vmatpush.bf16.msrb.mxu3 %v10084_v4 }
 0x385   :  { %6535 = vmatpush.bf16.msrb.mxu3 %v10076_v12  ;;  %v6120_v12 = vperm.slane %v6117_v21, 1 }
 0x386   :  { %v5950_v45 = vpop.f32.mrf.mxu0 }
 0x387   :  { %v5963_v46 = vpop.f32.mrf.mxu1  ;;  %v5951_v19 = vadd.f32 %v5950_v45, %v5938_v31  ;;  %v10987_v45 = vld [vmem:[#allocation11 + $0x30] sm:$0xff] }
 0x388   :  { %6684 = vmatpush.bf16.msra.mxu0 %v10987_v45 }
 0x389   :  { %6536 = vmatpush.bf16.msrb.mxu3 %v10068_v52  ;;  %v5964_v36 = vadd.f32 %v5963_v46, %v5951_v19  ;;  %v10995_v46 = vld [vmem:[#allocation11 + $0x70] sm:$0xff] }
 0x38a   :  { %6697 = vmatpush.bf16.msra.mxu1 %v10995_v46 }
 0x38c   :  { %6685 = vmatpush.bf16.msra.mxu0 %v10986_v37 }
 0x38d   :  { %6537 = vmatpush.bf16.msrb.mxu3 %v10060_v17 }
 0x38e   :  { %v5976_v18 = vpop.f32.mrf.mxu2  ;;  %v5952_v56 = vpop.f32.mrf.mxu0  ;;  %6698 = vmatpush.bf16.msra.mxu1 %v10994_v22 }
 0x38f   :  { %v5989_v61 = vpop.f32.mrf.mxu3  ;;  %v5965_v2 = vpop.f32.mrf.mxu1  ;;  %v5977_v26 = vadd.f32 %v5976_v18, %v5964_v36 }
 0x390   :  { %6686 = vmatpush.bf16.msra.mxu0 %v10985_v47 }
 0x391   :  { %6538 = vmatpush.bf16.msrb.mxu3 %v10052_v50  ;;  %v5990_v9 = vadd.f32 %v5989_v61, %v5977_v26  ;;  %v10992_v50 = vld [vmem:[#allocation11 + $0x58] sm:$0xff] }
 0x392   :  { %6699 = vmatpush.bf16.msra.mxu1 %v10993_v23 }
 0x394   :  { %6687 = vmatpush.bf16.msra.mxu0 %v10984_v48 }
 0x395   :  { %6539 = vmatpush.bf16.msrb.mxu3 %v10044_v59 }
 0x396   :  { %v5978_v27 = vpop.f32.mrf.mxu2  ;;  %6700 = vmatpush.bf16.msra.mxu1 %v10992_v50 }
 0x397   :  { %v5991_v8 = vpop.f32.mrf.mxu3  ;;  %v10989_v27 = vld [vmem:[#allocation11 + $0x40] sm:$0xff] }
 0x398   :  { %6688 = vmatpush.bf16.msra.mxu0 %v10983_v55 }
 0x399   :  { %6540 = vmatpush.bf16.msrb.mxu3 %v10036_v32 }
 0x39a   :  { %6701 = vmatpush.bf16.msra.mxu1 %v10991_v13 }
 0x39c   :  { %6689 = vmatpush.bf16.msra.mxu0 %v10982_v5 }
 0x39d   :  { %6541 = vmatpush.bf16.msrb.mxu3 %v10028_v62 }
 0x39e   :  { %6702 = vmatpush.bf16.msra.mxu1 %v10990_v24 }
 0x3a0   :  { %6690 = vmatpush.bf16.msra.mxu0 %v10981_v43 }
 0x3a2   :  { %6703 = vmatpush.bf16.msra.mxu1 %v10989_v27 }
 0x3a6   :  { %v6002_v40 = vpop.f32.mrf.mxu0 }
 0x3a7   :  { %v6015_v63 = vpop.f32.mrf.mxu1  ;;  %v6003_v53 = vadd.f32 %v6002_v40, %v5990_v9  ;;  %v11012_v9 = vld [vmem:[#allocation13] ss:$0 sm:$0xff] }
 0x3a9   :  { %v6016_v25 = vadd.f32 %v6015_v63, %v6003_v53 }
 0x3ae   :  { %v6028_v44 = vpop.f32.mrf.mxu2  ;;  %v6004_v7 = vpop.f32.mrf.mxu0 }
 0x3af   :  { %v6041_v51 = vpop.f32.mrf.mxu3  ;;  %v6029_v42 = vadd.f32 %v6028_v44, %v6016_v25  ;;  %v6017_v6 = vpop.f32.mrf.mxu1 }
 0x3b1   :  { %v6042_v29 = vadd.f32 %v6041_v51, %v6029_v42 }
 0x3b3   :  { %v6048_v11 = vmax.f32 %v6042_v29, 0.0 }
 0x3b5   :  { %v6052_v14 = vpack.c.bf16 %v6048_v11, %v6048_v11 }
 0x3b6   :  { %v6030_v0 = vpop.f32.mrf.mxu2 }
 0x3b7   :  { %v6043_v16 = vpop.f32.mrf.mxu3  ;;  %6490 = vmatmul.bf16.vlgmr.msra.gmra.mxu3 %v6052_v14 }
 0x3c6   :  { %v6452_v58 = vpop.f32.mrf.mxu0 }
 0x3c7   :  { %v6453_v38 = vadd.f32 %v6452_v58, %v6119_v28  ;;  %v6465_v30 = vpop.f32.mrf.mxu1  ;;  %6542 = vmatmul.bf16.vlgmr.msrb.gmra.mxu3 %v6052_v14 }
 0x3c9   :  { %v6466_v33 = vadd.f32 %v6465_v30, %v6453_v38 }
 0x3ce   :  { %v6478_v35 = vpop.f32.mrf.mxu2  ;;  %v6454_v15 = vpop.f32.mrf.mxu0 }
 0x3cf   :  { %v6479_v3 = vadd.f32 %v6478_v35, %v6466_v33  ;;  %v6467_v34 = vpop.f32.mrf.mxu1 }
 0x3d6   :  { %v6480_v4 = vpop.f32.mrf.mxu2 }
 0x3e6   :  { %v6504_v49 = vpop.f32.mrf.mxu0 }
 0x3e7   :  { %v6517_v52 = vpop.f32.mrf.mxu1  ;;  %v6505_v18 = vadd.f32 %v6504_v49, %v6120_v12 }
 0x3e9   :  { %v6518_v61 = vadd.f32 %v6517_v52, %v6505_v18 }
 0x3ee   :  { %v6530_v56 = vpop.f32.mrf.mxu2  ;;  %v6506_v10 = vpop.f32.mrf.mxu0 }
 0x3ef   :  { %v6531_v2 = vadd.f32 %v6530_v56, %v6518_v61  ;;  %v6519_v1 = vpop.f32.mrf.mxu1 }
 0x3f6   :  { %v6532_v17 = vpop.f32.mrf.mxu2 }
 0x43a   :  { %v6491_v8 = vpop.f32.mrf.mxu3 }
 0x43b   :  { %v6492_v59 = vadd.f32 %v6491_v8, %v6479_v3 }
 0x43d   :  { %v6547_v54 = vmax.f32 %v6492_v59, 0.0 }
 0x43f   :  { %v6549_v57 = vpack.c.bf16 %v6547_v54, %v6547_v54 }
 0x441   :  { %6691 = vmatmul.bf16.vlgmr.msra.gmra.mxu0 %v6549_v57 }
 0x442   :  { %v6493_v31 = vpop.f32.mrf.mxu3 }
 0x44a   :  { %v6543_v19 = vpop.f32.mrf.mxu3 }
 0x44b   :  { %v6544_v32 = vadd.f32 %v6543_v19, %v6531_v2 }
 0x44d   :  { %v6548_v60 = vmax.f32 %v6544_v32, 0.0 }
 0x44f   :  { %v6550_v20 = vpack.c.bf16 %v6548_v60, %v6548_v60 }
 0x451   :  { %6704 = vmatmul.bf16.vlgmr.msra.gmra.mxu1 %v6550_v20 }
 0x452   :  { %v6545_v36 = vpop.f32.mrf.mxu3 }
 0x4be   :  { %v6692_v62 = vpop.f32.mrf.mxu0 }
 0x4bf   :  { %v6693_v40 = vadd.f32 %v11012_v9, %v6692_v62 }
 0x4c6   :  { %v6694_v26 = vpop.f32.mrf.mxu0 }
 0x4ce   :  { %v6705_v63 = vpop.f32.mrf.mxu1 }
 0x4cf   :  { %v6706_v53 = vadd.f32 %v6705_v63, %v6693_v40 }
 0x4d1   :  { %6709 = vst [vmem:[#allocation14] sm:$0xff] %v6706_v53  ;;  %6710 = vmax.xlane.f32.xlu0 %v6706_v53 }
 0x4d2   :  { %6731 = dma.vmem_to_hbm [thread:$0]  %s6727_s6, 128, %s6729_s20, [#allocation4]  }
 0x4d6   :  { %v6707_v25 = vpop.f32.mrf.mxu1 }
 0x544   :  { %v6711_v44 = vpop.xlane.xlu0 %6710 }
 0x545   :  { %v6712_v51 = vsub.f32 %v6706_v53, %v6711_v44 }
 0x547   :  { %v6713_v42 = vmul.f32 1.442695, %v6712_v51 }
 0x549   :  { %11013 = vpow2.f32 %v6713_v42 }
 0x54f   :  { %v11014_v7 = vpop.eup %11013 }
 0x550   :  { %6715 = vadd.xlane.f32.xlu0 %v11014_v7 }
 0x5c3   :  { %v6716_v6 = vpop.xlane.xlu0 %6715 }
 0x5c4   :  { %11015 = vlog2.f32 %v6716_v6 }
 0x5ca   :  { %v11016_v29 = vpop.eup %11015 }
 0x5cb   :  { %v6718_v11 = vmul.f32 0.6931472, %v11016_v29 }
 0x5cd   :  { %v6719_v14 = vsub.f32 %v6712_v51, %v6718_v11 }
 0x5cf   :  { %6720 = vst [vmem:[#allocation15] sm:$0xff] %v6719_v14 }
 0x5d0   :  { %6742 = dma.vmem_to_hbm [thread:$0]  %s6738_s22, 128, %s6740_s24, [#allocation16]  }
 0x5d1   :  { %11244 = dma.done.wait [#allocation4], 128  }
 0x5d2   :  { %11245 = vsyncadd [#allocation4], 4294967168 }
 0x5d3   :  { %11246 = dma.done.wait [#allocation16], 128  }
 0x5d4   :  { %11247 = vsyncadd [#allocation16], 4294967168 }
 0x5d5   :  { %6751 = vsyncpa [#allocation3], 1 }
 0x5d6   :  { %6752 = vsyncpa [#allocation6], 1 }
 0x5d7   :  { %6753 = vsyncpa [#allocation9], 1 }
 0x5d8   :  { %6754 = vsyncpa [#allocation12], 1 }
 0x5d9   :  { %6755 = vsyncpa [#allocation4], 1 }
 0x5da   :  { %6756 = vsyncpa [#allocation16], 1 }

</bundles_post_ra>
